<compile_context>
chip_gen: v6e
topology: v6e:2x2x1
jax: 0.10.0
libtpu: 0.0.40
codegen_flags: <defaults>
</compile_context>

<pallas_src>
import functools

import jax
import jax.numpy as jnp
from jax.experimental import pallas as pl
from jax.experimental.pallas import tpu as pltpu


# --------------------------------------------------------------------------------------
# Fused Pallas kernel: TB images per grid program, everything VMEM-resident.
# --------------------------------------------------------------------------------------

def make_fused_kernel(TB, H, W, n_extra_hidden):
    H1, W1 = H // 2, W // 2          # after pool1
    H2, W2 = H // 4, W // 4          # after pool2

    def kernel(patches_ref, xflat_ref,
               wbase_ref, bbase_ref,
               w1_ref, b1_ref, w2_ref, b2_ref, w3_ref, b3_ref,
               wfc_ref, bfc_ref,
               whlog_ref, whimg_ref, bh0_ref,
               *rest):
        extra = rest[:2 * n_extra_hidden]
        (wout_ref, bout_ref,
         base_out_ref, meta_out_ref,
         pad2_ref, pad3_ref) = rest[2 * n_extra_hidden:]

        C1 = w1_ref.shape[1]          # 64
        C2 = w2_ref.shape[1]          # 128
        C3 = w3_ref.shape[1]          # 256
        bf = jnp.bfloat16

        # ---- base learners: one fused (TB, CHW) x (CHW, LOGIT_PAD) matmul ----
        xflat = xflat_ref[...].reshape(TB, -1)
        logits = (jnp.dot(xflat, wbase_ref[...],
                          preferred_element_type=jnp.float32) + bbase_ref[...])   # (TB, LOGIT_PAD)
        base_out_ref[...] = logits.reshape(TB, 1, -1)                 # lane-dense 128-wide store

        # ---- conv1: single im2col dot (M=TB*H*W, K=9*Cin) + bias(BN) + ReLU + maxpool2 ----
        a1 = (jnp.dot(patches_ref[...].reshape(TB * H * W, -1), w1_ref[...],
                      preferred_element_type=jnp.float32) + b1_ref[...])
        a1 = jnp.maximum(a1, 0.0)                                                  # (TB*H*W, C1)
        p1 = jnp.max(a1.reshape(TB * H1, 2, W, C1), axis=1)                        # pool rows
        p1 = jnp.max(p1.reshape(TB * H1, W1, 2, C1), axis=2)                       # pool cols

        # ---- conv2: im2col from padded VMEM scratch, ONE K=9*C1 dot ----
        # only the thin halo ring is (re)zeroed each step; interior fully overwritten.
        zdt = pad2_ref.dtype
        pad2_ref[:, 0:1, :, :] = jnp.zeros((TB, 1, W1 + 2, C1), zdt)
        pad2_ref[:, H1 + 1:H1 + 2, :, :] = jnp.zeros((TB, 1, W1 + 2, C1), zdt)
        pad2_ref[:, 1:H1 + 1, 0:1, :] = jnp.zeros((TB, H1, 1, C1), zdt)
        pad2_ref[:, 1:H1 + 1, W1 + 1:W1 + 2, :] = jnp.zeros((TB, H1, 1, C1), zdt)
        pad2_ref[:, 1:H1 + 1, 1:W1 + 1, :] = p1.reshape(TB, H1, W1, C1).astype(zdt)
        patches2 = jnp.concatenate(
            [pad2_ref[:, dy:dy + H1, dx:dx + W1, :] for dy in range(3) for dx in range(3)],
            axis=-1).reshape(TB * H1 * W1, 9 * C1)
        a2 = (jnp.dot(patches2, w2_ref[...], preferred_element_type=jnp.float32)
              + b2_ref[...])
        a2 = jnp.maximum(a2, 0.0)                                                  # (TB*H1*W1, C2)
        p2 = jnp.max(a2.reshape(TB * H2, 2, W1, C2), axis=1)
        p2 = jnp.max(p2.reshape(TB * H2, W2, 2, C2), axis=2)                       # (TB*H2, W2, C2)

        # ---- conv3: same im2col trick, ONE K=9*C2 dot + ReLU ----
        zdt3 = pad3_ref.dtype
        pad3_ref[:, 0:1, :, :] = jnp.zeros((TB, 1, W2 + 2, C2), zdt3)
        pad3_ref[:, H2 + 1:H2 + 2, :, :] = jnp.zeros((TB, 1, W2 + 2, C2), zdt3)
        pad3_ref[:, 1:H2 + 1, 0:1, :] = jnp.zeros((TB, H2, 1, C2), zdt3)
        pad3_ref[:, 1:H2 + 1, W2 + 1:W2 + 2, :] = jnp.zeros((TB, H2, 1, C2), zdt3)
        pad3_ref[:, 1:H2 + 1, 1:W2 + 1, :] = p2.reshape(TB, H2, W2, C2).astype(zdt3)
        patches3 = jnp.concatenate(
            [pad3_ref[:, dy:dy + H2, dx:dx + W2, :] for dy in range(3) for dx in range(3)],
            axis=-1).reshape(TB * H2 * W2, 9 * C2)
        a3 = jnp.maximum(jnp.dot(patches3, w3_ref[...],
                                 preferred_element_type=jnp.float32) + b3_ref[...], 0.0)

        # ---- global average pool + Linear + BN(folded) + ReLU ----
        g = jnp.mean(a3.reshape(TB, H2 * W2, C3), axis=1)                          # (TB, C3)
        f = jnp.maximum(jnp.dot(g.astype(bf), wfc_ref[...],
                                preferred_element_type=jnp.float32) + bfc_ref[...], 0.0)

        # ---- meta MLP: concat([logits, img_feat]) @ W  ==  logits@W_log + img_feat@W_img ----
        z = (jnp.dot(logits.astype(bf), whlog_ref[...], preferred_element_type=jnp.float32)
             + jnp.dot(f.astype(bf), whimg_ref[...], preferred_element_type=jnp.float32)
             + bh0_ref[...])
        z = jnp.maximum(z, 0.0)                                       # Dropout(eval) = identity
        for i in range(n_extra_hidden):
            w_ref, b_ref = extra[2 * i], extra[2 * i + 1]
            z = jnp.maximum(jnp.dot(z.astype(bf), w_ref[...],
                                    preferred_element_type=jnp.float32) + b_ref[...], 0.0)
        out = jnp.dot(z.astype(bf), wout_ref[...],
                      preferred_element_type=jnp.float32) + bout_ref[...]          # (TB, OUT_PAD)
        meta_out_ref[...] = out.reshape(TB, 1, -1)                    # lane-dense 128-wide store

    return kernel


# --------------------------------------------------------------------------------------
# Parameter setup (deterministic, eval-mode BN folded, weights packed/padded + cast to bf16)
# --------------------------------------------------------------------------------------

def _fold_bn(w, b, gamma, beta, mean, var, eps=1e-5):
    # y = ((x @ w + b) - mean) / sqrt(var+eps) * gamma + beta  ==  x @ (w*s) + (b*s + t)
    s = gamma / jnp.sqrt(var + eps)
    return w * s, b * s + (beta - mean * s)


def _round_up(x, m):
    return ((x + m - 1) // m) * m


def init_params(key, *, num_classes, num_base, hidden_dims, img_feat_dim, in_ch, hw):
    assert len(hidden_dims) >= 1
    ks = iter(jax.random.split(key, 128))
    bf = jnp.bfloat16

    def conv_p(cin, cout):
        w = jax.random.normal(next(ks), (9, cin, cout), jnp.float32) * 0.05
        b = jnp.zeros((cout,), jnp.float32)
        # BN2d at init (eval): gamma=1, beta=0, running_mean=0, running_var=1
        return _fold_bn(w, b, jnp.ones(cout), jnp.zeros(cout), jnp.zeros(cout), jnp.ones(cout))

    def lin_p(din, dout, bn=False):
        w = jax.random.normal(next(ks), (din, dout), jnp.float32) * 0.05
        b = jnp.zeros((dout,), jnp.float32)
        if bn:
            w, b = _fold_bn(w, b, jnp.ones(dout), jnp.zeros(dout), jnp.zeros(dout), jnp.ones(dout))
        return w, b

    # ---- ImageFeatureExtractor (im2col weight layouts: (9*Cin, Cout)) ----
    w1, b1 = conv_p(in_ch, 64)
    w2, b2 = conv_p(64, 128)
    w3, b3 = conv_p(128, 256)
    wfc, bfc = lin_p(256, img_feat_dim, bn=True)

    # ---- base learner stand-in heads, concatenated + padded to a lane-dense slab ----
    din = in_ch * hw * hw
    logits_dim = num_classes * num_base
    logit_pad = max(128, _round_up(logits_dim, 128))
    heads = [lin_p(din, num_classes) for _ in range(num_base)]
    wbase = jnp.concatenate([w for (w, _) in heads], axis=1)
    bbase = jnp.concatenate([b for (_, b) in heads], axis=0)
    wbase = jnp.pad(wbase, ((0, 0), (0, logit_pad - logits_dim)))
    bbase = jnp.pad(bbase, (0, logit_pad - logits_dim))

    # ---- meta MLP (first hidden split into logits-part / image-feature-part) ----
    h0 = hidden_dims[0]
    w_h0, b_h0 = lin_p(logits_dim + img_feat_dim, h0, bn=True)
    whlog = jnp.pad(w_h0[:logits_dim], ((0, logit_pad - logits_dim), (0, 0)))
    whimg = w_h0[logits_dim:]
    rest = []
    d = h0
    for h in hidden_dims[1:]:
        w, b = lin_p(d, h, bn=True)
        rest.append((w.astype(bf), b.reshape(1, -1)))
        d = h
    w_out, b_out = lin_p(d, num_classes)
    out_pad = max(128, _round_up(num_classes, 128))
    w_out = jnp.pad(w_out, ((0, 0), (0, out_pad - num_classes)))
    b_out = jnp.pad(b_out, (0, out_pad - num_classes))

    return {
        "conv1": (w1.reshape(9 * in_ch, 64).astype(bf), b1.reshape(1, 64)),
        "conv2": (w2.reshape(9 * 64, 128).astype(bf), b2.reshape(1, 128)),
        "conv3": (w3.reshape(9 * 128, 256).astype(bf), b3.reshape(1, 256)),
        "img_fc": (wfc.astype(bf), bfc.reshape(1, img_feat_dim)),
        "base_packed": (wbase.astype(bf), bbase.reshape(1, logit_pad)),
        "mlp_h0": (whlog.astype(bf), whimg.astype(bf), b_h0.reshape(1, h0)),
        "mlp_hidden_rest": rest,
        "mlp_out": (w_out.astype(bf), b_out.reshape(1, out_pad)),
    }


# --------------------------------------------------------------------------------------
# StackedModel forward (single fused pallas_call, batch-tiled grid)
# --------------------------------------------------------------------------------------

def _pick_tb(B, max_tb=8):
    """Largest batch tile that keeps the grid >= 2 programs (both v7x TensorCores busy).

    VMEM footprint per program is ~O(TB * 0.3 MiB) of activations + ~1 MiB of weights,
    so max_tb=8 keeps well under the 32 MiB scoped / 64 MiB physical v7x budget.
    """
    if B < 4:
        return 1
    tb = min(max_tb, B // 2)
    while tb > 1 and B % tb:
        tb -= 1
    return tb


def stacked_model_forward(params, x_nchw, *, num_classes, num_base, tb=None):
    B, C, H, W = x_nchw.shape
    assert H % 4 == 0 and W % 4 == 0
    if tb is None:
        tb = _pick_tb(B)
    assert B % tb == 0, "batch must be divisible by the batch tile"
    H1, W1, H2, W2 = H // 2, W // 2, H // 4, W // 4

    # Read the input once: NHWC transpose, then im2col for conv1 and flatten for the base heads.
    x = jnp.transpose(x_nchw, (0, 2, 3, 1)).astype(jnp.float32)
    xp = jnp.pad(x, ((0, 0), (1, 1), (1, 1), (0, 0)))
    cols = [xp[:, dy:dy + H, dx:dx + W, :] for dy in range(3) for dx in range(3)]
    patches = jnp.concatenate(cols, axis=-1).reshape(B, H * W, 9 * C).astype(jnp.bfloat16)
    xflat = x.reshape(B, 1, C * H * W).astype(jnp.bfloat16)   # TODO(synk): stand-in base flatten

    wbase, bbase = params["base_packed"]
    w1, b1 = params["conv1"]
    w2, b2 = params["conv2"]
    w3, b3 = params["conv3"]
    wfc, bfc = params["img_fc"]
    whlog, whimg, bh0 = params["mlp_h0"]
    extra = params["mlp_hidden_rest"]
    wout, bout = params["mlp_out"]

    C1 = w1.shape[1]
    C2 = w2.shape[1]
    logit_pad = wbase.shape[1]
    out_pad = wout.shape[1]
    n_extra = len(extra)

    def const(shape):
        n = len(shape)
        return pl.BlockSpec(shape, lambda b, n=n: (0,) * n)

    in_specs = [
        pl.BlockSpec((tb, H * W, 9 * C), lambda b: (b, 0, 0)),
        pl.BlockSpec((tb, 1, C * H * W), lambda b: (b, 0, 0)),
        const(wbase.shape), const(bbase.shape),
        const(w1.shape), const(b1.shape),
        const(w2.shape), const(b2.shape),
        const(w3.shape), const(b3.shape),
        const(wfc.shape), const(bfc.shape),
        const(whlog.shape), const(whimg.shape), const(bh0.shape),
    ]
    flat_extra = []
    for (w, b) in extra:
        in_specs += [const(w.shape), const(b.shape)]
        flat_extra += [w, b]
    in_specs += [const(wout.shape), const(bout.shape)]

    kernel = make_fused_kernel(tb, H, W, n_extra)

    base_pad, meta_pad = pl.pallas_call(
        kernel,
        out_shape=(jax.ShapeDtypeStruct((B, 1, logit_pad), jnp.float32),
                   jax.ShapeDtypeStruct((B, 1, out_pad), jnp.float32)),
        grid_spec=pltpu.PrefetchScalarGridSpec(
            num_scalar_prefetch=0,
            grid=(B // tb,),
            in_specs=in_specs,
            out_specs=(pl.BlockSpec((tb, 1, logit_pad), lambda b: (b, 0, 0)),
                       pl.BlockSpec((tb, 1, out_pad), lambda b: (b, 0, 0))),
            scratch_shapes=[
                pltpu.VMEM((tb, H1 + 2, W1 + 2, C1), jnp.bfloat16),   # conv2 padded input
                pltpu.VMEM((tb, H2 + 2, W2 + 2, C2), jnp.bfloat16),   # conv3 padded input
            ]),
        compiler_params=pltpu.CompilerParams(dimension_semantics=("parallel",)),
    )(patches, xflat, wbase, bbase, w1, b1, w2, b2, w3, b3, wfc, bfc,
      whlog, whimg, bh0, *flat_extra, wout, bout)

    stacked = base_pad.reshape(B, logit_pad)[:, :num_base * num_classes]
    base_outputs = [stacked[:, i * num_classes:(i + 1) * num_classes] for i in range(num_base)]
    meta_output = meta_pad.reshape(B, out_pad)[:, :num_classes]
    return {"base_outputs": base_outputs, "meta_output": meta_output}


# --------------------------------------------------------------------------------------
# Main
# --------------------------------------------------------------------------------------

if __name__ == "__main__":
    B, C, HW = 2, 3, 16
    NUM_CLASSES, NUM_BASE = 10, 2
    HIDDEN_DIMS = (32,)
    IMG_FEAT_DIM = 256

    key = jax.random.PRNGKey(0)
    k_x, k_p = jax.random.split(key)
    x = jax.random.normal(k_x, (B, C, HW, HW), jnp.float32)      # NCHW like the PyTorch ref

    params = init_params(k_p, num_classes=NUM_CLASSES, num_base=NUM_BASE,
                         hidden_dims=HIDDEN_DIMS, img_feat_dim=IMG_FEAT_DIM,
                         in_ch=C, hw=HW)

    fwd = jax.jit(functools.partial(stacked_model_forward,
                                    num_classes=NUM_CLASSES, num_base=NUM_BASE))
    out = fwd(params, x)
    jax.block_until_ready(out)

    assert out["meta_output"].shape == (B, NUM_CLASSES)
    assert len(out["base_outputs"]) == NUM_BASE
    assert all(o.shape == (B, NUM_CLASSES) for o in out["base_outputs"])
    assert bool(jnp.all(jnp.isfinite(out["meta_output"])))
    print("KERNEL_OK")
</pallas_src>

<mosaic_0001>
module attributes {stable_mosaic.version = 11 : i64} {
  func.func @kernel(%arg0: i32, %arg1: memref<1x256x27xbf16, #tpu.memory_space<vmem>>, %arg2: memref<1x1x768xbf16, #tpu.memory_space<vmem>>, %arg3: memref<768x128xbf16, #tpu.memory_space<vmem>>, %arg4: memref<1x128xf32, #tpu.memory_space<vmem>>, %arg5: memref<27x64xbf16, #tpu.memory_space<vmem>>, %arg6: memref<1x64xf32, #tpu.memory_space<vmem>>, %arg7: memref<576x128xbf16, #tpu.memory_space<vmem>>, %arg8: memref<1x128xf32, #tpu.memory_space<vmem>>, %arg9: memref<1152x256xbf16, #tpu.memory_space<vmem>>, %arg10: memref<1x256xf32, #tpu.memory_space<vmem>>, %arg11: memref<256x256xbf16, #tpu.memory_space<vmem>>, %arg12: memref<1x256xf32, #tpu.memory_space<vmem>>, %arg13: memref<128x32xbf16, #tpu.memory_space<vmem>>, %arg14: memref<256x32xbf16, #tpu.memory_space<vmem>>, %arg15: memref<1x32xf32, #tpu.memory_space<vmem>>, %arg16: memref<32x128xbf16, #tpu.memory_space<vmem>>, %arg17: memref<1x128xf32, #tpu.memory_space<vmem>>, %arg18: memref<1x1x128xf32, #tpu.memory_space<vmem>>, %arg19: memref<1x1x128xf32, #tpu.memory_space<vmem>>, %arg20: memref<1x10x10x64xbf16, #tpu.memory_space<vmem>>, %arg21: memref<1x6x6x128xbf16, #tpu.memory_space<vmem>>) attributes {dimension_semantics = [#tpu.dimension_semantics<parallel>], iteration_bounds = array<i64: 2>, scalar_prefetch = 0 : i64, scratch_operands = 2 : i64, tpu.core_type = #tpu.core_type<tc>, window_params = [{transform_indices = @transform_0, window_bounds = array<i64: 1, 256, 27>}, {transform_indices = @transform_1, window_bounds = array<i64: 1, 1, 768>}, {pipeline_mode = #tpu.pipeline_mode<synchronous>, transform_indices = @transform_2, window_bounds = array<i64: 768, 128>}, {pipeline_mode = #tpu.pipeline_mode<synchronous>, transform_indices = @transform_3, window_bounds = array<i64: 1, 128>}, {pipeline_mode = #tpu.pipeline_mode<synchronous>, transform_indices = @transform_4, window_bounds = array<i64: 27, 64>}, {pipeline_mode = #tpu.pipeline_mode<synchronous>, transform_indices = @transform_5, window_bounds = array<i64: 1, 64>}, {pipeline_mode = #tpu.pipeline_mode<synchronous>, transform_indices = @transform_6, window_bounds = array<i64: 576, 128>}, {pipeline_mode = #tpu.pipeline_mode<synchronous>, transform_indices = @transform_7, window_bounds = array<i64: 1, 128>}, {pipeline_mode = #tpu.pipeline_mode<synchronous>, transform_indices = @transform_8, window_bounds = array<i64: 1152, 256>}, {pipeline_mode = #tpu.pipeline_mode<synchronous>, transform_indices = @transform_9, window_bounds = array<i64: 1, 256>}, {pipeline_mode = #tpu.pipeline_mode<synchronous>, transform_indices = @transform_10, window_bounds = array<i64: 256, 256>}, {pipeline_mode = #tpu.pipeline_mode<synchronous>, transform_indices = @transform_11, window_bounds = array<i64: 1, 256>}, {pipeline_mode = #tpu.pipeline_mode<synchronous>, transform_indices = @transform_12, window_bounds = array<i64: 128, 32>}, {pipeline_mode = #tpu.pipeline_mode<synchronous>, transform_indices = @transform_13, window_bounds = array<i64: 256, 32>}, {pipeline_mode = #tpu.pipeline_mode<synchronous>, transform_indices = @transform_14, window_bounds = array<i64: 1, 32>}, {pipeline_mode = #tpu.pipeline_mode<synchronous>, transform_indices = @transform_15, window_bounds = array<i64: 32, 128>}, {pipeline_mode = #tpu.pipeline_mode<synchronous>, transform_indices = @transform_16, window_bounds = array<i64: 1, 128>}, {transform_indices = @transform_17, window_bounds = array<i64: 1, 1, 128>}, {transform_indices = @transform_18, window_bounds = array<i64: 1, 1, 128>}]} {
    %c0 = arith.constant 0 : index
    %c0_0 = arith.constant 0 : index
    %c0_1 = arith.constant 0 : index
    %0 = vector.load %arg2[%c0, %c0_0, %c0_1] : memref<1x1x768xbf16, #tpu.memory_space<vmem>>, vector<1x1x768xbf16>
    %1 = vector.shape_cast %0 : vector<1x1x768xbf16> to vector<1x768xbf16>
    %c0_2 = arith.constant 0 : index
    %c0_3 = arith.constant 0 : index
    %2 = vector.load %arg3[%c0_2, %c0_3] : memref<768x128xbf16, #tpu.memory_space<vmem>>, vector<768x128xbf16>
    %cst = arith.constant dense<0.000000e+00> : vector<1x128xf32>
    %3 = tpu.matmul %1, %2, %cst {dimension_numbers = #tpu.dot_dimension_numbers<[1], [0], [0], [1], [0, 0, 1, 1], [], []>} : vector<1x768xbf16>, vector<768x128xbf16>, vector<1x128xf32> -> vector<1x128xf32>
    %c0_4 = arith.constant 0 : index
    %c0_5 = arith.constant 0 : index
    %4 = vector.load %arg4[%c0_4, %c0_5] : memref<1x128xf32, #tpu.memory_space<vmem>>, vector<1x128xf32>
    %5 = arith.addf %3, %4 : vector<1x128xf32>
    %6 = vector.shape_cast %5 : vector<1x128xf32> to vector<1x1x128xf32>
    %c0_6 = arith.constant 0 : index
    %c0_7 = arith.constant 0 : index
    %c0_8 = arith.constant 0 : index
    %7 = vector.load %arg18[%c0_6, %c0_7, %c0_8] : memref<1x1x128xf32, #tpu.memory_space<vmem>>, vector<1x1x128xf32>
    tpu.vector_store %arg18[%c0_6, %c0_7, %c0_8], %6 {strides = array<i32>} : memref<1x1x128xf32, #tpu.memory_space<vmem>>, vector<1x1x128xf32>,
    %c0_9 = arith.constant 0 : index
    %c0_10 = arith.constant 0 : index
    %c0_11 = arith.constant 0 : index
    %8 = vector.load %arg1[%c0_9, %c0_10, %c0_11] : memref<1x256x27xbf16, #tpu.memory_space<vmem>>, vector<1x256x27xbf16>
    %9 = vector.shape_cast %8 : vector<1x256x27xbf16> to vector<256x27xbf16>
    %c0_12 = arith.constant 0 : index
    %c0_13 = arith.constant 0 : index
    %10 = vector.load %arg5[%c0_12, %c0_13] : memref<27x64xbf16, #tpu.memory_space<vmem>>, vector<27x64xbf16>
    %cst_14 = arith.constant dense<0.000000e+00> : vector<256x64xf32>
    %11 = tpu.matmul %9, %10, %cst_14 {dimension_numbers = #tpu.dot_dimension_numbers<[1], [0], [0], [1], [0, 0, 1, 1], [], []>} : vector<256x27xbf16>, vector<27x64xbf16>, vector<256x64xf32> -> vector<256x64xf32>
    %c0_15 = arith.constant 0 : index
    %c0_16 = arith.constant 0 : index
    %12 = vector.load %arg6[%c0_15, %c0_16] : memref<1x64xf32, #tpu.memory_space<vmem>>, vector<1x64xf32>
    %13 = vector.broadcast %12 : vector<1x64xf32> to vector<256x64xf32>
    %14 = arith.addf %11, %13 : vector<256x64xf32>
    %cst_17 = arith.constant 0.000000e+00 : f32
    %15 = vector.broadcast %cst_17 : f32 to vector<256x64xf32>
    %16 = arith.maximumf %14, %15 : vector<256x64xf32>
    %17 = vector.shape_cast %16 : vector<256x64xf32> to vector<8x2x16x64xf32>
    %cst_18 = arith.constant dense<0xFF800000> : vector<8x16x64xf32>
    %18 = vector.multi_reduction <maximumf>, %17, %cst_18 [1] : vector<8x2x16x64xf32> to vector<8x16x64xf32>
    %19 = vector.shape_cast %18 : vector<8x16x64xf32> to vector<8x8x2x64xf32>
    %cst_19 = arith.constant dense<0xFF800000> : vector<8x8x64xf32>
    %20 = vector.multi_reduction <maximumf>, %19, %cst_19 [2] : vector<8x8x2x64xf32> to vector<8x8x64xf32>
    %cst_20 = arith.constant 0.000000e+00 : bf16
    %21 = vector.broadcast %cst_20 : bf16 to vector<1x1x10x64xbf16>
    %c0_21 = arith.constant 0 : index
    %c0_22 = arith.constant 0 : index
    %c0_23 = arith.constant 0 : index
    %c0_24 = arith.constant 0 : index
    %22 = vector.load %arg20[%c0_21, %c0_22, %c0_23, %c0_24] : memref<1x10x10x64xbf16, #tpu.memory_space<vmem>>, vector<1x1x10x64xbf16>
    tpu.vector_store %arg20[%c0_21, %c0_22, %c0_23, %c0_24], %21 {strides = array<i32>} : memref<1x10x10x64xbf16, #tpu.memory_space<vmem>>, vector<1x1x10x64xbf16>,
    %cst_25 = arith.constant 0.000000e+00 : bf16
    %23 = vector.broadcast %cst_25 : bf16 to vector<1x1x10x64xbf16>
    %c0_26 = arith.constant 0 : index
    %c9 = arith.constant 9 : index
    %c0_27 = arith.constant 0 : index
    %c0_28 = arith.constant 0 : index
    %24 = vector.load %arg20[%c0_26, %c9, %c0_27, %c0_28] : memref<1x10x10x64xbf16, #tpu.memory_space<vmem>>, vector<1x1x10x64xbf16>
    tpu.vector_store %arg20[%c0_26, %c9, %c0_27, %c0_28], %23 {strides = array<i32>} : memref<1x10x10x64xbf16, #tpu.memory_space<vmem>>, vector<1x1x10x64xbf16>,
    %cst_29 = arith.constant 0.000000e+00 : bf16
    %25 = vector.broadcast %cst_29 : bf16 to vector<1x8x1x64xbf16>
    %c0_30 = arith.constant 0 : index
    %c1 = arith.constant 1 : index
    %c0_31 = arith.constant 0 : index
    %c0_32 = arith.constant 0 : index
    %26 = vector.load %arg20[%c0_30, %c1, %c0_31, %c0_32] : memref<1x10x10x64xbf16, #tpu.memory_space<vmem>>, vector<1x8x1x64xbf16>
    tpu.vector_store %arg20[%c0_30, %c1, %c0_31, %c0_32], %25 {strides = array<i32>} : memref<1x10x10x64xbf16, #tpu.memory_space<vmem>>, vector<1x8x1x64xbf16>,
    %cst_33 = arith.constant 0.000000e+00 : bf16
    %27 = vector.broadcast %cst_33 : bf16 to vector<1x8x1x64xbf16>
    %c0_34 = arith.constant 0 : index
    %c1_35 = arith.constant 1 : index
    %c9_36 = arith.constant 9 : index
    %c0_37 = arith.constant 0 : index
    %28 = vector.load %arg20[%c0_34, %c1_35, %c9_36, %c0_37] : memref<1x10x10x64xbf16, #tpu.memory_space<vmem>>, vector<1x8x1x64xbf16>
    tpu.vector_store %arg20[%c0_34, %c1_35, %c9_36, %c0_37], %27 {strides = array<i32>} : memref<1x10x10x64xbf16, #tpu.memory_space<vmem>>, vector<1x8x1x64xbf16>,
    %29 = vector.shape_cast %20 : vector<8x8x64xf32> to vector<1x8x8x64xf32>
    %30 = arith.truncf %29 : vector<1x8x8x64xf32> to vector<1x8x8x64xbf16>
    %c0_38 = arith.constant 0 : index
    %c1_39 = arith.constant 1 : index
    %c1_40 = arith.constant 1 : index
    %c0_41 = arith.constant 0 : index
    %31 = vector.load %arg20[%c0_38, %c1_39, %c1_40, %c0_41] : memref<1x10x10x64xbf16, #tpu.memory_space<vmem>>, vector<1x8x8x64xbf16>
    tpu.vector_store %arg20[%c0_38, %c1_39, %c1_40, %c0_41], %30 {strides = array<i32>} : memref<1x10x10x64xbf16, #tpu.memory_space<vmem>>, vector<1x8x8x64xbf16>,
    %c0_42 = arith.constant 0 : index
    %c0_43 = arith.constant 0 : index
    %c0_44 = arith.constant 0 : index
    %c0_45 = arith.constant 0 : index
    %32 = vector.load %arg20[%c0_42, %c0_43, %c0_44, %c0_45] : memref<1x10x10x64xbf16, #tpu.memory_space<vmem>>, vector<1x8x8x64xbf16>
    %c0_46 = arith.constant 0 : index
    %c0_47 = arith.constant 0 : index
    %c1_48 = arith.constant 1 : index
    %c0_49 = arith.constant 0 : index
    %33 = vector.load %arg20[%c0_46, %c0_47, %c1_48, %c0_49] : memref<1x10x10x64xbf16, #tpu.memory_space<vmem>>, vector<1x8x8x64xbf16>
    %c0_50 = arith.constant 0 : index
    %c0_51 = arith.constant 0 : index
    %c2 = arith.constant 2 : index
    %c0_52 = arith.constant 0 : index
    %34 = vector.load %arg20[%c0_50, %c0_51, %c2, %c0_52] : memref<1x10x10x64xbf16, #tpu.memory_space<vmem>>, vector<1x8x8x64xbf16>
    %c0_53 = arith.constant 0 : index
    %c1_54 = arith.constant 1 : index
    %c0_55 = arith.constant 0 : index
    %c0_56 = arith.constant 0 : index
    %35 = vector.load %arg20[%c0_53, %c1_54, %c0_55, %c0_56] : memref<1x10x10x64xbf16, #tpu.memory_space<vmem>>, vector<1x8x8x64xbf16>
    %c0_57 = arith.constant 0 : index
    %c1_58 = arith.constant 1 : index
    %c1_59 = arith.constant 1 : index
    %c0_60 = arith.constant 0 : index
    %36 = vector.load %arg20[%c0_57, %c1_58, %c1_59, %c0_60] : memref<1x10x10x64xbf16, #tpu.memory_space<vmem>>, vector<1x8x8x64xbf16>
    %c0_61 = arith.constant 0 : index
    %c1_62 = arith.constant 1 : index
    %c2_63 = arith.constant 2 : index
    %c0_64 = arith.constant 0 : index
    %37 = vector.load %arg20[%c0_61, %c1_62, %c2_63, %c0_64] : memref<1x10x10x64xbf16, #tpu.memory_space<vmem>>, vector<1x8x8x64xbf16>
    %c0_65 = arith.constant 0 : index
    %c2_66 = arith.constant 2 : index
    %c0_67 = arith.constant 0 : index
    %c0_68 = arith.constant 0 : index
    %38 = vector.load %arg20[%c0_65, %c2_66, %c0_67, %c0_68] : memref<1x10x10x64xbf16, #tpu.memory_space<vmem>>, vector<1x8x8x64xbf16>
    %c0_69 = arith.constant 0 : index
    %c2_70 = arith.constant 2 : index
    %c1_71 = arith.constant 1 : index
    %c0_72 = arith.constant 0 : index
    %39 = vector.load %arg20[%c0_69, %c2_70, %c1_71, %c0_72] : memref<1x10x10x64xbf16, #tpu.memory_space<vmem>>, vector<1x8x8x64xbf16>
    %c0_73 = arith.constant 0 : index
    %c2_74 = arith.constant 2 : index
    %c2_75 = arith.constant 2 : index
    %c0_76 = arith.constant 0 : index
    %40 = vector.load %arg20[%c0_73, %c2_74, %c2_75, %c0_76] : memref<1x10x10x64xbf16, #tpu.memory_space<vmem>>, vector<1x8x8x64xbf16>
    %41 = tpu.concatenate %32, %33, %34, %35, %36, %37, %38, %39, %40 in 3 : vector<1x8x8x64xbf16>, vector<1x8x8x64xbf16>, vector<1x8x8x64xbf16>, vector<1x8x8x64xbf16>, vector<1x8x8x64xbf16>, vector<1x8x8x64xbf16>, vector<1x8x8x64xbf16>, vector<1x8x8x64xbf16>, vector<1x8x8x64xbf16> -> vector<1x8x8x576xbf16>
    %42 = vector.shape_cast %41 : vector<1x8x8x576xbf16> to vector<64x576xbf16>
    %c0_77 = arith.constant 0 : index
    %c0_78 = arith.constant 0 : index
    %43 = vector.load %arg7[%c0_77, %c0_78] : memref<576x128xbf16, #tpu.memory_space<vmem>>, vector<576x128xbf16>
    %cst_79 = arith.constant dense<0.000000e+00> : vector<64x128xf32>
    %44 = tpu.matmul %42, %43, %cst_79 {dimension_numbers = #tpu.dot_dimension_numbers<[1], [0], [0], [1], [0, 0, 1, 1], [], []>} : vector<64x576xbf16>, vector<576x128xbf16>, vector<64x128xf32> -> vector<64x128xf32>
    %c0_80 = arith.constant 0 : index
    %c0_81 = arith.constant 0 : index
    %45 = vector.load %arg8[%c0_80, %c0_81] : memref<1x128xf32, #tpu.memory_space<vmem>>, vector<1x128xf32>
    %46 = vector.broadcast %45 : vector<1x128xf32> to vector<64x128xf32>
    %47 = arith.addf %44, %46 : vector<64x128xf32>
    %cst_82 = arith.constant 0.000000e+00 : f32
    %48 = vector.broadcast %cst_82 : f32 to vector<64x128xf32>
    %49 = arith.maximumf %47, %48 : vector<64x128xf32>
    %50 = vector.shape_cast %49 : vector<64x128xf32> to vector<4x2x8x128xf32>
    %cst_83 = arith.constant dense<0xFF800000> : vector<4x8x128xf32>
    %51 = vector.multi_reduction <maximumf>, %50, %cst_83 [1] : vector<4x2x8x128xf32> to vector<4x8x128xf32>
    %52 = vector.shape_cast %51 : vector<4x8x128xf32> to vector<4x4x2x128xf32>
    %cst_84 = arith.constant dense<0xFF800000> : vector<4x4x128xf32>
    %53 = vector.multi_reduction <maximumf>, %52, %cst_84 [2] : vector<4x4x2x128xf32> to vector<4x4x128xf32>
    %cst_85 = arith.constant 0.000000e+00 : bf16
    %54 = vector.broadcast %cst_85 : bf16 to vector<1x1x6x128xbf16>
    %c0_86 = arith.constant 0 : index
    %c0_87 = arith.constant 0 : index
    %c0_88 = arith.constant 0 : index
    %c0_89 = arith.constant 0 : index
    %55 = vector.load %arg21[%c0_86, %c0_87, %c0_88, %c0_89] : memref<1x6x6x128xbf16, #tpu.memory_space<vmem>>, vector<1x1x6x128xbf16>
    tpu.vector_store %arg21[%c0_86, %c0_87, %c0_88, %c0_89], %54 {strides = array<i32>} : memref<1x6x6x128xbf16, #tpu.memory_space<vmem>>, vector<1x1x6x128xbf16>,
    %cst_90 = arith.constant 0.000000e+00 : bf16
    %56 = vector.broadcast %cst_90 : bf16 to vector<1x1x6x128xbf16>
    %c0_91 = arith.constant 0 : index
    %c5 = arith.constant 5 : index
    %c0_92 = arith.constant 0 : index
    %c0_93 = arith.constant 0 : index
    %57 = vector.load %arg21[%c0_91, %c5, %c0_92, %c0_93] : memref<1x6x6x128xbf16, #tpu.memory_space<vmem>>, vector<1x1x6x128xbf16>
    tpu.vector_store %arg21[%c0_91, %c5, %c0_92, %c0_93], %56 {strides = array<i32>} : memref<1x6x6x128xbf16, #tpu.memory_space<vmem>>, vector<1x1x6x128xbf16>,
    %cst_94 = arith.constant 0.000000e+00 : bf16
    %58 = vector.broadcast %cst_94 : bf16 to vector<1x4x1x128xbf16>
    %c0_95 = arith.constant 0 : index
    %c1_96 = arith.constant 1 : index
    %c0_97 = arith.constant 0 : index
    %c0_98 = arith.constant 0 : index
    %59 = vector.load %arg21[%c0_95, %c1_96, %c0_97, %c0_98] : memref<1x6x6x128xbf16, #tpu.memory_space<vmem>>, vector<1x4x1x128xbf16>
    tpu.vector_store %arg21[%c0_95, %c1_96, %c0_97, %c0_98], %58 {strides = array<i32>} : memref<1x6x6x128xbf16, #tpu.memory_space<vmem>>, vector<1x4x1x128xbf16>,
    %cst_99 = arith.constant 0.000000e+00 : bf16
    %60 = vector.broadcast %cst_99 : bf16 to vector<1x4x1x128xbf16>
    %c0_100 = arith.constant 0 : index
    %c1_101 = arith.constant 1 : index
    %c5_102 = arith.constant 5 : index
    %c0_103 = arith.constant 0 : index
    %61 = vector.load %arg21[%c0_100, %c1_101, %c5_102, %c0_103] : memref<1x6x6x128xbf16, #tpu.memory_space<vmem>>, vector<1x4x1x128xbf16>
    tpu.vector_store %arg21[%c0_100, %c1_101, %c5_102, %c0_103], %60 {strides = array<i32>} : memref<1x6x6x128xbf16, #tpu.memory_space<vmem>>, vector<1x4x1x128xbf16>,
    %62 = vector.shape_cast %53 : vector<4x4x128xf32> to vector<1x4x4x128xf32>
    %63 = arith.truncf %62 : vector<1x4x4x128xf32> to vector<1x4x4x128xbf16>
    %c0_104 = arith.constant 0 : index
    %c1_105 = arith.constant 1 : index
    %c1_106 = arith.constant 1 : index
    %c0_107 = arith.constant 0 : index
    %64 = vector.load %arg21[%c0_104, %c1_105, %c1_106, %c0_107] : memref<1x6x6x128xbf16, #tpu.memory_space<vmem>>, vector<1x4x4x128xbf16>
    tpu.vector_store %arg21[%c0_104, %c1_105, %c1_106, %c0_107], %63 {strides = array<i32>} : memref<1x6x6x128xbf16, #tpu.memory_space<vmem>>, vector<1x4x4x128xbf16>,
    %c0_108 = arith.constant 0 : index
    %c0_109 = arith.constant 0 : index
    %c0_110 = arith.constant 0 : index
    %c0_111 = arith.constant 0 : index
    %65 = vector.load %arg21[%c0_108, %c0_109, %c0_110, %c0_111] : memref<1x6x6x128xbf16, #tpu.memory_space<vmem>>, vector<1x4x4x128xbf16>
    %c0_112 = arith.constant 0 : index
    %c0_113 = arith.constant 0 : index
    %c1_114 = arith.constant 1 : index
    %c0_115 = arith.constant 0 : index
    %66 = vector.load %arg21[%c0_112, %c0_113, %c1_114, %c0_115] : memref<1x6x6x128xbf16, #tpu.memory_space<vmem>>, vector<1x4x4x128xbf16>
    %c0_116 = arith.constant 0 : index
    %c0_117 = arith.constant 0 : index
    %c2_118 = arith.constant 2 : index
    %c0_119 = arith.constant 0 : index
    %67 = vector.load %arg21[%c0_116, %c0_117, %c2_118, %c0_119] : memref<1x6x6x128xbf16, #tpu.memory_space<vmem>>, vector<1x4x4x128xbf16>
    %c0_120 = arith.constant 0 : index
    %c1_121 = arith.constant 1 : index
    %c0_122 = arith.constant 0 : index
    %c0_123 = arith.constant 0 : index
    %68 = vector.load %arg21[%c0_120, %c1_121, %c0_122, %c0_123] : memref<1x6x6x128xbf16, #tpu.memory_space<vmem>>, vector<1x4x4x128xbf16>
    %c0_124 = arith.constant 0 : index
    %c1_125 = arith.constant 1 : index
    %c1_126 = arith.constant 1 : index
    %c0_127 = arith.constant 0 : index
    %69 = vector.load %arg21[%c0_124, %c1_125, %c1_126, %c0_127] : memref<1x6x6x128xbf16, #tpu.memory_space<vmem>>, vector<1x4x4x128xbf16>
    %c0_128 = arith.constant 0 : index
    %c1_129 = arith.constant 1 : index
    %c2_130 = arith.constant 2 : index
    %c0_131 = arith.constant 0 : index
    %70 = vector.load %arg21[%c0_128, %c1_129, %c2_130, %c0_131] : memref<1x6x6x128xbf16, #tpu.memory_space<vmem>>, vector<1x4x4x128xbf16>
    %c0_132 = arith.constant 0 : index
    %c2_133 = arith.constant 2 : index
    %c0_134 = arith.constant 0 : index
    %c0_135 = arith.constant 0 : index
    %71 = vector.load %arg21[%c0_132, %c2_133, %c0_134, %c0_135] : memref<1x6x6x128xbf16, #tpu.memory_space<vmem>>, vector<1x4x4x128xbf16>
    %c0_136 = arith.constant 0 : index
    %c2_137 = arith.constant 2 : index
    %c1_138 = arith.constant 1 : index
    %c0_139 = arith.constant 0 : index
    %72 = vector.load %arg21[%c0_136, %c2_137, %c1_138, %c0_139] : memref<1x6x6x128xbf16, #tpu.memory_space<vmem>>, vector<1x4x4x128xbf16>
    %c0_140 = arith.constant 0 : index
    %c2_141 = arith.constant 2 : index
    %c2_142 = arith.constant 2 : index
    %c0_143 = arith.constant 0 : index
    %73 = vector.load %arg21[%c0_140, %c2_141, %c2_142, %c0_143] : memref<1x6x6x128xbf16, #tpu.memory_space<vmem>>, vector<1x4x4x128xbf16>
    %74 = tpu.concatenate %65, %66, %67, %68, %69, %70, %71, %72, %73 in 3 : vector<1x4x4x128xbf16>, vector<1x4x4x128xbf16>, vector<1x4x4x128xbf16>, vector<1x4x4x128xbf16>, vector<1x4x4x128xbf16>, vector<1x4x4x128xbf16>, vector<1x4x4x128xbf16>, vector<1x4x4x128xbf16>, vector<1x4x4x128xbf16> -> vector<1x4x4x1152xbf16>
    %75 = vector.shape_cast %74 : vector<1x4x4x1152xbf16> to vector<16x1152xbf16>
    %c0_144 = arith.constant 0 : index
    %c0_145 = arith.constant 0 : index
    %76 = vector.load %arg9[%c0_144, %c0_145] : memref<1152x256xbf16, #tpu.memory_space<vmem>>, vector<1152x256xbf16>
    %cst_146 = arith.constant dense<0.000000e+00> : vector<16x256xf32>
    %77 = tpu.matmul %75, %76, %cst_146 {dimension_numbers = #tpu.dot_dimension_numbers<[1], [0], [0], [1], [0, 0, 1, 1], [], []>} : vector<16x1152xbf16>, vector<1152x256xbf16>, vector<16x256xf32> -> vector<16x256xf32>
    %c0_147 = arith.constant 0 : index
    %c0_148 = arith.constant 0 : index
    %78 = vector.load %arg10[%c0_147, %c0_148] : memref<1x256xf32, #tpu.memory_space<vmem>>, vector<1x256xf32>
    %79 = vector.broadcast %78 : vector<1x256xf32> to vector<16x256xf32>
    %80 = arith.addf %77, %79 : vector<16x256xf32>
    %cst_149 = arith.constant 0.000000e+00 : f32
    %81 = vector.broadcast %cst_149 : f32 to vector<16x256xf32>
    %82 = arith.maximumf %80, %81 : vector<16x256xf32>
    %83 = vector.shape_cast %82 : vector<16x256xf32> to vector<1x16x256xf32>
    %cst_150 = arith.constant dense<0.000000e+00> : vector<1x256xf32>
    %84 = vector.multi_reduction <add>, %83, %cst_150 [1] : vector<1x16x256xf32> to vector<1x256xf32>
    %cst_151 = arith.constant 1.600000e+01 : f32
    %85 = vector.broadcast %cst_151 : f32 to vector<1x256xf32>
    %86 = arith.divf %84, %85 : vector<1x256xf32>
    %87 = arith.truncf %86 : vector<1x256xf32> to vector<1x256xbf16>
    %c0_152 = arith.constant 0 : index
    %c0_153 = arith.constant 0 : index
    %88 = vector.load %arg11[%c0_152, %c0_153] : memref<256x256xbf16, #tpu.memory_space<vmem>>, vector<256x256xbf16>
    %cst_154 = arith.constant dense<0.000000e+00> : vector<1x256xf32>
    %89 = tpu.matmul %87, %88, %cst_154 {dimension_numbers = #tpu.dot_dimension_numbers<[1], [0], [0], [1], [0, 0, 1, 1], [], []>} : vector<1x256xbf16>, vector<256x256xbf16>, vector<1x256xf32> -> vector<1x256xf32>
    %c0_155 = arith.constant 0 : index
    %c0_156 = arith.constant 0 : index
    %90 = vector.load %arg12[%c0_155, %c0_156] : memref<1x256xf32, #tpu.memory_space<vmem>>, vector<1x256xf32>
    %91 = arith.addf %89, %90 : vector<1x256xf32>
    %cst_157 = arith.constant 0.000000e+00 : f32
    %92 = vector.broadcast %cst_157 : f32 to vector<1x256xf32>
    %93 = arith.maximumf %91, %92 : vector<1x256xf32>
    %94 = arith.truncf %5 : vector<1x128xf32> to vector<1x128xbf16>
    %c0_158 = arith.constant 0 : index
    %c0_159 = arith.constant 0 : index
    %95 = vector.load %arg13[%c0_158, %c0_159] : memref<128x32xbf16, #tpu.memory_space<vmem>>, vector<128x32xbf16>
    %cst_160 = arith.constant dense<0.000000e+00> : vector<1x32xf32>
    %96 = tpu.matmul %94, %95, %cst_160 {dimension_numbers = #tpu.dot_dimension_numbers<[1], [0], [0], [1], [0, 0, 1, 1], [], []>} : vector<1x128xbf16>, vector<128x32xbf16>, vector<1x32xf32> -> vector<1x32xf32>
    %97 = arith.truncf %93 : vector<1x256xf32> to vector<1x256xbf16>
    %c0_161 = arith.constant 0 : index
    %c0_162 = arith.constant 0 : index
    %98 = vector.load %arg14[%c0_161, %c0_162] : memref<256x32xbf16, #tpu.memory_space<vmem>>, vector<256x32xbf16>
    %cst_163 = arith.constant dense<0.000000e+00> : vector<1x32xf32>
    %99 = tpu.matmul %97, %98, %cst_163 {dimension_numbers = #tpu.dot_dimension_numbers<[1], [0], [0], [1], [0, 0, 1, 1], [], []>} : vector<1x256xbf16>, vector<256x32xbf16>, vector<1x32xf32> -> vector<1x32xf32>
    %100 = arith.addf %96, %99 : vector<1x32xf32>
    %c0_164 = arith.constant 0 : index
    %c0_165 = arith.constant 0 : index
    %101 = vector.load %arg15[%c0_164, %c0_165] : memref<1x32xf32, #tpu.memory_space<vmem>>, vector<1x32xf32>
    %102 = arith.addf %100, %101 : vector<1x32xf32>
    %cst_166 = arith.constant 0.000000e+00 : f32
    %103 = vector.broadcast %cst_166 : f32 to vector<1x32xf32>
    %104 = arith.maximumf %102, %103 : vector<1x32xf32>
    %105 = arith.truncf %104 : vector<1x32xf32> to vector<1x32xbf16>
    %c0_167 = arith.constant 0 : index
    %c0_168 = arith.constant 0 : index
    %106 = vector.load %arg16[%c0_167, %c0_168] : memref<32x128xbf16, #tpu.memory_space<vmem>>, vector<32x128xbf16>
    %cst_169 = arith.constant dense<0.000000e+00> : vector<1x128xf32>
    %107 = tpu.matmul %105, %106, %cst_169 {dimension_numbers = #tpu.dot_dimension_numbers<[1], [0], [0], [1], [0, 0, 1, 1], [], []>} : vector<1x32xbf16>, vector<32x128xbf16>, vector<1x128xf32> -> vector<1x128xf32>
    %c0_170 = arith.constant 0 : index
    %c0_171 = arith.constant 0 : index
    %108 = vector.load %arg17[%c0_170, %c0_171] : memref<1x128xf32, #tpu.memory_space<vmem>>, vector<1x128xf32>
    %109 = arith.addf %107, %108 : vector<1x128xf32>
    %110 = vector.shape_cast %109 : vector<1x128xf32> to vector<1x1x128xf32>
    %c0_172 = arith.constant 0 : index
    %c0_173 = arith.constant 0 : index
    %c0_174 = arith.constant 0 : index
    %111 = vector.load %arg19[%c0_172, %c0_173, %c0_174] : memref<1x1x128xf32, #tpu.memory_space<vmem>>, vector<1x1x128xf32>
    tpu.vector_store %arg19[%c0_172, %c0_173, %c0_174], %110 {strides = array<i32>} : memref<1x1x128xf32, #tpu.memory_space<vmem>>, vector<1x1x128xf32>,
    return
  }
  func.func @transform_0(%arg0: i32) -> (i32, i32, i32) {
    %c0_i32 = arith.constant 0 : i32
    %c0_i32_0 = arith.constant 0 : i32
    %c0_i32_1 = arith.constant 0 : i32
    return %arg0, %c0_i32, %c0_i32_0 : i32, i32, i32
  }
  func.func @transform_1(%arg0: i32) -> (i32, i32, i32) {
    %c0_i32 = arith.constant 0 : i32
    %c0_i32_0 = arith.constant 0 : i32
    %c0_i32_1 = arith.constant 0 : i32
    return %arg0, %c0_i32, %c0_i32_0 : i32, i32, i32
  }
  func.func @transform_2(%arg0: i32) -> (i32, i32) {
    %c0_i32 = arith.constant 0 : i32
    %c0_i32_0 = arith.constant 0 : i32
    %c0_i32_1 = arith.constant 0 : i32
    return %c0_i32, %c0_i32_0 : i32, i32
  }
  func.func @transform_3(%arg0: i32) -> (i32, i32) {
    %c0_i32 = arith.constant 0 : i32
    %c0_i32_0 = arith.constant 0 : i32
    %c0_i32_1 = arith.constant 0 : i32
    return %c0_i32, %c0_i32_0 : i32, i32
  }
  func.func @transform_4(%arg0: i32) -> (i32, i32) {
    %c0_i32 = arith.constant 0 : i32
    %c0_i32_0 = arith.constant 0 : i32
    %c0_i32_1 = arith.constant 0 : i32
    return %c0_i32, %c0_i32_0 : i32, i32
  }
  func.func @transform_5(%arg0: i32) -> (i32, i32) {
    %c0_i32 = arith.constant 0 : i32
    %c0_i32_0 = arith.constant 0 : i32
    %c0_i32_1 = arith.constant 0 : i32
    return %c0_i32, %c0_i32_0 : i32, i32
  }
  func.func @transform_6(%arg0: i32) -> (i32, i32) {
    %c0_i32 = arith.constant 0 : i32
    %c0_i32_0 = arith.constant 0 : i32
    %c0_i32_1 = arith.constant 0 : i32
    return %c0_i32, %c0_i32_0 : i32, i32
  }
  func.func @transform_7(%arg0: i32) -> (i32, i32) {
    %c0_i32 = arith.constant 0 : i32
    %c0_i32_0 = arith.constant 0 : i32
    %c0_i32_1 = arith.constant 0 : i32
    return %c0_i32, %c0_i32_0 : i32, i32
  }
  func.func @transform_8(%arg0: i32) -> (i32, i32) {
    %c0_i32 = arith.constant 0 : i32
    %c0_i32_0 = arith.constant 0 : i32
    %c0_i32_1 = arith.constant 0 : i32
    return %c0_i32, %c0_i32_0 : i32, i32
  }
  func.func @transform_9(%arg0: i32) -> (i32, i32) {
    %c0_i32 = arith.constant 0 : i32
    %c0_i32_0 = arith.constant 0 : i32
    %c0_i32_1 = arith.constant 0 : i32
    return %c0_i32, %c0_i32_0 : i32, i32
  }
  func.func @transform_10(%arg0: i32) -> (i32, i32) {
    %c0_i32 = arith.constant 0 : i32
    %c0_i32_0 = arith.constant 0 : i32
    %c0_i32_1 = arith.constant 0 : i32
    return %c0_i32, %c0_i32_0 : i32, i32
  }
  func.func @transform_11(%arg0: i32) -> (i32, i32) {
    %c0_i32 = arith.constant 0 : i32
    %c0_i32_0 = arith.constant 0 : i32
    %c0_i32_1 = arith.constant 0 : i32
    return %c0_i32, %c0_i32_0 : i32, i32
  }
  func.func @transform_12(%arg0: i32) -> (i32, i32) {
    %c0_i32 = arith.constant 0 : i32
    %c0_i32_0 = arith.constant 0 : i32
    %c0_i32_1 = arith.constant 0 : i32
    return %c0_i32, %c0_i32_0 : i32, i32
  }
  func.func @transform_13(%arg0: i32) -> (i32, i32) {
    %c0_i32 = arith.constant 0 : i32
    %c0_i32_0 = arith.constant 0 : i32
    %c0_i32_1 = arith.constant 0 : i32
    return %c0_i32, %c0_i32_0 : i32, i32
  }
  func.func @transform_14(%arg0: i32) -> (i32, i32) {
    %c0_i32 = arith.constant 0 : i32
    %c0_i32_0 = arith.constant 0 : i32
    %c0_i32_1 = arith.constant 0 : i32
    return %c0_i32, %c0_i32_0 : i32, i32
  }
  func.func @transform_15(%arg0: i32) -> (i32, i32) {
    %c0_i32 = arith.constant 0 : i32
    %c0_i32_0 = arith.constant 0 : i32
    %c0_i32_1 = arith.constant 0 : i32
    return %c0_i32, %c0_i32_0 : i32, i32
  }
  func.func @transform_16(%arg0: i32) -> (i32, i32) {
    %c0_i32 = arith.constant 0 : i32
    %c0_i32_0 = arith.constant 0 : i32
    %c0_i32_1 = arith.constant 0 : i32
    return %c0_i32, %c0_i32_0 : i32, i32
  }
  func.func @transform_17(%arg0: i32) -> (i32, i32, i32) {
    %c0_i32 = arith.constant 0 : i32
    %c0_i32_0 = arith.constant 0 : i32
    %c0_i32_1 = arith.constant 0 : i32
    return %arg0, %c0_i32, %c0_i32_0 : i32, i32, i32
  }
  func.func @transform_18(%arg0: i32) -> (i32, i32, i32) {
    %c0_i32 = arith.constant 0 : i32
    %c0_i32_0 = arith.constant 0 : i32
    %c0_i32_1 = arith.constant 0 : i32
    return %arg0, %c0_i32, %c0_i32_0 : i32, i32, i32
  }
}

</mosaic_0001>

<bundles_post_ra>
// kernel: stacked_model_forward.1
= control target key start
LH: loop header
LB: loop body
LE: loop exit
PB: predicated region body
PF: predicated region fallthrough
CT: control target
= control target key end

     0   :  { %s10274_s0 = inlined_call_operand.vmem [shape: bf16[2,256,27], index: 0, kind: input, shape index: {}]   ;;  %s10275_s1 = inlined_call_operand.vmem [shape: bf16[2,1,768], index: 1, kind: input, shape index: {}]   ;;  %s10276_s2 = inlined_call_operand.vmem [shape: bf16[768,128], index: 2, kind: input, shape index: {}]   ;;  %s10277_s3 = inlined_call_operand.vmem [shape: f32[1,128], index: 3, kind: input, shape index: {}]   ;;  %s10278_s4 = inlined_call_operand.vmem [shape: bf16[27,64], index: 4, kind: input, shape index: {}]   ;;  %s10279_s5 = inlined_call_operand.vmem [shape: f32[1,64], index: 5, kind: input, shape index: {}]   ;;  %s10280_s6 = inlined_call_operand.vmem [shape: bf16[576,128], index: 6, kind: input, shape index: {}]   ;;  %s10281_s7 = inlined_call_operand.vmem [shape: f32[1,128], index: 7, kind: input, shape index: {}]   ;;  %s10282_s8 = inlined_call_operand.vmem [shape: bf16[1152,256], index: 8, kind: input, shape index: {}]   ;;  %s10283_s9 = inlined_call_operand.vmem [shape: f32[1,256], index: 9, kind: input, shape index: {}]   ;;  %s10284_s10 = inlined_call_operand.vmem [shape: bf16[256,256], index: 10, kind: input, shape index: {}]   ;;  %s10285_s11 = inlined_call_operand.vmem [shape: f32[1,256], index: 11, kind: input, shape index: {}]   ;;  %s10286_s12 = inlined_call_operand.vmem [shape: bf16[128,32], index: 12, kind: input, shape index: {}]   ;;  %s10287_s13 = inlined_call_operand.vmem [shape: bf16[256,32], index: 13, kind: input, shape index: {}]   ;;  %s10288_s14 = inlined_call_operand.vmem [shape: f32[1,32], index: 14, kind: input, shape index: {}]   ;;  %s10289_s15 = inlined_call_operand.vmem [shape: bf16[32,128], index: 15, kind: input, shape index: {}]   ;;  %s10290_s16 = inlined_call_operand.vmem [shape: f32[1,128], index: 16, kind: input, shape index: {}]   ;;  %s10291_s17 = inlined_call_operand.vmem [shape: f32[2,1,128], index: 17, kind: output, shape index: {0}]   ;;  %s10292_s18 = inlined_call_operand.hbm [shape: f32[2,1,128], index: 18, kind: output, shape index: {1}]  }
   0x1   :  { %10312 = sst [smem:[#allocation21_spill]] %s10274_s0 }
   0x2   :  { %10313 = sst [smem:[#allocation22_spill]] %s10275_s1 }
   0x3   :  { %10314 = sst [smem:[#allocation23_spill]] %s10276_s2 }
   0x4   :  { %10315 = sst [smem:[#allocation24_spill]] %s10292_s18 }
   0x5   :  { %24 = vsyncpa [#allocation5], 0 }
   0x6   :  { %26 = vsyncpa [#allocation5 + $0x1], 0  ;;  %s8384_s27 = smov 0   ;;  %s8386_s28 = smov 0  }
   0x7   :  { %s8388_s29 = smov 0   ;;  %s8390_s30 = smov 0  }
   0x8 LB: > { %10316 = sst [smem:[#allocation7_spill]] %s8267_s27  ;;  %s8405_s0 = sadd.s32 4294967295, %s8279_s30   ;;  %s8279_s30 = sphi %s8390_s30, %s10361_s30   ;;  %s8275_s29 = sphi %s8388_s29, %s10363_s29   ;;  %s8271_s28 = sphi %s8386_s28, %s10365_s28   ;;  %s8267_s27 = sphi %s8384_s27, %s10364_s27  }
   0x9   : > { %10317 = sst [smem:[#allocation8_spill]] %s8275_s29  ;;  %s6793_s19 = sadd.s32 4294967294, %s8279_s30  }
   0xa   : > { %10318 = sst [smem:[#allocation9_spill]] %s8279_s30  ;;  %s8409_s1 = sadd.s32 1, %s8279_s30  }
   0xb   : > { %10319 = sst [smem:[#allocation10_spill]] %s8409_s1  ;;  %s432_s20 = sadd.s32 1, %s8275_s29 }
   0xc   : > { %s429_s21 = ssub.s32 %s8279_s30, %s8409_s1  ;;  %p442_p0 = scmp.ne.s32.totalorder %s8275_s29, %s8271_s28 }
   0xd   : > { %p430_p1 = scmp.eq.s32.totalorder %s429_s21, 0  ;;  %p443_p2 = scmp.eq.s32.totalorder %s8405_s0, 1 }
   0xe   : > { %p448_p3 = scmp.ne.s32.totalorder %s8271_s28, %s8267_s27  ;;  %p449_p4 = scmp.eq.s32.totalorder %s6793_s19, 1 }
   0xf   : > { %s8420_s22 = scalar_select %p430_p1, %s8275_s29, %s432_s20  }
  0x10   : > { %p8422_p5 = por %p443_p2, %p442_p0  ;;  %p8426_p6 = por %p449_p4, %p448_p3 }
  0x11   : > { %10320 = sst [smem:[#allocation11_spill]] %s8420_s22  ;;  %p6796_p7 = scmp.ge.s32.totalorder %s8279_s30, 1 }
  0x12   : > { %s10322_s23 = scalar_select %p8426_p6, 1, 0 }
  0x13   : > { %p527_p8 = scmp.lt.s32.totalorder %s8279_s30, 3 }
  0x14   : > { %10323 = sst [smem:[#allocation12_spill]] %s10322_s23 }
  0x15   : > { %p528_p9 = pnand %p6796_p7, %p527_p8 }
  0x17   : > { %531 = sbr.rel (%p528_p9) target bundleno = 1892 (0x764), region = 88 }
  0x1c   : > { %s10324_s26 = sld [smem:[#allocation23_spill]]  ;;  %p587_p10 = scmp.lt.s32.totalorder %s8405_s0, 1  ;;  %vm1344_vm0 = vcmask 1044480   ;;  %v703_v29 = vlaneseq  ;;  %vm1345_vm1 = vcmask 1045504   ;;  %v8281_v32 = vmov 65535   ;;  %v7784_v57 = vld [vmem:[%s10278_s4] sm:$0xff]  }
  0x1d   : > { %s10325_s20 = sld [smem:[#allocation22_spill]]  ;;  %v1346_v33 = vsel %vm1344_vm0, 4294967295, %v8281_v32  ;;  %v8282_v37 = vmov 1966171168   ;;  %v7781_v41 = vld [vmem:[%s10278_s4 + $0x8] sm:$0x3f]  }
  0x1e   : > { %s8500_s22 = scalar_select %p587_p10, %s8405_s0, 1  ;;  %v8536_v36 = vshrl.u32 %v703_v29, 7  ;;  %v701_v38 = vunpack.c.l.s4 %v8282_v37  ;;  %v1347_v40 = vsel %vm1345_vm1, %v1346_v33, 0  ;;  %vm1295_vm2 = vcmask 220160   ;;  %v2408_v32 = vld [vmem:[#allocation2 + $0x10] sm:$0x1] }
  0x1f   : > { %v1349_v44 = vand.u32 %v7781_v41, %v1347_v40  ;;  %s10327_s29 = sld [smem:[#allocation21_spill]]  ;;  %vm2396_vm3 = vcmask 516096   ;;  %vm2429_vm4 = vsmask.f32 7938  ;;  %vm2403_vm6 = vsmask.f32 256 }
  0x20   : > { %s7700_s19 = smul.u32 6, %s8500_s22  ;;  %10326 = vst [vmem:[#allocation13_spill] sm:$0xff] %v8536_v36  ;;  %s7325_s30 = sshll.u32 %s8500_s22, 7  ;;  %v702_v43 = vunpack.c.0.s8 %v701_v38  ;;  %vm8646_vm5 = vmand %vm2396_vm3, %vm2429_vm4  ;;  %v2411_v37 = vld [vmem:[#allocation2 + $0x18] sm:$0x1]  ;;  %vm1544_vm8 = vcmask 523264  }
  0x21   : > { %vm8654_vm7 = vmand %vm2396_vm3, %vm2403_vm6  ;;  %v2414_v41 = vld [vmem:[#allocation2 + $0x20] sm:$0x1]  ;;  %vm1945_vm9 = vcmask 517120   ;;  %vm2775_vm10 = vcmask 1042434   ;;  %vm2777_vm11 = vcmask 1043459   ;;  %vm2779_vm12 = vcmask 1044484  }
  0x22   : > { %v7747_v0 = vld [vmem:[%s10324_s26 + $0x78] sm:$0xff]   ;;  %v7751_v4 = vld [vmem:[%s10324_s26 + $0x70] sm:$0xff]   ;;  %v7755_v8 = vld [vmem:[%s10324_s26 + $0x68] sm:$0xff]   ;;  %v8546_v45 = vsub.s32 %v702_v43, %v8536_v36  ;;  %v2409_v33 = vsel %vm8654_vm7, 0, %v2408_v32  ;;  %v2412_v38 = vsel %vm8654_vm7, 0, %v2411_v37  ;;  %vm2781_vm13 = vcmask 1045509  }
  0x23   : > { %v7748_v1 = vld [vmem:[%s10324_s26 + $0xf8] sm:$0xff]   ;;  %7414 = vmatprep.subr.bf16.mxu0 %v7747_v0  ;;  %v7752_v5 = vld [vmem:[%s10324_s26 + $0xf0] sm:$0xff]   ;;  %v7756_v9 = vld [vmem:[%s10324_s26 + $0xe8] sm:$0xff]   ;;  %s595_s18 = scalar_lea.vmem %s10325_s20, %s7700_s19  ;;  %2410 = vst [vmem:[#allocation2 + $0x10] sm:$0x1] %v2409_v33  ;;  %vm2783_vm14 = vcmask 1046534  }
  0x24   : > { %v7749_v2 = vld [vmem:[%s10324_s26 + $0x38] sm:$0xff]   ;;  %7436 = vmatprep.subr.bf16.mxu1 %v7748_v1  ;;  %v7753_v6 = vld [vmem:[%s10324_s26 + $0x30] sm:$0xff]   ;;  %v7757_v10 = vld [vmem:[%s10324_s26 + $0x28] sm:$0xff]   ;;  %2413 = vst [vmem:[#allocation2 + $0x18] sm:$0x1] %v2412_v38  ;;  %vm2785_vm15 = vcmask 1047559  }
  0x25   : > { %v7750_v3 = vld [vmem:[%s10324_s26 + $0xb8] sm:$0xff]   ;;  %7415 = vmatpush3.bf16.msra.mxu0 %v7749_v2  ;;  %v7754_v7 = vld [vmem:[%s10324_s26 + $0xb0] sm:$0xff]   ;;  %v7758_v11 = vld [vmem:[%s10324_s26 + $0xa8] sm:$0xff]   ;;  %s8551_s1 = scalar_lea.vmem %s10327_s29, %s7325_s30  ;;  %vm2394_vm0 = vcmask 519168   ;;  %s585_s30 = sand.u32 1, %s8271_s28  }
  0x26   : > { %7437 = vmatpush3.bf16.msra.mxu1 %v7750_v3  ;;  %7416 = vmatprep.subr.bf16.mxu0 %v7751_v4  ;;  %v7759_v12 = vld [vmem:[%s10324_s26 + $0x60] sm:$0xff]   ;;  %v7763_v16 = vld [vmem:[%s10324_s26 + $0x58] sm:$0xff]   ;;  %v7767_v20 = vld [vmem:[%s10324_s26 + $0x50] sm:$0xff]   ;;  %s7322_s20 = sshll.u32 %s8405_s0, 4  ;;  %s586_s29 = scalar_lea.vmem [#allocation4], %s585_s30 }
  0x27   : > { %7438 = vmatprep.subr.bf16.mxu1 %v7752_v5  ;;  %v7760_v13 = vld [vmem:[%s10324_s26 + $0xe0] sm:$0xff]   ;;  %v7764_v17 = vld [vmem:[%s10324_s26 + $0xd8] sm:$0xff]   ;;  %v7768_v21 = vld [vmem:[%s10324_s26 + $0xd0] sm:$0xff]   ;;  %s6707_s27 = sshll.u32 %s586_s29, 4  ;;  %s10357_s19 = sld [smem:[#allocation24_spill]]  ;;  %s10235_s27 = int_to_ptr.vmem [resolvable:$true] %s6707_s27 }
  0x28   : > { %v7761_v14 = vld [vmem:[%s10324_s26 + $0x20] sm:$0xff]   ;;  %v7765_v18 = vld [vmem:[%s10324_s26 + $0x18] sm:$0xff]   ;;  %v7769_v22 = vld [vmem:[%s10324_s26 + $0x10] sm:$0xff]   ;;  %s6692_s25 = scalar_lea.sflag [#allocation5], %s585_s30  ;;  %s8219_s21 = scalar_lea.vmem %s10235_s27, 16 }
  0x29   : > { %7417 = vmatpush3.bf16.msra.mxu0 %v7753_v6  ;;  %v7762_v15 = vld [vmem:[%s10324_s26 + $0xa0] sm:$0xff]   ;;  %v7766_v19 = vld [vmem:[%s10324_s26 + $0x98] sm:$0xff]   ;;  %v7770_v23 = vld [vmem:[%s10324_s26 + $0x90] sm:$0xff]   ;;  %p8220_p11 = scmp.ne.s32.totalorder %s10235_s27, %s8219_s21  ;;  %s8288_s0 = smov [#allocation4]  }
  0x2a   : > { %7439 = vmatpush3.bf16.msra.mxu1 %v7754_v7  ;;  %7418 = vmatprep.subr.bf16.mxu0 %v7755_v8  ;;  %v7771_v24 = vld [vmem:[%s10324_s26 + $0x48] sm:$0xff]   ;;  %v7775_v28 = vld [vmem:[%s10324_s26 + $0x40] sm:$0xff]   ;;  %v7780_v39 = vld [vmem:[%s10324_s26 + $0x178] sm:$0xff]  }
  0x2b   : > { %7440 = vmatprep.subr.bf16.mxu1 %v7756_v9  ;;  %v7772_v25 = vld [vmem:[%s10324_s26 + $0xc8] sm:$0xff]   ;;  %v7776_v30 = vld [vmem:[%s10324_s26 + $0xc0] sm:$0xff]   ;;  %v7782_v52 = vld [vmem:[%s10324_s26 + $0x138] sm:$0xff]   ;;  %p8221_p12 = pnand %p8220_p11, %p8422_p5 }
  0x2c   : > { %v7773_v26 = vld [vmem:[%s10324_s26 + $0x8] sm:$0xff]   ;;  %v7777_v31 = vld [vmem:[%s10324_s26] sm:$0xff]   ;;  %v7783_v54 = vld [vmem:[%s10324_s26 + $0x170] sm:$0xff]  }
  0x2d   : > { %7419 = vmatpush3.bf16.msra.mxu0 %v7757_v10  ;;  %v7774_v27 = vld [vmem:[%s10324_s26 + $0x88] sm:$0xff]   ;;  %v7778_v34 = vld [vmem:[%s10324_s26 + $0x80] sm:$0xff]   ;;  %v7785_v59 = vld [vmem:[%s10324_s26 + $0x130] sm:$0xff]   ;;  %s10233_s24 = scalar_lea.hbm %s10357_s19, %s7322_s20  ;;  %p8222_p13 = pneg %p8221_p12 }
  0x2e   : > { %7441 = vmatpush3.bf16.msra.mxu1 %v7758_v11  ;;  %7420 = vmatprep.subr.bf16.mxu0 %v7759_v12  ;;  %v600_v35 = vld [vmem:[%s595_s18] sm:$0x3f]  ;;  %v7787_v60 = vld [vmem:[%s10324_s26 + $0x168] sm:$0xff]   ;;  %v7792_v0 = vld [vmem:[%s8551_s1 + $0x10] sm:$0xff]   ;;  %s598_s18 = scalar_lea.vmem %s10291_s17, %s8500_s22  ;;  %s8284_s22 = smov 64  }
  0x2f   : > { %7442 = vmatprep.subr.bf16.mxu1 %v7760_v13  ;;  %v699_v42 = vcombine.high %v600_v35, %v600_v35  ;;  %v706_v46 = vrot.slane %v600_v35, %v8546_v45  ;;  %v7786_v56 = vld [vmem:[%s8551_s1] sm:$0xff]   ;;  %v7788_v61 = vld [vmem:[%s8551_s1 + $0x8] sm:$0xff]   ;;  %v7793_v2 = vld [vmem:[%s10324_s26 + $0x158] sm:$0xff]  }
  0x30   : > { %v7789_v62 = vld [vmem:[%s10324_s26 + $0x128] sm:$0xff]   ;;  %v7790_v63 = vld [vmem:[%s10324_s26 + $0x160] sm:$0xff]   ;;  %v7794_v3 = vld [vmem:[%s8551_s1 + $0x18] sm:$0xff]  }
  0x31   : > { %7421 = vmatpush3.bf16.msra.mxu0 %v7761_v14  ;;  %v8555_v47 = vrot.slane %v699_v42, %v8546_v45  ;;  %v714_v48 = vcombine.high %v706_v46, %v706_v46  ;;  %v722_v49 = vrot.slane %v706_v46, %v8546_v45  ;;  %v7791_v1 = vld [vmem:[%s10324_s26 + $0x120] sm:$0xff]   ;;  %v7795_v4 = vld [vmem:[%s10324_s26 + $0x118] sm:$0xff]   ;;  %v7796_v5 = vld [vmem:[%s10324_s26 + $0x150] sm:$0xff]   ;;  %v2415_v42 = vsel %vm8654_vm7, 0, %v2414_v41 }
  0x32   : > { %7443 = vmatpush3.bf16.msra.mxu1 %v7762_v15  ;;  %7422 = vmatprep.subr.bf16.mxu0 %v7763_v16  ;;  %v7798_v6 = vld [vmem:[%s8551_s1 + $0x20] sm:$0xff]   ;;  %v7797_v7 = vld [vmem:[%s10324_s26 + $0x110] sm:$0xff]   ;;  %v7799_v8 = vld [vmem:[%s10324_s26 + $0x148] sm:$0xff]   ;;  %2416 = vst [vmem:[#allocation2 + $0x20] sm:$0x1] %v2415_v42 }
  0x33   : > { %7444 = vmatprep.subr.bf16.mxu1 %v7764_v17  ;;  %v715_v50 = vcombine.high %v8555_v47, %v8555_v47  ;;  %v736_v51 = vrot.slane %v714_v48, %v8546_v45  ;;  %v744_v53 = vcombine.high %v722_v49, %v722_v49  ;;  %v7801_v9 = vld [vmem:[%s10324_s26 + $0x108] sm:$0xff]   ;;  %v7802_v11 = vld [vmem:[%s10324_s26 + $0x140] sm:$0xff]   ;;  %v7804_v12 = vld [vmem:[%s8551_s1 + $0x30] sm:$0xff]   ;;  %v729_v14 = vrot.slane %v8555_v47, %v8546_v45 }
  0x34   : > { %v7800_v10 = vld [vmem:[%s8551_s1 + $0x28] sm:$0xff]   ;;  %v7803_v13 = vld [vmem:[%s10324_s26 + $0x100] sm:$0xff]   ;;  %v7805_v15 = vld [vmem:[%s8551_s1 + $0x38] sm:$0xff]  }
  0x35   : > { %7423 = vmatpush3.bf16.msra.mxu0 %v7765_v18  ;;  %1072 = vmatprep.mubr.bf16.mxu0 %v736_v51  ;;  %v745_v55 = vcombine.high %v736_v51, %v736_v51  ;;  %v743_v58 = vrot.slane %v715_v50, %v8546_v45  ;;  %v7806_v16 = vld [vmem:[%s8551_s1 + $0x40] sm:$0xff]   ;;  %v7807_v17 = vld [vmem:[%s8551_s1 + $0x48] sm:$0xff]   ;;  %v7808_v18 = vld [vmem:[%s8551_s1 + $0x50] sm:$0xff]  }
  0x36   : > { %7445 = vmatpush3.bf16.msra.mxu1 %v7766_v19  ;;  %7424 = vmatprep.subr.bf16.mxu0 %v7767_v20  ;;  %v7809_v19 = vld [vmem:[%s8551_s1 + $0x58] sm:$0xff]   ;;  %v7810_v20 = vld [vmem:[%s8551_s1 + $0x60] sm:$0xff]   ;;  %vm8748_vm1 = vmand %vm2394_vm0, %vm2429_vm4 }
  0x37   : > { %7446 = vmatprep.subr.bf16.mxu1 %v7768_v21  ;;  %1112 = vmatprep.mubr.bf16.mxu1 %v745_v55  ;;  %v7811_v21 = vld [vmem:[%s8551_s1 + $0x68] sm:$0xff]   ;;  %v697_v45 = vld [vmem:[%s10277_s3] sm:$0x1]  ;;  %v8283_v55 = vmov 1983009808  }
  0x39   : > { %7425 = vmatpush3.bf16.msra.mxu0 %v7769_v22  ;;  %v7812_v22 = vld [vmem:[%s8551_s1 + $0x70] sm:$0xff]  }
  0x3a   : > { %7447 = vmatpush3.bf16.msra.mxu1 %v7770_v23  ;;  %7426 = vmatprep.subr.bf16.mxu0 %v7771_v24  ;;  %v7813_v23 = vld [vmem:[%s8551_s1 + $0x78] sm:$0xff]  }
  0x3b   : > { %7448 = vmatprep.subr.bf16.mxu1 %v7772_v25  ;;  %v2431_v25 = vld [vmem:[#allocation2 + $0xc] sm:$0x1] }
  0x3d   : > { %7427 = vmatpush3.bf16.msra.mxu0 %v7773_v26  ;;  %v2432_v26 = vsel %vm8646_vm5, 0, %v2431_v25 }
  0x3e   : > { %7449 = vmatpush3.bf16.msra.mxu1 %v7774_v27  ;;  %7428 = vmatprep.subr.bf16.mxu0 %v7775_v28  ;;  %2433 = vst [vmem:[#allocation2 + $0xc] sm:$0x1] %v2432_v26  ;;  %v2405_v28 = vld [vmem:[#allocation2 + $0x8] sm:$0x1]  ;;  %v9185_v27 = vld [vmem:[%s10280_s6 + $0x118] sm:$0xff]  }
  0x3f   : > { %7450 = vmatprep.subr.bf16.mxu1 %v7776_v30  ;;  %v2406_v29 = vsel %vm8654_vm7, 0, %v2405_v28  ;;  %v2434_v30 = vld [vmem:[#allocation2 + $0x14] sm:$0x1] }
  0x40   : > { %2407 = vst [vmem:[#allocation2 + $0x8] sm:$0x1] %v2406_v29 }
  0x41   : > { %7429 = vmatpush3.bf16.msra.mxu0 %v7777_v31  ;;  %v2435_v31 = vsel %vm8646_vm5, 0, %v2434_v30 }
  0x42   : > { %7451 = vmatpush3.bf16.msra.mxu1 %v7778_v34  ;;  %7458 = vmatprep.subr.bf16.mxu0 %v7780_v39  ;;  %2436 = vst [vmem:[#allocation2 + $0x14] sm:$0x1] %v2435_v31  ;;  %v2437_v34 = vld [vmem:[#allocation2 + $0x1c] sm:$0x1]  ;;  %v2440_v39 = vld [vmem:[#allocation2 + $0x24] sm:$0x1] }
  0x43   : > { %7620 = vmatprep.subr.bf16.mxu1 %v1349_v44  ;;  %v2438_v35 = vsel %vm8646_vm5, 0, %v2437_v34  ;;  %v2441_v40 = vsel %vm8646_vm5, 0, %v2440_v39 }
  0x44   : > { %1073 = vmatmul.mubr.bf16.vlgmr.msra.gmra.mxu0 %v722_v49  ;;  %2439 = vst [vmem:[#allocation2 + $0x1c] sm:$0x1] %v2438_v35  ;;  %2442 = vst [vmem:[#allocation2 + $0x24] sm:$0x1] %v2441_v40 }
  0x45   : > { %7459 = vmatpush3.bf16.msra.mxu0 %v7782_v52  ;;  %1113 = vmatmul.mubr.bf16.vlgmr.msra.gmra.mxu1 %v744_v53 }
  0x46   : > { %7460 = vmatprep.subr.bf16.mxu0 %v7783_v54  ;;  %7621 = vmatpush3.bf16.msra.mxu1 %v1349_v44 }
  0x47   : > { %7624 = vmatprep.mubr.msk.bf16.mxu1 %vm1295_vm2, %v7786_v56  ;;  %7622 = vmatprep.subr.bf16.mxu1 %v7784_v57  ;;  %v1611_v56 = vunpack.c.l.s4 %v8283_v55 }
  0x48   : > { %1152 = vmatprep.mubr.bf16.mxu0 %v743_v58  ;;  %v8680_v58 = vld [vmem:[%s10279_s5] ss:$0 sm:$0xff] }
  0x49   : > { %7461 = vmatpush3.bf16.msra.mxu0 %v7785_v59 }
  0x4a   : > { %7462 = vmatprep.subr.bf16.mxu0 %v7787_v60  ;;  %7623 = vmatpush3.bf16.msra.mxu1 %v7784_v57 }
  0x4d   : > { %7463 = vmatpush3.bf16.msra.mxu0 %v7789_v62  ;;  %7625 = vmatmul.mubr.msk.bf16.vlgmr.msra.gmra.mxu1 %vm1295_vm2, %v7788_v61  ;;  %v1612_v61 = vunpack.c.0.s8 %v1611_v56 }
  0x4e   : > { %7464 = vmatprep.subr.bf16.mxu0 %v7790_v63  ;;  %7628 = vmatprep.mubr.msk.bf16.mxu1 %vm1295_vm2, %v7792_v0 }
  0x51   : > { %7465 = vmatpush3.bf16.msra.mxu0 %v7791_v1  ;;  %v2443_v1 = vld [vmem:[#allocation2 + $0x2c] sm:$0x1] }
  0x52   : > { %7466 = vmatprep.subr.bf16.mxu0 %v7793_v2 }
  0x55   : > { %7467 = vmatpush3.bf16.msra.mxu0 %v7795_v4  ;;  %7629 = vmatmul.mubr.msk.bf16.gmra.mxu1 %vm1295_vm2, %v7794_v3  ;;  %v2444_v3 = vsel %vm8646_vm5, 0, %v2443_v1 }
  0x56   : > { %7468 = vmatprep.subr.bf16.mxu0 %v7796_v5  ;;  %7632 = vmatprep.mubr.msk.bf16.mxu1 %vm1295_vm2, %v7798_v6  ;;  %2445 = vst [vmem:[#allocation2 + $0x2c] sm:$0x1] %v2444_v3  ;;  %v8688_v6 = vsub.s32 %v1612_v61, %v8536_v36 }
  0x58   : > { %10332 = vst [vmem:[#allocation14_spill] sm:$0xff] %v8688_v6 }
  0x59   : > { %7469 = vmatpush3.bf16.msra.mxu0 %v7797_v7 }
  0x5a   : > { %7470 = vmatprep.subr.bf16.mxu0 %v7799_v8 }
  0x5d   : > { %7471 = vmatpush3.bf16.msra.mxu0 %v7801_v9  ;;  %7633 = vmatmul.mubr.msk.bf16.gmra.mxu1 %vm1295_vm2, %v7800_v10 }
  0x5e   : > { %7472 = vmatprep.subr.bf16.mxu0 %v7802_v11  ;;  %7636 = vmatprep.mubr.msk.bf16.mxu1 %vm1295_vm2, %v7804_v12  ;;  %v2417_v12 = vld [vmem:[#allocation2 + $0x28] sm:$0x1] }
  0x61   : > { %7473 = vmatpush3.bf16.msra.mxu0 %v7803_v13 }
  0x64   : > { %1153 = vmatmul.mubr.bf16.vlgmr.msra.gmra.mxu0 %v729_v14 }
  0x65   : > { %7637 = vmatmul.mubr.msk.bf16.gmra.mxu1 %vm1295_vm2, %v7805_v15  ;;  %v2418_v15 = vsel %vm8654_vm7, 0, %v2417_v12 }
  0x66   : > { %7640 = vmatprep.mubr.msk.bf16.mxu1 %vm1295_vm2, %v7806_v16  ;;  %2419 = vst [vmem:[#allocation2 + $0x28] sm:$0x1] %v2418_v15 }
  0x6d   : > { %7641 = vmatmul.mubr.msk.bf16.gmra.mxu1 %vm1295_vm2, %v7807_v17 }
  0x6e   : > { %7644 = vmatprep.mubr.msk.bf16.mxu1 %vm1295_vm2, %v7808_v18 }
  0x75   : > { %7645 = vmatmul.mubr.msk.bf16.gmra.mxu1 %vm1295_vm2, %v7809_v19 }
  0x76   : > { %7648 = vmatprep.mubr.msk.bf16.mxu1 %vm1295_vm2, %v7810_v20 }
  0x7d   : > { %7649 = vmatmul.mubr.msk.bf16.gmra.mxu1 %vm1295_vm2, %v7811_v21 }
  0x7e   : > { %7652 = vmatprep.mubr.msk.bf16.mxu1 %vm1295_vm2, %v7812_v22 }
  0x85   : > { %7653 = vmatmul.mubr.msk.bf16.gmra.mxu1 %vm1295_vm2, %v7813_v23  ;;  %vm4363_vm2 = vcmask 1040384  }
  0x86   : > { %vm9404_vm4 = vmand %vm4363_vm2, %vm2403_vm6  ;;  %vm4246_vm6 = vcmask 1041408  }
 0x104   : > { %v7430_v43 = vpop.f32.mrf.mxu0 }
 0x105   : > { %v7452_v44 = vpop.f32.mrf.mxu1 }
 0x106   : > { %v7431_v46 = vpop.f32.mrf.mxu0 }
 0x107   : > { %v7432_v47 = vadd.f32 %v7431_v46, %v7430_v43  ;;  %v7453_v48 = vpop.f32.mrf.mxu1 }
 0x108   : > { %v7433_v49 = vpop.f32.mrf.mxu0  ;;  %v7454_v51 = vadd.f32 %v7453_v48, %v7452_v44 }
 0x109   : > { %v1075_v50 = vadd.f32 %v7432_v47, %v697_v45  ;;  %v7455_v52 = vpop.f32.mrf.mxu1 }
 0x10a   : > { %v7434_v53 = vpop.f32.mrf.mxu0 }
 0x10b   : > { %v8675_v54 = vadd.f32 %v7454_v51, %v1075_v50  ;;  %v7456_v57 = vpop.f32.mrf.mxu1 }
 0x10d   : > { %v7626_v59 = vpop.f32.mrf.mxu1 }
 0x10e   : > { %v1394_v60 = vadd.f32 %v7626_v59, %v8680_v58 }
 0x10f   : > { %v1385_v62 = vpop.f32.mrf.mxu1 }
 0x110   : > { %v1514_v63 = vmax.f32 %v1394_v60, 0.0  ;;  %v1386_v0 = vadd.f32 %v8680_v58, %v1385_v62 }
 0x111   : > { %v7627_v2 = vpop.f32.mrf.mxu1 }
 0x112   : > { %v1512_v4 = vmax.f32 %v1386_v0, 0.0  ;;  %v1397_v5 = vadd.f32 %v7627_v2, %v8680_v58  ;;  %v1546_v8 = vsel %vm1544_vm8, %v1514_v63, -inf }
 0x113   : > { %v1388_v7 = vpop.f32.mrf.mxu1 }
 0x114   : > { %v1545_v9 = vsel %vm1544_vm8, %v1512_v4, -inf  ;;  %v1515_v10 = vmax.f32 %v1397_v5, 0.0  ;;  %v1389_v11 = vadd.f32 %v8680_v58, %v1388_v7 }
 0x115   : > { %v1547_v13 = vmax.f32 %v1545_v9, %v1546_v8  ;;  %v7630_v14 = vpop.f32.mrf.mxu1 }
 0x116   : > { %v1513_v16 = vmax.f32 %v1389_v11, 0.0  ;;  %v1410_v17 = vadd.f32 %v7630_v14, %v8680_v58  ;;  %v1549_v21 = vsel %vm1544_vm8, %v1515_v10, -inf }
 0x117   : > { %v1609_v18 = vcombine.high %v1547_v13, %v1547_v13  ;;  %v1616_v19 = vrot.slane %v1547_v13, %v8688_v6  ;;  %v1401_v20 = vpop.f32.mrf.mxu1 }
 0x118   : > { %v1548_v22 = vsel %vm1544_vm8, %v1513_v16, -inf  ;;  %v1518_v23 = vmax.f32 %v1410_v17, 0.0  ;;  %v1402_v25 = vadd.f32 %v8680_v58, %v1401_v20 }
 0x119   : > { %v1623_v26 = vrot.slane %v1609_v18, %v8688_v6  ;;  %v1624_v28 = vcombine.high %v1616_v19, %v1616_v19  ;;  %v1946_v29 = vsel %vm1945_vm9, %v1616_v19, -inf  ;;  %v1550_v30 = vmax.f32 %v1548_v22, %v1549_v21  ;;  %v7631_v31 = vpop.f32.mrf.mxu1 }
 0x11a   : > { %v1947_v32 = vrot.slane %v1946_v29, 4  ;;  %v8703_v33 = vsel %vm1544_vm8, %v1518_v23, -inf  ;;  %v1516_v34 = vmax.f32 %v1402_v25, 0.0  ;;  %v8706_v35 = vadd.f32 %v7631_v31, %v8680_v58 }
 0x11b   : > { %v1625_v37 = vcombine.high %v1623_v26, %v1623_v26  ;;  %v1953_v38 = vsel %vm1945_vm9, %v1624_v28, -inf  ;;  %v1960_v39 = vsel %vm1945_vm9, %v1623_v26, -inf  ;;  %v1626_v40 = vcombine.high %v1550_v30, %v1550_v30 }
 0x11c   : > { %v1948_v41 = vmax.f32 %v1946_v29, %v1947_v32  ;;  %v1954_v42 = vrot.slane %v1953_v38, 4  ;;  %v1961_v43 = vrot.slane %v1960_v39, 4  ;;  %v1633_v44 = vrot.slane %v1550_v30, %v8688_v6  ;;  %v8725_v32 = vpop.f32.mrf.mxu1 }
 0x11d   : > { %v1967_v45 = vsel %vm1945_vm9, %v1625_v37, -inf  ;;  %v1640_v46 = vrot.slane %v1626_v40, %v8688_v6  ;;  %v8714_v47 = vsel %vm1544_vm8, %v1516_v34, -inf  ;;  %v1519_v48 = vmax.f32 %v8706_v35, 0.0 }
 0x11e   : > { %v1949_v49 = vrot.slane %v1948_v41, 2  ;;  %v1955_v50 = vmax.f32 %v1953_v38, %v1954_v42  ;;  %v1962_v51 = vmax.f32 %v1960_v39, %v1961_v43  ;;  %v1968_v52 = vrot.slane %v1967_v45, 4 }
 0x11f   : > { %v1641_v53 = vcombine.high %v1633_v44, %v1633_v44  ;;  %v1642_v55 = vcombine.high %v1640_v46, %v1640_v46  ;;  %v1974_v56 = vsel %vm1945_vm9, %v1633_v44, -inf  ;;  %v1988_v57 = vsel %vm1945_vm9, %v1640_v46, -inf }
 0x120   : > { %v1950_v59 = vmax.f32 %v1948_v41, %v1949_v49  ;;  %v1956_v60 = vrot.slane %v1955_v50, 2  ;;  %v1963_v61 = vrot.slane %v1962_v51, 2  ;;  %v1969_v62 = vmax.f32 %v1967_v45, %v1968_v52 }
 0x121   : > { %v1975_v63 = vrot.slane %v1974_v56, 4  ;;  %v1981_v0 = vsel %vm1945_vm9, %v1641_v53, -inf  ;;  %v1989_v1 = vrot.slane %v1988_v57, 4  ;;  %v1995_v2 = vsel %vm1945_vm9, %v1642_v55, -inf }
 0x122   : > { %v1951_v3 = vrot.slane %v1950_v59, 1  ;;  %v1957_v4 = vmax.f32 %v1955_v50, %v1956_v60  ;;  %v1964_v5 = vmax.f32 %v1962_v51, %v1963_v61  ;;  %v1970_v7 = vrot.slane %v1969_v62, 2 }
 0x123   : > { %v1976_v8 = vmax.f32 %v1974_v56, %v1975_v63  ;;  %v1982_v9 = vrot.slane %v1981_v0, 4  ;;  %v1990_v10 = vmax.f32 %v1988_v57, %v1989_v1  ;;  %v1996_v11 = vrot.slane %v1995_v2, 4  ;;  %v7634_v57 = vpop.f32.mrf.mxu1 }
 0x124   : > { %v8721_v12 = vpop.f32.mrf.mxu0  ;;  %v1952_v13 = vmax.f32 %v1950_v59, %v1951_v3  ;;  %v1958_v14 = vrot.slane %v1957_v4, 1  ;;  %v1965_v15 = vrot.slane %v1964_v5, 1  ;;  %v1971_v16 = vmax.f32 %v1969_v62, %v1970_v7 }
 0x125   : > { %v1977_v17 = vrot.slane %v1976_v8, 2  ;;  %v1983_v18 = vmax.f32 %v1981_v0, %v1982_v9  ;;  %v1991_v19 = vrot.slane %v1990_v10, 2  ;;  %v1997_v20 = vmax.f32 %v1995_v2, %v1996_v11  ;;  %v1417_v11 = vpop.f32.mrf.mxu1 }
 0x126   : > { %v8723_v21 = vpop.f32.mrf.mxu0  ;;  %v1959_v22 = vmax.f32 %v1957_v4, %v1958_v14  ;;  %v1966_v23 = vmax.f32 %v1964_v5, %v1965_v15  ;;  %v1972_v25 = vrot.slane %v1971_v16, 1  ;;  %v7326_v26 = vpack.c.bf16 %v1952_v13, %v1952_v13 }
 0x127   : > { %v1978_v28 = vmax.f32 %v1976_v8, %v1977_v17  ;;  %v1984_v29 = vrot.slane %v1983_v18, 2  ;;  %v1992_v30 = vmax.f32 %v1990_v10, %v1991_v19  ;;  %v1998_v31 = vrot.slane %v1997_v20, 2 }
 0x128   : > { %v7477_v34 = vpop.f32.mrf.mxu0  ;;  %v1973_v37 = vmax.f32 %v1971_v16, %v1972_v25  ;;  %v7327_v38 = vpack.c.bf16 %v1959_v22, %v1959_v22  ;;  %v7328_v39 = vpack.c.bf16 %v1966_v23, %v1966_v23  ;;  %v2711_v40 = vunpack.c.l.b16 %v7326_v26 }
 0x129   : > { %v1979_v41 = vrot.slane %v1978_v28, 1  ;;  %v1985_v42 = vmax.f32 %v1983_v18, %v1984_v29  ;;  %v1993_v43 = vrot.slane %v1992_v30, 1  ;;  %v1999_v44 = vmax.f32 %v1997_v20, %v1998_v31  ;;  %v7635_v34 = vpop.f32.mrf.mxu1 }
 0x12a   : > { %v7478_v45 = vpop.f32.mrf.mxu0  ;;  %v7329_v46 = vpack.c.bf16 %v1973_v37, %v1973_v37  ;;  %v2712_v49 = vunpack.c.l.b16 %v7327_v38  ;;  %v2713_v50 = vunpack.c.l.b16 %v7328_v39  ;;  %v1553_v51 = vmax.f32 %v8714_v47, %v8703_v33  ;;  %v2866_v47 = vld [vmem:[#allocation2 + $0xc] sm:$0x1]  ;;  %v2863_v39 = vld [vmem:[#allocation2 + $0x8] sm:$0xf] }
 0x12b   : > { %v1980_v52 = vmax.f32 %v1978_v28, %v1979_v41  ;;  %v1986_v53 = vrot.slane %v1985_v42, 1  ;;  %v1994_v55 = vmax.f32 %v1992_v30, %v1993_v43  ;;  %v2000_v56 = vrot.slane %v1999_v44, 1 }
 0x12c   : > { %v2714_v59 = vunpack.c.l.b16 %v7329_v46  ;;  %v2776_v60 = vsel %vm2775_vm10, %v2712_v49, %v2711_v40  ;;  %v1643_v61 = vcombine.high %v1553_v51, %v1553_v51  ;;  %v1650_v62 = vrot.slane %v1553_v51, %v8688_v6 }
 0x12d   : > { %v2778_v63 = vsel %vm2777_vm11, %v2713_v50, %v2776_v60  ;;  %v1987_v0 = vmax.f32 %v1985_v42, %v1986_v53  ;;  %v2001_v1 = vmax.f32 %v1999_v44, %v2000_v56  ;;  %v7330_v2 = vpack.c.bf16 %v1980_v52, %v1980_v52  ;;  %v1420_v56 = vpop.f32.mrf.mxu1 }
 0x12e   : > { %v7332_v3 = vpack.c.bf16 %v1994_v55, %v1994_v55  ;;  %v2780_v33 = vsel %vm2779_vm12, %v2714_v59, %v2778_v63  ;;  %v1657_v4 = vrot.slane %v1643_v61, %v8688_v6  ;;  %v1658_v5 = vcombine.high %v1650_v62, %v1650_v62 }
 0x12f   : > { %v7331_v7 = vpack.c.bf16 %v1987_v0, %v1987_v0  ;;  %v2715_v8 = vunpack.c.l.b16 %v7330_v2  ;;  %v7390_v9 = vpack.c.bf16 %v2001_v1, %v2001_v1  ;;  %v2002_v10 = vsel %vm1945_vm9, %v1650_v62, -inf }
 0x130   : > { %v2717_v13 = vunpack.c.l.b16 %v7332_v3  ;;  %v1659_v14 = vcombine.high %v1657_v4, %v1657_v4  ;;  %v2003_v15 = vrot.slane %v2002_v10, 4  ;;  %v2009_v16 = vsel %vm1945_vm9, %v1658_v5, -inf }
 0x131   : > { %v2716_v17 = vunpack.c.l.b16 %v7331_v7  ;;  %v2782_v18 = vsel %vm2781_vm13, %v2715_v8, %v2780_v33  ;;  %v2867_v19 = vsel %vm8654_vm7, %v7390_v9, %v2866_v47  ;;  %v2010_v20 = vrot.slane %v2009_v16, 4 }
 0x132   : > { %2868 = vst [vmem:[#allocation2 + $0xc] sm:$0x1] %v2867_v19  ;;  %v2004_v22 = vmax.f32 %v2002_v10, %v2003_v15  ;;  %v2016_v23 = vsel %vm1945_vm9, %v1657_v4, -inf  ;;  %v2023_v25 = vsel %vm1945_vm9, %v1659_v14, -inf  ;;  %v1555_v26 = vsel %vm1544_vm8, %v1519_v48, -inf }
 0x133   : > { %v2784_v28 = vsel %vm2783_vm14, %v2716_v17, %v2782_v18  ;;  %v2011_v29 = vmax.f32 %v2009_v16, %v2010_v20  ;;  %v2017_v30 = vrot.slane %v2016_v23, 4  ;;  %v2024_v31 = vrot.slane %v2023_v25, 4 }
 0x134   : > { %v2786_v37 = vsel %vm2785_vm15, %v2717_v13, %v2784_v28  ;;  %v2005_v40 = vrot.slane %v2004_v22, 2  ;;  %v1405_v35 = vadd.f32 %v8680_v58, %v8725_v32  ;;  %v1426_v48 = vadd.f32 %v7634_v57, %v8680_v58 }
 0x135   : > { %v2829_v41 = vpack.c.b16 %v2786_v37, %v2786_v37  ;;  %v2012_v42 = vrot.slane %v2011_v29, 2  ;;  %v2018_v43 = vmax.f32 %v2016_v23, %v2017_v30  ;;  %v2025_v44 = vmax.f32 %v2023_v25, %v2024_v31 }
 0x136   : > { %v2006_v45 = vmax.f32 %v2004_v22, %v2005_v40  ;;  %v1517_v46 = vmax.f32 %v1405_v35, 0.0  ;;  %v1522_v49 = vmax.f32 %v1426_v48, 0.0  ;;  %v1418_v50 = vadd.f32 %v8680_v58, %v1417_v11 }
 0x137   : > { %v2864_v51 = vsel %vm8748_vm1, %v2829_v41, %v2863_v39  ;;  %v2013_v52 = vmax.f32 %v2011_v29, %v2012_v42  ;;  %v2019_v53 = vrot.slane %v2018_v43, 2  ;;  %v2026_v55 = vrot.slane %v2025_v44, 2 }
 0x138   : > { %2865 = vst [vmem:[#allocation2 + $0x8] sm:$0xf] %v2864_v51  ;;  %v2007_v32 = vrot.slane %v2006_v45, 1  ;;  %v1554_v57 = vsel %vm1544_vm8, %v1517_v46, -inf  ;;  %v1558_v59 = vsel %vm1544_vm8, %v1522_v49, -inf  ;;  %v1520_v60 = vmax.f32 %v1418_v50, 0.0 }
 0x139   : > { %v2014_v61 = vrot.slane %v2013_v52, 1  ;;  %v2020_v62 = vmax.f32 %v2018_v43, %v2019_v53  ;;  %v2027_v63 = vmax.f32 %v2025_v44, %v2026_v55  ;;  %v1556_v0 = vmax.f32 %v1554_v57, %v1555_v26 }
 0x13a   : > { %v2008_v1 = vmax.f32 %v2006_v45, %v2007_v32  ;;  %v1557_v2 = vsel %vm1544_vm8, %v1520_v60, -inf  ;;  %v8762_v3 = vadd.f32 %v7635_v34, %v8680_v58  ;;  %v8765_v33 = vadd.f32 %v8680_v58, %v1420_v56 }
 0x13b   : > { %v2015_v47 = vmax.f32 %v2013_v52, %v2014_v61  ;;  %v2021_v4 = vrot.slane %v2020_v62, 1  ;;  %v2028_v5 = vrot.slane %v2027_v63, 1  ;;  %v1660_v7 = vcombine.high %v1556_v0, %v1556_v0 }
 0x13c   : > { %v7334_v8 = vpack.c.bf16 %v2008_v1, %v2008_v1  ;;  %v1667_v9 = vrot.slane %v1556_v0, %v8688_v6  ;;  %v1559_v10 = vmax.f32 %v1557_v2, %v1558_v59  ;;  %v1523_v11 = vmax.f32 %v8762_v3, 0.0 }
 0x13d   : > { %v2022_v13 = vmax.f32 %v2020_v62, %v2021_v4  ;;  %v2029_v14 = vmax.f32 %v2027_v63, %v2028_v5  ;;  %v7335_v15 = vpack.c.bf16 %v2015_v47, %v2015_v47  ;;  %v1674_v16 = vrot.slane %v1660_v7, %v8688_v6 }
 0x13e   : > { %v2719_v17 = vunpack.c.l.b16 %v7334_v8  ;;  %v1675_v18 = vcombine.high %v1667_v9, %v1667_v9  ;;  %v2030_v19 = vsel %vm1945_vm9, %v1667_v9, -inf  ;;  %v1677_v20 = vcombine.high %v1559_v10, %v1559_v10 }
 0x13f   : > { %v7336_v22 = vpack.c.bf16 %v2022_v13, %v2022_v13  ;;  %v7337_v23 = vpack.c.bf16 %v2029_v14, %v2029_v14  ;;  %v2720_v25 = vunpack.c.l.b16 %v7335_v15  ;;  %v1676_v26 = vcombine.high %v1674_v16, %v1674_v16 }
 0x140   : > { %v2031_v28 = vrot.slane %v2030_v19, 4  ;;  %v2037_v29 = vsel %vm1945_vm9, %v1675_v18, -inf  ;;  %v2044_v30 = vsel %vm1945_vm9, %v1674_v16, -inf  ;;  %v1684_v31 = vrot.slane %v1559_v10, %v8688_v6 }
 0x141   : > { %v2721_v34 = vunpack.c.l.b16 %v7336_v22  ;;  %v2722_v37 = vunpack.c.l.b16 %v7337_v23  ;;  %v2787_v39 = vsel %vm2775_vm10, %v2720_v25, %v2719_v17  ;;  %v2038_v40 = vrot.slane %v2037_v29, 4  ;;  %v7638_v17 = vpop.f32.mrf.mxu1 }
 0x142   : > { %v2032_v35 = vmax.f32 %v2030_v19, %v2031_v28  ;;  %v2045_v48 = vrot.slane %v2044_v30, 4  ;;  %v2051_v41 = vsel %vm1945_vm9, %v1676_v26, -inf  ;;  %v1691_v42 = vrot.slane %v1677_v20, %v8688_v6 }
 0x143   : > { %v2788_v43 = vsel %vm2777_vm11, %v2721_v34, %v2787_v39  ;;  %v2039_v44 = vmax.f32 %v2037_v29, %v2038_v40  ;;  %v2052_v45 = vrot.slane %v2051_v41, 4  ;;  %v1692_v46 = vcombine.high %v1684_v31, %v1684_v31  ;;  %v2872_v40 = vld [vmem:[#allocation2 + $0x14] sm:$0x1] }
 0x144   : > { %v2033_v49 = vrot.slane %v2032_v35, 2  ;;  %v2046_v50 = vmax.f32 %v2044_v30, %v2045_v48  ;;  %v2789_v51 = vsel %vm2779_vm12, %v2722_v37, %v2788_v43  ;;  %v1693_v52 = vcombine.high %v1691_v42, %v1691_v42 }
 0x145   : > { %v2040_v53 = vrot.slane %v2039_v44, 2  ;;  %v2053_v55 = vmax.f32 %v2051_v41, %v2052_v45  ;;  %v2058_v56 = vsel %vm1945_vm9, %v1684_v31, -inf  ;;  %v2065_v32 = vsel %vm1945_vm9, %v1692_v46, -inf  ;;  %v1433_v41 = vpop.f32.mrf.mxu1 }
 0x146   : > { %v2034_v57 = vmax.f32 %v2032_v35, %v2033_v49  ;;  %v2047_v59 = vrot.slane %v2046_v50, 2  ;;  %v2059_v60 = vrot.slane %v2058_v56, 4  ;;  %v2066_v61 = vrot.slane %v2065_v32, 4 }
 0x147   : > { %v2041_v62 = vmax.f32 %v2039_v44, %v2040_v53  ;;  %v2054_v63 = vrot.slane %v2053_v55, 2  ;;  %v2072_v0 = vsel %vm1945_vm9, %v1691_v42, -inf  ;;  %v2079_v1 = vsel %vm1945_vm9, %v1693_v52, -inf }
 0x148   : > { %v2035_v2 = vrot.slane %v2034_v57, 1  ;;  %v2048_v47 = vmax.f32 %v2046_v50, %v2047_v59  ;;  %v2060_v4 = vmax.f32 %v2058_v56, %v2059_v60  ;;  %v2067_v5 = vmax.f32 %v2065_v32, %v2066_v61  ;;  %v2869_v59 = vld [vmem:[#allocation2 + $0x10] sm:$0xf] }
 0x149   : > { %v2042_v7 = vrot.slane %v2041_v62, 1  ;;  %v2055_v8 = vmax.f32 %v2053_v55, %v2054_v63  ;;  %v2073_v9 = vrot.slane %v2072_v0, 4  ;;  %v2080_v10 = vrot.slane %v2079_v1, 4 }
 0x14a   : > { %v2036_v13 = vmax.f32 %v2034_v57, %v2035_v2  ;;  %v2049_v14 = vrot.slane %v2048_v47, 1  ;;  %v2061_v15 = vrot.slane %v2060_v4, 2  ;;  %v2068_v16 = vrot.slane %v2067_v5, 2 }
 0x14b   : > { %v2043_v18 = vmax.f32 %v2041_v62, %v2042_v7  ;;  %v2056_v19 = vrot.slane %v2055_v8, 1  ;;  %v2074_v20 = vmax.f32 %v2072_v0, %v2073_v9  ;;  %v2081_v22 = vmax.f32 %v2079_v1, %v2080_v10  ;;  %v7639_v62 = vpop.f32.mrf.mxu1 }
 0x14c   : > { %v2050_v23 = vmax.f32 %v2048_v47, %v2049_v14  ;;  %v7338_v25 = vpack.c.bf16 %v2036_v13, %v2036_v13  ;;  %v2062_v26 = vmax.f32 %v2060_v4, %v2061_v15  ;;  %v2069_v28 = vmax.f32 %v2067_v5, %v2068_v16 }
 0x14d   : > { %v2057_v29 = vmax.f32 %v2055_v8, %v2056_v19  ;;  %v7339_v30 = vpack.c.bf16 %v2043_v18, %v2043_v18  ;;  %v2075_v31 = vrot.slane %v2074_v20, 2  ;;  %v2082_v34 = vrot.slane %v2081_v22, 2 }
 0x14e   : > { %v7340_v37 = vpack.c.bf16 %v2050_v23, %v2050_v23  ;;  %v2723_v39 = vunpack.c.l.b16 %v7338_v25  ;;  %v2063_v35 = vrot.slane %v2062_v26, 1  ;;  %v2070_v48 = vrot.slane %v2069_v28, 1 }
 0x14f   : > { %v2724_v42 = vunpack.c.l.b16 %v7339_v30  ;;  %v7391_v43 = vpack.c.bf16 %v2057_v29, %v2057_v29  ;;  %v2076_v44 = vmax.f32 %v2074_v20, %v2075_v31  ;;  %v2083_v45 = vmax.f32 %v2081_v22, %v2082_v34 }
 0x150   : > { %v2725_v46 = vunpack.c.l.b16 %v7340_v37  ;;  %v2790_v49 = vsel %vm2781_vm13, %v2723_v39, %v2789_v51  ;;  %v2064_v50 = vmax.f32 %v2062_v26, %v2063_v35  ;;  %v2071_v52 = vmax.f32 %v2069_v28, %v2070_v48 }
 0x151   : > { %v2791_v53 = vsel %vm2783_vm14, %v2724_v42, %v2790_v49  ;;  %v2873_v55 = vsel %vm8654_vm7, %v7391_v43, %v2872_v40  ;;  %v2077_v56 = vrot.slane %v2076_v44, 1  ;;  %v2084_v32 = vrot.slane %v2083_v45, 1 }
 0x152   : > { %v2792_v57 = vsel %vm2785_vm15, %v2725_v46, %v2791_v53  ;;  %2874 = vst [vmem:[#allocation2 + $0x14] sm:$0x1] %v2873_v55  ;;  %v7342_v60 = vpack.c.bf16 %v2064_v50, %v2064_v50  ;;  %v7343_v61 = vpack.c.bf16 %v2071_v52, %v2071_v52  ;;  %v1561_v51 = vsel %vm1544_vm8, %v1523_v11, -inf }
 0x153   : > { %v2831_v63 = vpack.c.b16 %v2792_v57, %v2792_v57  ;;  %v2078_v0 = vmax.f32 %v2076_v44, %v2077_v56  ;;  %v2085_v1 = vmax.f32 %v2083_v45, %v2084_v32  ;;  %v1521_v2 = vmax.f32 %v8765_v33, 0.0 }
 0x154   : > { %v2727_v47 = vunpack.c.l.b16 %v7342_v60  ;;  %v2728_v4 = vunpack.c.l.b16 %v7343_v61  ;;  %v1442_v5 = vadd.f32 %v7638_v17, %v8680_v58  ;;  %v7476_v7 = vadd.f32 %v8723_v21, %v8721_v12  ;;  %v1436_v12 = vpop.f32.mrf.mxu1 }
 0x155   : > { %v2870_v8 = vsel %vm8748_vm1, %v2831_v63, %v2869_v59  ;;  %v7344_v9 = vpack.c.bf16 %v2078_v0, %v2078_v0  ;;  %v7345_v3 = vpack.c.bf16 %v2085_v1, %v2085_v1  ;;  %v1560_v11 = vsel %vm1544_vm8, %v1521_v2, -inf }
 0x156   : > { %2871 = vst [vmem:[#allocation2 + $0x10] sm:$0xf] %v2870_v8  ;;  %v2793_v33 = vsel %vm2775_vm10, %v2728_v4, %v2727_v47  ;;  %v1562_v10 = vmax.f32 %v1560_v11, %v1561_v51  ;;  %v1526_v13 = vmax.f32 %v1442_v5, 0.0  ;;  %v8804_v14 = vadd.f32 %v7476_v7, %v8675_v54 }
 0x157   : > { %v2729_v21 = vunpack.c.l.b16 %v7344_v9  ;;  %v2730_v15 = vunpack.c.l.b16 %v7345_v3  ;;  %v1434_v16 = vadd.f32 %v8680_v58, %v1433_v41  ;;  %v1445_v17 = vadd.f32 %v7639_v62, %v8680_v58 }
 0x158   : > { %10335 = vst [vmem:[#allocation15_spill] sm:$0xff] %v8804_v14  ;;  %v1694_v18 = vcombine.high %v1562_v10, %v1562_v10  ;;  %v1701_v19 = vrot.slane %v1562_v10, %v8688_v6  ;;  %v1564_v20 = vsel %vm1544_vm8, %v1526_v13, -inf  ;;  %1160 = vst [vmem:[%s598_s18] sm:$0x1] %v8804_v14  ;;  %v1437_v54 = vadd.f32 %v8680_v58, %v1436_v12  ;;  %s8223_s18 = sshll.u32 %s8288_s0, 4  ;;  %s8224_s18 = int_to_ptr.vmem [resolvable:$false] %s8223_s18 }
 0x159   : > { %v2794_v22 = vsel %vm2777_vm11, %v2729_v21, %v2793_v33  ;;  %v1524_v23 = vmax.f32 %v1434_v16, 0.0  ;;  %v1527_v25 = vmax.f32 %v1445_v17, 0.0  ;;  %p8226_p0 = scmp.lt.s32.totalorder %s10235_s27, %s8224_s18 }
 0x15a   : > { %v1708_v26 = vrot.slane %v1694_v18, %v8688_v6  ;;  %v1709_v28 = vcombine.high %v1701_v19, %v1701_v19  ;;  %v2086_v29 = vsel %vm1945_vm9, %v1701_v19, -inf  ;;  %v8816_v30 = vsel %vm2779_vm12, %v2730_v15, %v2794_v22 }
 0x15b   : > { %v2087_v31 = vrot.slane %v2086_v29, 4  ;;  %v1563_v34 = vsel %vm1544_vm8, %v1524_v23, -inf  ;;  %v1567_v37 = vsel %vm1544_vm8, %v1527_v25, -inf  ;;  %v1525_v39 = vmax.f32 %v1437_v54, 0.0 }
 0x15c   : > { %v1710_v40 = vcombine.high %v1708_v26, %v1708_v26  ;;  %v2093_v35 = vsel %vm1945_vm9, %v1709_v28, -inf  ;;  %v2100_v48 = vsel %vm1945_vm9, %v1708_v26, -inf  ;;  %v1565_v41 = vmax.f32 %v1563_v34, %v1564_v20  ;;  %v7642_v20 = vpop.f32.mrf.mxu1 }
 0x15d   : > { %v2088_v42 = vmax.f32 %v2086_v29, %v2087_v31  ;;  %v2094_v43 = vrot.slane %v2093_v35, 4  ;;  %v2101_v44 = vrot.slane %v2100_v48, 4  ;;  %v1566_v45 = vsel %vm1544_vm8, %v1525_v39, -inf  ;;  %v2976_v36 = vld [vmem:[#allocation2 + $0x10] sm:$0xe] }
 0x15e   : > { %v2107_v46 = vsel %vm1945_vm9, %v1710_v40, -inf  ;;  %v1711_v49 = vcombine.high %v1565_v41, %v1565_v41  ;;  %v1718_v50 = vrot.slane %v1565_v41, %v8688_v6  ;;  %v8825_v52 = vmax.f32 %v1566_v45, %v1567_v37 }
 0x15f   : > { %v2089_v53 = vrot.slane %v2088_v42, 2  ;;  %v2095_v55 = vmax.f32 %v2093_v35, %v2094_v43  ;;  %v2102_v56 = vmax.f32 %v2100_v48, %v2101_v44  ;;  %v2108_v32 = vrot.slane %v2107_v46, 4  ;;  %v2878_v35 = vld [vmem:[#allocation2 + $0x1c] sm:$0x1]  ;;  %v1449_v44 = vpop.f32.mrf.mxu1 }
 0x160   : > { %v1725_v57 = vrot.slane %v1711_v49, %v8688_v6  ;;  %v1726_v59 = vcombine.high %v1718_v50, %v1718_v50  ;;  %v2114_v60 = vsel %vm1945_vm9, %v1718_v50, -inf  ;;  %v1728_v61 = vcombine.high %v8825_v52, %v8825_v52 }
 0x161   : > { %v2090_v51 = vmax.f32 %v2088_v42, %v2089_v53  ;;  %v2096_v62 = vrot.slane %v2095_v55, 2  ;;  %v2103_v63 = vrot.slane %v2102_v56, 2  ;;  %v2109_v0 = vmax.f32 %v2107_v46, %v2108_v32 }
 0x162   : > { %v1727_v1 = vcombine.high %v1725_v57, %v1725_v57  ;;  %v2115_v2 = vrot.slane %v2114_v60, 4  ;;  %v2121_v47 = vsel %vm1945_vm9, %v1726_v59, -inf  ;;  %v2128_v4 = vsel %vm1945_vm9, %v1725_v57, -inf }
 0x163   : > { %v2091_v5 = vrot.slane %v2090_v51, 1  ;;  %v2097_v7 = vmax.f32 %v2095_v55, %v2096_v62  ;;  %v2104_v8 = vmax.f32 %v2102_v56, %v2103_v63  ;;  %v2110_v9 = vrot.slane %v2109_v0, 2  ;;  %v2875_v63 = vld [vmem:[#allocation2 + $0x18] sm:$0xf] }
 0x164   : > { %v2116_v3 = vmax.f32 %v2114_v60, %v2115_v2  ;;  %v2122_v11 = vrot.slane %v2121_v47, 4  ;;  %v2129_v33 = vrot.slane %v2128_v4, 4  ;;  %v2135_v10 = vsel %vm1945_vm9, %v1727_v1, -inf  ;;  %v7643_v2 = vpop.f32.mrf.mxu1 }
 0x165   : > { %v2092_v13 = vmax.f32 %v2090_v51, %v2091_v5  ;;  %v2098_v12 = vrot.slane %v2097_v7, 1  ;;  %v2105_v21 = vrot.slane %v2104_v8, 1  ;;  %v2111_v15 = vmax.f32 %v2109_v0, %v2110_v9 }
 0x166   : > { %v2117_v16 = vrot.slane %v2116_v3, 2  ;;  %v2123_v17 = vmax.f32 %v2121_v47, %v2122_v11  ;;  %v2130_v18 = vmax.f32 %v2128_v4, %v2129_v33  ;;  %v2136_v19 = vrot.slane %v2135_v10, 4 }
 0x167   : > { %v2099_v22 = vmax.f32 %v2097_v7, %v2098_v12  ;;  %v2106_v23 = vmax.f32 %v2104_v8, %v2105_v21  ;;  %v2112_v25 = vrot.slane %v2111_v15, 1  ;;  %v7346_v54 = vpack.c.bf16 %v2092_v13, %v2092_v13 }
 0x168   : > { %v2118_v26 = vmax.f32 %v2116_v3, %v2117_v16  ;;  %v2124_v28 = vrot.slane %v2123_v17, 2  ;;  %v2131_v29 = vrot.slane %v2130_v18, 2  ;;  %v2137_v31 = vmax.f32 %v2135_v10, %v2136_v19  ;;  %v1452_v16 = vpop.f32.mrf.mxu1 }
 0x169   : > { %v2113_v34 = vmax.f32 %v2111_v15, %v2112_v25  ;;  %v7347_v37 = vpack.c.bf16 %v2099_v22, %v2099_v22  ;;  %v7348_v39 = vpack.c.bf16 %v2106_v23, %v2106_v23  ;;  %v2731_v40 = vunpack.c.l.b16 %v7346_v54 }
 0x16a   : > { %v2119_v48 = vrot.slane %v2118_v26, 1  ;;  %v2125_v41 = vmax.f32 %v2123_v17, %v2124_v28  ;;  %v2132_v42 = vmax.f32 %v2130_v18, %v2131_v29  ;;  %v2138_v43 = vrot.slane %v2137_v31, 2 }
 0x16b   : > { %v2732_v45 = vunpack.c.l.b16 %v7347_v37  ;;  %v2733_v46 = vunpack.c.l.b16 %v7348_v39  ;;  %v2796_v49 = vsel %vm2781_vm13, %v2731_v40, %v8816_v30  ;;  %v7392_v50 = vpack.c.bf16 %v2113_v34, %v2113_v34 }
 0x16c   : > { %v2120_v53 = vmax.f32 %v2118_v26, %v2119_v48  ;;  %v2126_v55 = vrot.slane %v2125_v41, 1  ;;  %v2133_v56 = vrot.slane %v2132_v42, 1  ;;  %v2139_v32 = vmax.f32 %v2137_v31, %v2138_v43  ;;  %v7646_v48 = vpop.f32.mrf.mxu1 }
 0x16d   : > { %v2797_v57 = vsel %vm2783_vm14, %v2732_v45, %v2796_v49  ;;  %v2879_v59 = vsel %vm8654_vm7, %v7392_v50, %v2878_v35  ;;  %v1735_v60 = vrot.slane %v8825_v52, %v8688_v6  ;;  %v1742_v51 = vrot.slane %v1728_v61, %v8688_v6 }
 0x16e   : > { %v2798_v62 = vsel %vm2785_vm15, %v2733_v46, %v2797_v57  ;;  %2880 = vst [vmem:[#allocation2 + $0x1c] sm:$0x1] %v2879_v59  ;;  %v2127_v30 = vmax.f32 %v2125_v41, %v2126_v55  ;;  %v2134_v0 = vmax.f32 %v2132_v42, %v2133_v56  ;;  %v2140_v1 = vrot.slane %v2139_v32, 1 }
 0x16f   : > { %v2833_v47 = vpack.c.b16 %v2798_v62, %v2798_v62  ;;  %v7350_v4 = vpack.c.bf16 %v2120_v53, %v2120_v53  ;;  %v1743_v5 = vcombine.high %v1735_v60, %v1735_v60  ;;  %v1744_v7 = vcombine.high %v1742_v51, %v1742_v51 }
 0x170   : > { %v2141_v8 = vmax.f32 %v2139_v32, %v2140_v1  ;;  %v7351_v9 = vpack.c.bf16 %v2127_v30, %v2127_v30  ;;  %v7352_v3 = vpack.c.bf16 %v2134_v0, %v2134_v0  ;;  %v2142_v11 = vsel %vm1945_vm9, %v1735_v60, -inf }
 0x171   : > { %v2876_v52 = vsel %vm8748_vm1, %v2833_v47, %v2875_v63  ;;  %v2735_v61 = vunpack.c.l.b16 %v7350_v4  ;;  %v2143_v33 = vrot.slane %v2142_v11, 4  ;;  %v2149_v10 = vsel %vm1945_vm9, %v1743_v5, -inf }
 0x172   : > { %2877 = vst [vmem:[#allocation2 + $0x18] sm:$0xf] %v2876_v52  ;;  %v7353_v13 = vpack.c.bf16 %v2141_v8, %v2141_v8  ;;  %v2736_v12 = vunpack.c.l.b16 %v7351_v9  ;;  %v2737_v21 = vunpack.c.l.b16 %v7352_v3  ;;  %v2150_v15 = vrot.slane %v2149_v10, 4 }
 0x173   : > { %v2144_v17 = vmax.f32 %v2142_v11, %v2143_v33  ;;  %v2156_v18 = vsel %vm1945_vm9, %v1742_v51, -inf  ;;  %v2163_v19 = vsel %vm1945_vm9, %v1744_v7, -inf  ;;  %v1458_v22 = vadd.f32 %v7642_v20, %v8680_v58 }
 0x174   : > { %v2738_v23 = vunpack.c.l.b16 %v7353_v13  ;;  %v2799_v25 = vsel %vm2775_vm10, %v2736_v12, %v2735_v61  ;;  %v2151_v54 = vmax.f32 %v2149_v10, %v2150_v15  ;;  %v2157_v26 = vrot.slane %v2156_v18, 4 }
 0x175   : > { %v2800_v28 = vsel %vm2777_vm11, %v2737_v21, %v2799_v25  ;;  %v2145_v29 = vrot.slane %v2144_v17, 2  ;;  %v2164_v31 = vrot.slane %v2163_v19, 4  ;;  %v1530_v34 = vmax.f32 %v1458_v22, 0.0  ;;  %v2884_v21 = vld [vmem:[#allocation2 + $0x24] sm:$0x1] }
 0x176   : > { %v2152_v37 = vrot.slane %v2151_v54, 2  ;;  %v2158_v39 = vmax.f32 %v2156_v18, %v2157_v26  ;;  %v2801_v40 = vsel %vm2779_vm12, %v2738_v23, %v2800_v28  ;;  %v1450_v35 = vadd.f32 %v8680_v58, %v1449_v44 }
 0x177   : > { %v2146_v41 = vmax.f32 %v2144_v17, %v2145_v29  ;;  %v2165_v42 = vmax.f32 %v2163_v19, %v2164_v31  ;;  %v1570_v20 = vsel %vm1544_vm8, %v1530_v34, -inf  ;;  %v1461_v43 = vadd.f32 %v7643_v2, %v8680_v58 }
 0x178   : > { %v2153_v45 = vmax.f32 %v2151_v54, %v2152_v37  ;;  %v2159_v46 = vrot.slane %v2158_v39, 2  ;;  %v1528_v49 = vmax.f32 %v1450_v35, 0.0  ;;  %v1453_v50 = vadd.f32 %v8680_v58, %v1452_v16 }
 0x179   : > { %v2147_v53 = vrot.slane %v2146_v41, 1  ;;  %v2166_v55 = vrot.slane %v2165_v42, 2  ;;  %v1531_v56 = vmax.f32 %v1461_v43, 0.0  ;;  %v1474_v32 = vadd.f32 %v7646_v48, %v8680_v58 }
 0x17a   : > { %v2154_v57 = vrot.slane %v2153_v45, 1  ;;  %v2160_v59 = vmax.f32 %v2158_v39, %v2159_v46  ;;  %v1569_v44 = vsel %vm1544_vm8, %v1528_v49, -inf  ;;  %v1529_v60 = vmax.f32 %v1453_v50, 0.0  ;;  %v2881_v39 = vld [vmem:[#allocation2 + $0x20] sm:$0xf] }
 0x17b   : > { %v2148_v51 = vmax.f32 %v2146_v41, %v2147_v53  ;;  %v2167_v62 = vmax.f32 %v2165_v42, %v2166_v55  ;;  %v1571_v63 = vmax.f32 %v1569_v44, %v1570_v20  ;;  %v1573_v30 = vsel %vm1544_vm8, %v1531_v56, -inf }
 0x17c   : > { %v2155_v0 = vmax.f32 %v2153_v45, %v2154_v57  ;;  %v2161_v1 = vrot.slane %v2160_v59, 1  ;;  %v1572_v2 = vsel %vm1544_vm8, %v1529_v60, -inf  ;;  %v1534_v47 = vmax.f32 %v1474_v32, 0.0 }
 0x17d   : > { %v2168_v4 = vrot.slane %v2167_v62, 1  ;;  %v7354_v5 = vpack.c.bf16 %v2148_v51, %v2148_v51  ;;  %v1745_v7 = vcombine.high %v1571_v63, %v1571_v63  ;;  %v1752_v58 = vrot.slane %v1571_v63, %v8688_v6 }
 0x17e   : > { %v2162_v8 = vmax.f32 %v2160_v59, %v2161_v1  ;;  %v7355_v9 = vpack.c.bf16 %v2155_v0, %v2155_v0  ;;  %v1574_v3 = vmax.f32 %v1572_v2, %v1573_v30  ;;  %v8863_v11 = vsel %vm1544_vm8, %v1534_v47, -inf }
 0x17f   : > { %v2169_v52 = vmax.f32 %v2167_v62, %v2168_v4  ;;  %v2739_v61 = vunpack.c.l.b16 %v7354_v5  ;;  %v1759_v33 = vrot.slane %v1745_v7, %v8688_v6  ;;  %v1760_v10 = vcombine.high %v1752_v58, %v1752_v58 }
 0x180   : > { %v7356_v13 = vpack.c.bf16 %v2162_v8, %v2162_v8  ;;  %v2740_v12 = vunpack.c.l.b16 %v7355_v9  ;;  %v2170_v15 = vsel %vm1945_vm9, %v1752_v58, -inf  ;;  %v1762_v16 = vcombine.high %v1574_v3, %v1574_v3 }
 0x181   : > { %v2802_v17 = vsel %vm2781_vm13, %v2739_v61, %v2801_v40  ;;  %v7393_v18 = vpack.c.bf16 %v2169_v52, %v2169_v52  ;;  %v1761_v19 = vcombine.high %v1759_v33, %v1759_v33  ;;  %v2171_v22 = vrot.slane %v2170_v15, 4  ;;  %v1465_v61 = vpop.f32.mrf.mxu1 }
 0x182   : > { %v2741_v23 = vunpack.c.l.b16 %v7356_v13  ;;  %v2803_v25 = vsel %vm2783_vm14, %v2740_v12, %v2802_v17  ;;  %v2177_v54 = vsel %vm1945_vm9, %v1760_v10, -inf  ;;  %v2184_v26 = vsel %vm1945_vm9, %v1759_v33, -inf }
 0x183   : > { %v2885_v28 = vsel %vm8654_vm7, %v7393_v18, %v2884_v21  ;;  %v2172_v29 = vmax.f32 %v2170_v15, %v2171_v22  ;;  %v2178_v31 = vrot.slane %v2177_v54, 4  ;;  %v2185_v34 = vrot.slane %v2184_v26, 4 }
 0x184   : > { %v2804_v37 = vsel %vm2785_vm15, %v2741_v23, %v2803_v25  ;;  %2886 = vst [vmem:[#allocation2 + $0x24] sm:$0x1] %v2885_v28  ;;  %v2191_v40 = vsel %vm1945_vm9, %v1761_v19, -inf  ;;  %v1769_v35 = vrot.slane %v1574_v3, %v8688_v6  ;;  %v1776_v48 = vrot.slane %v1762_v16, %v8688_v6 }
 0x185   : > { %v2835_v41 = vpack.c.b16 %v2804_v37, %v2804_v37  ;;  %v2173_v42 = vrot.slane %v2172_v29, 2  ;;  %v2179_v20 = vmax.f32 %v2177_v54, %v2178_v31  ;;  %v2186_v43 = vmax.f32 %v2184_v26, %v2185_v34 }
 0x186   : > { %v2192_v45 = vrot.slane %v2191_v40, 4  ;;  %v1777_v46 = vcombine.high %v1769_v35, %v1769_v35  ;;  %v1778_v49 = vcombine.high %v1776_v48, %v1776_v48  ;;  %v2198_v50 = vsel %vm1945_vm9, %v1769_v35, -inf }
 0x187   : > { %v2882_v53 = vsel %vm8748_vm1, %v2835_v41, %v2881_v39  ;;  %v2174_v55 = vmax.f32 %v2172_v29, %v2173_v42  ;;  %v2180_v56 = vrot.slane %v2179_v20, 2  ;;  %v2187_v32 = vrot.slane %v2186_v43, 2  ;;  %v7647_v29 = vpop.f32.mrf.mxu1  ;;  %v8886_v39 = vld [vmem:[%s10279_s5] ss:$0 sm:$0xff] }
 0x188   : > { %2883 = vst [vmem:[#allocation2 + $0x20] sm:$0xf] %v2882_v53  ;;  %v2193_v57 = vmax.f32 %v2191_v40, %v2192_v45  ;;  %v2199_v59 = vrot.slane %v2198_v50, 4  ;;  %v2205_v44 = vsel %vm1945_vm9, %v1777_v46, -inf  ;;  %v2212_v60 = vsel %vm1945_vm9, %v1776_v48, -inf }
 0x189   : > { %v2175_v51 = vrot.slane %v2174_v55, 1  ;;  %v2181_v62 = vmax.f32 %v2179_v20, %v2180_v56  ;;  %v2188_v63 = vmax.f32 %v2186_v43, %v2187_v32  ;;  %v2206_v30 = vrot.slane %v2205_v44, 4  ;;  %v1468_v56 = vpop.f32.mrf.mxu1 }
 0x18a   : > { %v2194_v0 = vrot.slane %v2193_v57, 2  ;;  %v2200_v1 = vmax.f32 %v2198_v50, %v2199_v59  ;;  %v2213_v2 = vrot.slane %v2212_v60, 4  ;;  %v2219_v47 = vsel %vm1945_vm9, %v1778_v49, -inf }
 0x18b   : > { %v2176_v4 = vmax.f32 %v2174_v55, %v2175_v51  ;;  %v2182_v5 = vrot.slane %v2181_v62, 1  ;;  %v2189_v7 = vrot.slane %v2188_v63, 1  ;;  %v2207_v58 = vmax.f32 %v2205_v44, %v2206_v30  ;;  %v2420_v30 = vld [vmem:[#allocation2 + $0x30] sm:$0x1] }
 0x18c   : > { %v2195_v8 = vmax.f32 %v2193_v57, %v2194_v0  ;;  %v2201_v9 = vrot.slane %v2200_v1, 2  ;;  %v2214_v3 = vmax.f32 %v2212_v60, %v2213_v2  ;;  %v2220_v52 = vrot.slane %v2219_v47, 4  ;;  %v2446_v0 = vld [vmem:[#allocation2 + $0x34] sm:$0x1] }
 0x18d   : > { %v2183_v33 = vmax.f32 %v2181_v62, %v2182_v5  ;;  %v2190_v10 = vmax.f32 %v2188_v63, %v2189_v7  ;;  %v7358_v13 = vpack.c.bf16 %v2176_v4, %v2176_v4  ;;  %v2208_v12 = vrot.slane %v2207_v58, 2 }
 0x18e   : > { %v2196_v21 = vrot.slane %v2195_v8, 1  ;;  %v2202_v15 = vmax.f32 %v2200_v1, %v2201_v9  ;;  %v2215_v16 = vrot.slane %v2214_v3, 2  ;;  %v2221_v17 = vmax.f32 %v2219_v47, %v2220_v52  ;;  %v2890_v47 = vld [vmem:[#allocation2 + $0x2c] sm:$0x1] }
 0x18f   : > { %v7359_v18 = vpack.c.bf16 %v2183_v33, %v2183_v33  ;;  %v7360_v19 = vpack.c.bf16 %v2190_v10, %v2190_v10  ;;  %v2743_v22 = vunpack.c.l.b16 %v7358_v13  ;;  %v2209_v23 = vmax.f32 %v2207_v58, %v2208_v12 }
 0x190   : > { %v2197_v25 = vmax.f32 %v2195_v8, %v2196_v21  ;;  %v2203_v54 = vrot.slane %v2202_v15, 1  ;;  %v2216_v26 = vmax.f32 %v2214_v3, %v2215_v16  ;;  %v2222_v28 = vrot.slane %v2221_v17, 2  ;;  %v7650_v3 = vpop.f32.mrf.mxu1  ;;  %v2887_v16 = vld [vmem:[#allocation2 + $0x28] sm:$0xf] }
 0x191   : > { %v2744_v31 = vunpack.c.l.b16 %v7359_v18  ;;  %v2745_v34 = vunpack.c.l.b16 %v7360_v19  ;;  %v2210_v37 = vrot.slane %v2209_v23, 1  ;;  %v1466_v40 = vadd.f32 %v8886_v39, %v1465_v61 }
 0x192   : > { %v7361_v35 = vpack.c.bf16 %v2197_v25, %v2197_v25  ;;  %v2204_v48 = vmax.f32 %v2202_v15, %v2203_v54  ;;  %v2217_v41 = vrot.slane %v2216_v26, 1  ;;  %v2223_v42 = vmax.f32 %v2221_v17, %v2222_v28 }
 0x193   : > { %v2805_v20 = vsel %vm2775_vm10, %v2744_v31, %v2743_v22  ;;  %v2211_v43 = vmax.f32 %v2209_v23, %v2210_v37  ;;  %v1532_v45 = vmax.f32 %v1466_v40, 0.0  ;;  %v1477_v46 = vadd.f32 %v8886_v39, %v7647_v29 }
 0x194   : > { %v2746_v49 = vunpack.c.l.b16 %v7361_v35  ;;  %v2806_v50 = vsel %vm2777_vm11, %v2745_v34, %v2805_v20  ;;  %v2218_v53 = vmax.f32 %v2216_v26, %v2217_v41  ;;  %v2224_v55 = vrot.slane %v2223_v42, 1  ;;  %v1481_v34 = vpop.f32.mrf.mxu1 }
 0x195   : > { %v7362_v32 = vpack.c.bf16 %v2204_v48, %v2204_v48  ;;  %v7363_v57 = vpack.c.bf16 %v2211_v43, %v2211_v43  ;;  %v1575_v59 = vsel %vm1544_vm8, %v1532_v45, -inf  ;;  %v1535_v44 = vmax.f32 %v1477_v46, 0.0 }
 0x196   : > { %v2225_v60 = vmax.f32 %v2223_v42, %v2224_v55  ;;  %v7364_v51 = vpack.c.bf16 %v2218_v53, %v2218_v53  ;;  %v2807_v62 = vsel %vm2779_vm12, %v2746_v49, %v2806_v50  ;;  %v1577_v63 = vmax.f32 %v1575_v59, %v8863_v11 }
 0x197   : > { %v2747_v1 = vunpack.c.l.b16 %v7362_v32  ;;  %v2748_v2 = vunpack.c.l.b16 %v7363_v57  ;;  %v1579_v4 = vsel %vm1544_vm8, %v1535_v44, -inf  ;;  %v1469_v5 = vadd.f32 %v8886_v39, %v1468_v56 }
 0x198   : > { %v2749_v7 = vunpack.c.l.b16 %v7364_v51  ;;  %v7394_v58 = vpack.c.bf16 %v2225_v60, %v2225_v60  ;;  %v1779_v8 = vcombine.high %v1577_v63, %v1577_v63  ;;  %v1786_v9 = vrot.slane %v1577_v63, %v8688_v6  ;;  %v7855_v51 = vld [vmem:[%s10280_s6 + $0x78] sm:$0xff]  }
 0x199   : > { %v2808_v52 = vsel %vm2781_vm13, %v2747_v1, %v2807_v62  ;;  %v1533_v61 = vmax.f32 %v1469_v5, 0.0  ;;  %v2421_v11 = vsel %vm8654_vm7, 0, %v2420_v30  ;;  %v2447_v33 = vsel %vm8646_vm5, 0, %v2446_v0  ;;  %7498 = vmatprep.subr.bf16.mxu0 %v7855_v51  ;;  %v7856_v5 = vld [vmem:[%s10280_s6 + $0x38] sm:$0xff]  }
 0x19a   : > { %v2809_v10 = vsel %vm2783_vm14, %v2748_v2, %v2808_v52  ;;  %v2891_v13 = vsel %vm8654_vm7, %v7394_v58, %v2890_v47  ;;  %v1793_v12 = vrot.slane %v1779_v8, %v8688_v6  ;;  %v1794_v21 = vcombine.high %v1786_v9, %v1786_v9  ;;  %2422 = vst [vmem:[#allocation2 + $0x30] sm:$0x1] %v2421_v11 }
 0x19b   : > { %2448 = vst [vmem:[#allocation2 + $0x34] sm:$0x1] %v2447_v33  ;;  %v2810_v15 = vsel %vm2785_vm15, %v2749_v7, %v2809_v10  ;;  %2892 = vst [vmem:[#allocation2 + $0x2c] sm:$0x1] %v2891_v13  ;;  %v2226_v17 = vsel %vm1945_vm9, %v1786_v9, -inf  ;;  %v1578_v18 = vsel %vm1544_vm8, %v1533_v61, -inf  ;;  %v1490_v19 = vadd.f32 %v8886_v39, %v7650_v3  ;;  %7499 = vmatpush3.bf16.msra.mxu0 %v7856_v5 }
 0x19c   : > { %v2837_v22 = vpack.c.b16 %v2810_v15, %v2810_v15  ;;  %v1795_v23 = vcombine.high %v1793_v12, %v1793_v12  ;;  %v2227_v25 = vrot.slane %v2226_v17, 4  ;;  %v2233_v54 = vsel %vm1945_vm9, %v1794_v21, -inf  ;;  %v7857_v7 = vld [vmem:[%s10280_s6 + $0x70] sm:$0xff]  }
 0x19d   : > { %v2234_v26 = vrot.slane %v2233_v54, 4  ;;  %v2240_v28 = vsel %vm1945_vm9, %v1793_v12, -inf  ;;  %v1580_v29 = vmax.f32 %v1578_v18, %v1579_v4  ;;  %v1538_v31 = vmax.f32 %v1490_v19, 0.0  ;;  %v7858_v10 = vld [vmem:[%s10280_s6 + $0x30] sm:$0xff]   ;;  %7500 = vmatprep.subr.bf16.mxu0 %v7857_v7 }
 0x19e   : > { %v2888_v37 = vsel %vm8748_vm1, %v2837_v22, %v2887_v16  ;;  %v2228_v40 = vmax.f32 %v2226_v17, %v2227_v25  ;;  %v2241_v35 = vrot.slane %v2240_v28, 4  ;;  %v2247_v48 = vsel %vm1945_vm9, %v1795_v23, -inf  ;;  %v7859_v16 = vld [vmem:[%s10280_s6 + $0x68] sm:$0xff]  }
 0x19f   : > { %2889 = vst [vmem:[#allocation2 + $0x28] sm:$0xf] %v2888_v37  ;;  %v2235_v41 = vmax.f32 %v2233_v54, %v2234_v26  ;;  %v2248_v42 = vrot.slane %v2247_v48, 4  ;;  %v1796_v20 = vcombine.high %v1580_v29, %v1580_v29  ;;  %v1803_v43 = vrot.slane %v1580_v29, %v8688_v6  ;;  %v7866_v29 = vld [vmem:[%s10280_s6 + $0xb8] sm:$0xff]   ;;  %7501 = vmatpush3.bf16.msra.mxu0 %v7858_v10 }
 0x1a0   : > { %v2229_v45 = vrot.slane %v2228_v40, 2  ;;  %v2242_v46 = vmax.f32 %v2240_v28, %v2241_v35  ;;  %v8918_v49 = vsel %vm1544_vm8, %v1538_v31, -inf  ;;  %v8921_v50 = vadd.f32 %v8886_v39, %v1481_v34  ;;  %v7865_v28 = vld [vmem:[%s10280_s6 + $0xf8] sm:$0xff]   ;;  %v7860_v35 = vld [vmem:[%s10280_s6 + $0x28] sm:$0xff]   ;;  %7502 = vmatprep.subr.bf16.mxu0 %v7859_v16 }
 0x1a1   : > { %v2236_v53 = vrot.slane %v2235_v41, 2  ;;  %v2249_v55 = vmax.f32 %v2247_v48, %v2248_v42  ;;  %v1810_v56 = vrot.slane %v1796_v20, %v8688_v6  ;;  %v1811_v32 = vcombine.high %v1803_v43, %v1803_v43  ;;  %7538 = vmatprep.subr.bf16.mxu1 %v7865_v28 }
 0x1a2   : > { %v2230_v57 = vmax.f32 %v2228_v40, %v2229_v45  ;;  %v2243_v59 = vrot.slane %v2242_v46, 2  ;;  %v2254_v44 = vsel %vm1945_vm9, %v1803_v43, -inf  ;;  %v1536_v60 = vmax.f32 %v8921_v50, 0.0  ;;  %v7861_v43 = vld [vmem:[%s10280_s6 + $0x60] sm:$0xff]   ;;  %7539 = vmatpush3.bf16.msra.mxu1 %v7866_v29  ;;  %v2896_v16 = vld [vmem:[#allocation2 + $0x34] sm:$0x1] }
 0x1a3   : > { %v2237_v62 = vmax.f32 %v2235_v41, %v2236_v53  ;;  %v2250_v63 = vrot.slane %v2249_v55, 2  ;;  %v1812_v30 = vcombine.high %v1810_v56, %v1810_v56  ;;  %v2255_v0 = vrot.slane %v2254_v44, 4  ;;  %7503 = vmatpush3.bf16.msra.mxu0 %v7860_v35 }
 0x1a4   : > { %v2231_v1 = vrot.slane %v2230_v57, 1  ;;  %v2244_v2 = vmax.f32 %v2242_v46, %v2243_v59  ;;  %v2261_v47 = vsel %vm1945_vm9, %v1811_v32, -inf  ;;  %v2268_v4 = vsel %vm1945_vm9, %v1810_v56, -inf  ;;  %7504 = vmatprep.subr.bf16.mxu0 %v7861_v43 }
 0x1a5   : > { %v2238_v58 = vrot.slane %v2237_v62, 1  ;;  %v2251_v8 = vmax.f32 %v2249_v55, %v2250_v63  ;;  %v2256_v9 = vmax.f32 %v2254_v44, %v2255_v0  ;;  %v2262_v3 = vrot.slane %v2261_v47, 4  ;;  %v2935_v55 = vld [vmem:[#allocation2 + $0x8] sm:$0xf] }
 0x1a6   : > { %v2232_v52 = vmax.f32 %v2230_v57, %v2231_v1  ;;  %v2245_v61 = vrot.slane %v2244_v2, 1  ;;  %v2269_v11 = vrot.slane %v2268_v4, 4  ;;  %v2275_v33 = vsel %vm1945_vm9, %v1812_v30, -inf  ;;  %v7862_v30 = vld [vmem:[%s10280_s6 + $0x20] sm:$0xff]  }
 0x1a7   : > { %v2239_v13 = vmax.f32 %v2237_v62, %v2238_v58  ;;  %v2252_v12 = vrot.slane %v2251_v8, 1  ;;  %v2257_v21 = vrot.slane %v2256_v9, 2  ;;  %v2263_v15 = vmax.f32 %v2261_v47, %v2262_v3  ;;  %v7863_v47 = vld [vmem:[%s10280_s6 + $0x58] sm:$0xff]   ;;  %v8968_v58 = vld [vmem:[#allocation2 + $0xc] sm:$0x1]  ;;  %7505 = vmatpush3.bf16.msra.mxu0 %v7862_v30 }
 0x1a8   : > { %v2246_v17 = vmax.f32 %v2244_v2, %v2245_v61  ;;  %v7366_v18 = vpack.c.bf16 %v2232_v52, %v2232_v52  ;;  %v2270_v19 = vmax.f32 %v2268_v4, %v2269_v11  ;;  %v2276_v22 = vrot.slane %v2275_v33, 4  ;;  %7506 = vmatprep.subr.bf16.mxu0 %v7863_v47  ;;  %v7872_v47 = vld [vmem:[%s10280_s6 + $0x8] sm:$0xff]  }
 0x1a9   : > { %v2253_v23 = vmax.f32 %v2251_v8, %v2252_v12  ;;  %v7367_v25 = vpack.c.bf16 %v2239_v13, %v2239_v13  ;;  %v2258_v54 = vmax.f32 %v2256_v9, %v2257_v21  ;;  %v2264_v26 = vrot.slane %v2263_v15, 2  ;;  %v7651_v13 = vpop.f32.mrf.mxu1  ;;  %v7864_v12 = vld [vmem:[%s10280_s6 + $0x18] sm:$0xff]  }
 0x1aa   : > { %v7368_v31 = vpack.c.bf16 %v2246_v17, %v2246_v17  ;;  %v2751_v34 = vunpack.c.l.b16 %v7366_v18  ;;  %v2271_v37 = vrot.slane %v2270_v19, 2  ;;  %v2277_v40 = vmax.f32 %v2275_v33, %v2276_v22  ;;  %v7867_v18 = vld [vmem:[%s10280_s6 + $0x50] sm:$0xff]  }
 0x1ab   : > { %v7369_v48 = vpack.c.bf16 %v2253_v23, %v2253_v23  ;;  %v2752_v41 = vunpack.c.l.b16 %v7367_v25  ;;  %v2259_v42 = vrot.slane %v2258_v54, 1  ;;  %v2265_v20 = vmax.f32 %v2263_v15, %v2264_v26  ;;  %v2893_v26 = vld [vmem:[#allocation2 + $0x30] sm:$0xf]  ;;  %7507 = vmatpush3.bf16.msra.mxu0 %v7864_v12 }
 0x1ac   : > { %v2753_v45 = vunpack.c.l.b16 %v7368_v31  ;;  %v2272_v46 = vmax.f32 %v2270_v19, %v2271_v37  ;;  %v2278_v50 = vrot.slane %v2277_v40, 2  ;;  %v1581_v53 = vsel %vm1544_vm8, %v1536_v60, -inf  ;;  %v2423_v31 = vld [vmem:[#allocation2 + $0x38] sm:$0x1]  ;;  %7508 = vmatprep.subr.bf16.mxu0 %v7867_v18 }
 0x1ad   : > { %v2754_v56 = vunpack.c.l.b16 %v7369_v48  ;;  %v2811_v32 = vsel %vm2775_vm10, %v2752_v41, %v2751_v34  ;;  %v2260_v57 = vmax.f32 %v2258_v54, %v2259_v42  ;;  %v2266_v59 = vrot.slane %v2265_v20, 1  ;;  %v1484_v48 = vpop.f32.mrf.mxu1  ;;  %v7868_v41 = vld [vmem:[%s10280_s6 + $0x10] sm:$0xff]  }
 0x1ae   : > { %v2812_v44 = vsel %vm2777_vm11, %v2753_v45, %v2811_v32  ;;  %v2273_v51 = vrot.slane %v2272_v46, 1  ;;  %v2279_v62 = vmax.f32 %v2277_v40, %v2278_v50  ;;  %v1583_v63 = vmax.f32 %v1581_v53, %v8918_v49  ;;  %v7869_v42 = vld [vmem:[%s10280_s6 + $0xf0] sm:$0xff]   ;;  %v7871_v50 = vld [vmem:[%s10280_s6 + $0x48] sm:$0xff]  }
 0x1af   : > { %v2267_v0 = vmax.f32 %v2265_v20, %v2266_v59  ;;  %v7370_v60 = vpack.c.bf16 %v2260_v57, %v2260_v57  ;;  %v2813_v1 = vsel %vm2779_vm12, %v2754_v56, %v2812_v44  ;;  %v6970_v2 = vcombine.low %v2935_v55, %v2935_v55  ;;  %v7870_v20 = vld [vmem:[%s10280_s6 + $0xb0] sm:$0xff]   ;;  %v2449_v57 = vld [vmem:[#allocation2 + $0x3c] sm:$0x1]  ;;  %7540 = vmatprep.subr.bf16.mxu1 %v7869_v42 }
 0x1b0   : > { %v2274_v4 = vmax.f32 %v2272_v46, %v2273_v51  ;;  %v2280_v5 = vrot.slane %v2279_v62, 1  ;;  %v1813_v7 = vcombine.high %v1583_v63, %v1583_v63  ;;  %v1820_v49 = vrot.slane %v1583_v63, %v8688_v6  ;;  %7541 = vmatpush3.bf16.msra.mxu1 %v7870_v20  ;;  %7509 = vmatpush3.bf16.msra.mxu0 %v7868_v41 }
 0x1b1   : > { %v7371_v8 = vpack.c.bf16 %v2267_v0, %v2267_v0  ;;  %v2755_v9 = vunpack.c.l.b16 %v7370_v60  ;;  %v8971_v3 = vcombine.low %v2935_v55, %v8968_v58  ;;  %3152 = vrot.lane.b32.xlu0 %v6970_v2, %s8284_s22  ;;  %v10301_v10 = vmov 0   ;;  %7510 = vmatprep.subr.bf16.mxu0 %v7871_v50  ;;  %v7873_v50 = vld [vmem:[%s10280_s6 + $0xe8] sm:$0xff]  }
 0x1b2   : > { %v2281_v52 = vmax.f32 %v2279_v62, %v2280_v5  ;;  %v7372_v61 = vpack.c.bf16 %v2274_v4, %v2274_v4  ;;  %v1827_v11 = vrot.slane %v1813_v7, %v8688_v6  ;;  %v1828_v33 = vcombine.high %v1820_v49, %v1820_v49  ;;  %2395 = vst.msk [vmem:[#allocation2] sm:$0xf] %vm2394_vm0, %v10301_v10 }
 0x1b3   : > { %2397 = vst.msk [vmem:[#allocation2 + $0x4] sm:$0x1] %vm2396_vm3, %v10301_v10  ;;  %2400 = vst.msk [vmem:[#allocation2 + $0x4c] sm:$0x1] %vm2396_vm3, %v10301_v10  ;;  %v2756_v21 = vunpack.c.l.b16 %v7371_v8  ;;  %v2814_v15 = vsel %vm2781_vm13, %v2755_v9, %v2813_v1  ;;  %v2282_v17 = vsel %vm1945_vm9, %v1820_v49, -inf  ;;  %v1493_v32 = vadd.f32 %v8886_v39, %v7651_v13  ;;  %7542 = vmatprep.subr.bf16.mxu1 %v7873_v50 }
 0x1b4   : > { %2399 = vst.msk [vmem:[#allocation2 + $0x48] sm:$0xf] %vm2394_vm0, %v10301_v10  ;;  %4359 = vst [vmem:[#allocation3] sm:$0x7] %v10301_v10  ;;  %v2757_v19 = vunpack.c.l.b16 %v7372_v61  ;;  %v7395_v22 = vpack.c.bf16 %v2281_v52, %v2281_v52  ;;  %v1829_v23 = vcombine.high %v1827_v11, %v1827_v11  ;;  %v2283_v25 = vrot.slane %v2282_v17, 4  ;;  %7511 = vmatpush3.bf16.msra.mxu0 %v7872_v47 }
 0x1b5   : > { %4361 = vst [vmem:[#allocation3 + $0x14] sm:$0x7] %v10301_v10  ;;  %v2815_v54 = vsel %vm2783_vm14, %v2756_v21, %v2814_v15  ;;  %v2289_v28 = vsel %vm1945_vm9, %v1828_v33, -inf  ;;  %v2296_v29 = vsel %vm1945_vm9, %v1827_v11, -inf  ;;  %v1485_v63 = vadd.f32 %v8886_v39, %v1484_v48  ;;  %v2951_v8 = vld [vmem:[#allocation2 + $0x8] sm:$0xe] }
 0x1b6   : > { %v2816_v34 = vsel %vm2785_vm15, %v2757_v19, %v2815_v54  ;;  %v2897_v37 = vsel %vm8654_vm7, %v7395_v22, %v2896_v16  ;;  %v2284_v40 = vmax.f32 %v2282_v17, %v2283_v25  ;;  %v2290_v35 = vrot.slane %v2289_v28, 4  ;;  %v7654_v19 = vpop.f32.mrf.mxu1 }
 0x1b7   : > { %v2839_v43 = vpack.c.b16 %v2816_v34, %v2816_v34  ;;  %2898 = vst [vmem:[#allocation2 + $0x34] sm:$0x1] %v2897_v37  ;;  %v2297_v45 = vrot.slane %v2296_v29, 4  ;;  %v2303_v46 = vsel %vm1945_vm9, %v1829_v23, -inf  ;;  %v2424_v30 = vsel %vm8654_vm7, 0, %v2423_v31 }
 0x1b8   : > { %v2285_v53 = vrot.slane %v2284_v40, 2  ;;  %v2291_v55 = vmax.f32 %v2289_v28, %v2290_v35  ;;  %v2304_v56 = vrot.slane %v2303_v46, 4  ;;  %2425 = vst [vmem:[#allocation2 + $0x38] sm:$0x1] %v2424_v30  ;;  %v1539_v5 = vmax.f32 %v1493_v32, 0.0  ;;  %v7877_v30 = vld [vmem:[%s10280_s6] sm:$0xff]  }
 0x1b9   : > { %v2894_v59 = vsel %vm8748_vm1, %v2839_v43, %v2893_v26  ;;  %v2298_v44 = vmax.f32 %v2296_v29, %v2297_v45  ;;  %v9015_v51 = vld [vmem:[#allocation2] sm:$0xf]  ;;  %v1537_v7 = vmax.f32 %v1485_v63, 0.0  ;;  %v2450_v49 = vsel %vm8646_vm5, 0, %v2449_v57 }
 0x1ba   : > { %v9017_v62 = vld [vmem:[#allocation2 + $0x4] sm:$0x1]  ;;  %2895 = vst [vmem:[#allocation2 + $0x30] sm:$0xf] %v2894_v59  ;;  %v2286_v0 = vmax.f32 %v2284_v40, %v2285_v53  ;;  %v2292_v60 = vrot.slane %v2291_v55, 2  ;;  %v2305_v1 = vmax.f32 %v2303_v46, %v2304_v56  ;;  %v1585_v12 = vsel %vm1544_vm8, %v1539_v5, -inf }
 0x1bb   : > { %v6954_v2 = vcombine.low %v9015_v51, %v9017_v62  ;;  %v2299_v4 = vrot.slane %v2298_v44, 2  ;;  %2451 = vst [vmem:[#allocation2 + $0x3c] sm:$0x1] %v2450_v49  ;;  %v1584_v21 = vsel %vm1544_vm8, %v1537_v7, -inf  ;;  %v6986_v25 = vcombine.low %v2951_v8, %v8968_v58  ;;  %v7874_v53 = vld [vmem:[%s10280_s6 + $0xa8] sm:$0xff]   ;;  %v7876_v63 = vld [vmem:[%s10280_s6 + $0x40] sm:$0xff]  }
 0x1bc   : > { %v2287_v9 = vrot.slane %v2286_v0, 1  ;;  %v2293_v52 = vmax.f32 %v2291_v55, %v2292_v60  ;;  %v2306_v61 = vrot.slane %v2305_v1, 2  ;;  %v1586_v18 = vmax.f32 %v1584_v21, %v1585_v12  ;;  %v9044_v59 = vld [vmem:[#allocation2 + $0x8] sm:$0xf]  ;;  %v9056_v7 = vld [vmem:[#allocation2 + $0xc] sm:$0x1]  ;;  %7543 = vmatpush3.bf16.msra.mxu1 %v7874_v53  ;;  %7512 = vmatprep.subr.bf16.mxu0 %v7876_v63 }
 0x1bd   : > { %v3025_v11 = vshrl.u32 %v6954_v2, 16  ;;  %v2300_v33 = vmax.f32 %v2298_v44, %v2299_v4  ;;  %v3027_v13 = vshll.u32 %v6954_v2, 16  ;;  %v1506_v54 = vadd.f32 %v8886_v39, %v7654_v19  ;;  %v1497_v44 = vpop.f32.mrf.mxu1  ;;  %7513 = vmatpush3.bf16.msra.mxu0 %v7877_v30 }
 0x1be   : > { %v2288_v15 = vmax.f32 %v2286_v0, %v2287_v9  ;;  %v2294_v16 = vrot.slane %v2293_v52, 1  ;;  %v2307_v17 = vmax.f32 %v2305_v1, %v2306_v61  ;;  %v1830_v31 = vcombine.high %v1586_v18, %v1586_v18  ;;  %v2936_v61 = vld [vmem:[#allocation2 + $0x10] sm:$0xf]  ;;  %7656 = vmatprep.subr.bf16.mxu0 %v9185_v27 }
 0x1bf   : > { %v2301_v22 = vrot.slane %v2300_v33, 1  ;;  %v3029_v23 = vrot.slane %v3027_v13, 1  ;;  %v1837_v40 = vrot.slane %v1586_v18, %v8688_v6  ;;  %v3272_v35 = vrot.slane %v6986_v25, 1 }
 0x1c0   : > { %v2295_v26 = vmax.f32 %v2293_v52, %v2294_v16  ;;  %v2308_v28 = vrot.slane %v2307_v17, 1  ;;  %v7374_v29 = vpack.c.bf16 %v2288_v15, %v2288_v15  ;;  %v1844_v20 = vrot.slane %v1830_v31, %v8688_v6  ;;  %v7655_v16 = vpop.f32.mrf.mxu1 }
 0x1c1   : > { %v2302_v34 = vmax.f32 %v2300_v33, %v2301_v22  ;;  %v3030_v37 = vor.u32 %v3029_v23, %v3025_v11  ;;  %v1845_v58 = vcombine.high %v1837_v40, %v1837_v40  ;;  %v2310_v45 = vsel %vm1945_vm9, %v1837_v40, -inf  ;;  %3280 = vrot.lane.b32.xlu0 %v3272_v35, %s8284_s22  ;;  %v7878_v11 = vld [vmem:[%s10280_s6 + $0xe0] sm:$0xff]  }
 0x1c2   : > { %v2309_v48 = vmax.f32 %v2307_v17, %v2308_v28  ;;  %v7375_v41 = vpack.c.bf16 %v2295_v26, %v2295_v26  ;;  %v2759_v42 = vunpack.c.l.b16 %v7374_v29  ;;  %v1542_v46 = vmax.f32 %v1506_v54, 0.0  ;;  %v7879_v33 = vld [vmem:[%s10280_s6 + $0xa0] sm:$0xff]   ;;  %7544 = vmatprep.subr.bf16.mxu1 %v7878_v11  ;;  %v2902_v11 = vld [vmem:[#allocation2 + $0x3c] sm:$0x1] }
 0x1c3   : > { %v7376_v43 = vpack.c.bf16 %v2302_v34, %v2302_v34  ;;  %3080 = vrot.lane.b32.xlu1 %v3030_v37, %s8284_s22  ;;  %v1846_v32 = vcombine.high %v1844_v20, %v1844_v20  ;;  %v2311_v57 = vrot.slane %v2310_v45, 4  ;;  %v2317_v60 = vsel %vm1945_vm9, %v1845_v58, -inf  ;;  %7545 = vmatpush3.bf16.msra.mxu1 %v7879_v33  ;;  %v2944_v37 = vld [vmem:[#allocation2 + $0x14] sm:$0x1] }
 0x1c4   : > { %v7377_v55 = vpack.c.bf16 %v2309_v48, %v2309_v48  ;;  %v2760_v56 = vunpack.c.l.b16 %v7375_v41  ;;  %v2324_v1 = vsel %vm1945_vm9, %v1844_v20, -inf  ;;  %v2318_v4 = vrot.slane %v2317_v60, 4  ;;  %v2952_v41 = vld [vmem:[#allocation2 + $0x10] sm:$0xe] }
 0x1c5   : > { %v2761_v0 = vunpack.c.l.b16 %v7376_v43  ;;  %v2312_v47 = vmax.f32 %v2310_v45, %v2311_v57  ;;  %v1588_v5 = vsel %vm1544_vm8, %v1542_v46, -inf  ;;  %v2325_v8 = vrot.slane %v2324_v1, 4 }
 0x1c6   : > { %v2817_v2 = vsel %vm2775_vm10, %v2760_v56, %v2759_v42  ;;  %v2762_v49 = vunpack.c.l.b16 %v7377_v55  ;;  %v2331_v9 = vsel %vm1945_vm9, %v1846_v32, -inf  ;;  %v6955_v52 = vcombine.low %v9044_v59, %v9056_v7  ;;  %v1500_v56 = vpop.f32.mrf.mxu1 }
 0x1c7   : > { %v2818_v13 = vsel %vm2777_vm11, %v2761_v0, %v2817_v2  ;;  %v2313_v12 = vrot.slane %v2312_v47, 2  ;;  %v2319_v21 = vmax.f32 %v2317_v60, %v2318_v4  ;;  %v2332_v15 = vrot.slane %v2331_v9, 4 }
 0x1c8   : > { %v2326_v17 = vmax.f32 %v2324_v1, %v2325_v8  ;;  %v3032_v18 = vshrl.u32 %v6955_v52, 16  ;;  %v3034_v19 = vshll.u32 %v6955_v52, 16  ;;  %v1498_v22 = vadd.f32 %v8886_v39, %v1497_v44 }
 0x1c9   : > { %v2314_v23 = vmax.f32 %v2312_v47, %v2313_v12  ;;  %v2320_v25 = vrot.slane %v2319_v21, 2  ;;  %v2333_v54 = vmax.f32 %v2331_v9, %v2332_v15  ;;  %v6971_v26 = vcombine.low %v2936_v61, %v2936_v61 }
 0x1ca   : > { %v2327_v28 = vrot.slane %v2326_v17, 2  ;;  %v3036_v29 = vrot.slane %v3034_v19, 1  ;;  %v1540_v31 = vmax.f32 %v1498_v22, 0.0  ;;  %v1509_v34 = vadd.f32 %v8886_v39, %v7655_v16 }
 0x1cb   : > { %v2315_v40 = vrot.slane %v2314_v23, 1  ;;  %v2321_v35 = vmax.f32 %v2319_v21, %v2320_v25  ;;  %v2334_v48 = vrot.slane %v2333_v54, 2  ;;  %3154 = vrot.lane.b32.xlu0 %v6971_v26, %s8284_s22  ;;  %v9071_v42 = vcombine.low %v2936_v61, %v2944_v37 }
 0x1cc   : > { %v2328_v20 = vmax.f32 %v2326_v17, %v2327_v28  ;;  %v3037_v43 = vor.u32 %v3036_v29, %v3032_v18  ;;  %v1587_v58 = vsel %vm1544_vm8, %v1540_v31, -inf  ;;  %v1543_v45 = vmax.f32 %v1509_v34, 0.0  ;;  %v2426_v28 = vld [vmem:[#allocation2 + $0x40] sm:$0x1]  ;;  %v2452_v29 = vld [vmem:[#allocation2 + $0x44] sm:$0x1] }
 0x1cd   : > { %v2316_v46 = vmax.f32 %v2314_v23, %v2315_v40  ;;  %v2322_v50 = vrot.slane %v2321_v35, 1  ;;  %v2335_v53 = vmax.f32 %v2333_v54, %v2334_v48  ;;  %v1589_v55 = vmax.f32 %v1587_v58, %v1588_v5  ;;  %v2899_v34 = vld [vmem:[#allocation2 + $0x38] sm:$0xf] }
 0x1ce   : > { %v2329_v32 = vrot.slane %v2328_v20, 1  ;;  %v2819_v57 = vsel %vm2779_vm12, %v2762_v49, %v2818_v13  ;;  %3082 = vrot.lane.b32.xlu1 %v3037_v43, %s8284_s22  ;;  %v1591_v44 = vsel %vm1544_vm8, %v1543_v45, -inf  ;;  %v6987_v63 = vcombine.low %v2952_v41, %v2944_v37 }
 0x1cf   : > { %v2323_v30 = vmax.f32 %v2321_v35, %v2322_v50  ;;  %v2336_v0 = vrot.slane %v2335_v53, 1  ;;  %v7378_v60 = vpack.c.bf16 %v2316_v46, %v2316_v46  ;;  %v1847_v1 = vcombine.high %v1589_v55, %v1589_v55 }
 0x1d0   : > { %v2330_v2 = vmax.f32 %v2328_v20, %v2329_v32  ;;  %v1854_v47 = vrot.slane %v1589_v55, %v8688_v6  ;;  %v3273_v4 = vrot.slane %v6987_v63, 1  ;;  %v1501_v8 = vadd.f32 %v8886_v39, %v1500_v56 }
 0x1d1   : > { %v2337_v5 = vmax.f32 %v2335_v53, %v2336_v0  ;;  %v7379_v9 = vpack.c.bf16 %v2323_v30, %v2323_v30  ;;  %v2763_v52 = vunpack.c.l.b16 %v7378_v60  ;;  %v1861_v49 = vrot.slane %v1847_v1, %v8688_v6  ;;  %v9095_v53 = vld [vmem:[#allocation2 + $0x10] sm:$0xf]  ;;  %v9100_v0 = vld [vmem:[#allocation2 + $0x14] sm:$0x1] }
 0x1d2   : > { %v7380_v61 = vpack.c.bf16 %v2330_v2, %v2330_v2  ;;  %v1862_v33 = vcombine.high %v1854_v47, %v1854_v47  ;;  %v2338_v13 = vsel %vm1945_vm9, %v1854_v47, -inf  ;;  %3282 = vrot.lane.b32.xlu1 %v3273_v4, %s8284_s22  ;;  %v1541_v12 = vmax.f32 %v1501_v8, 0.0 }
 0x1d3   : > { %v2764_v21 = vunpack.c.l.b16 %v7379_v9  ;;  %v2820_v15 = vsel %vm2781_vm13, %v2763_v52, %v2819_v57  ;;  %v7396_v16 = vpack.c.bf16 %v2337_v5, %v2337_v5  ;;  %v1863_v17 = vcombine.high %v1861_v49, %v1861_v49 }
 0x1d4   : > { %v2765_v18 = vunpack.c.l.b16 %v7380_v61  ;;  %v2339_v39 = vrot.slane %v2338_v13, 4  ;;  %v2345_v19 = vsel %vm1945_vm9, %v1862_v33, -inf  ;;  %v2352_v22 = vsel %vm1945_vm9, %v1861_v49, -inf }
 0x1d5   : > { %v2821_v23 = vsel %vm2783_vm14, %v2764_v21, %v2820_v15  ;;  %v2903_v25 = vsel %vm8654_vm7, %v7396_v16, %v2902_v11  ;;  %v2346_v54 = vrot.slane %v2345_v19, 4  ;;  %v2353_v26 = vrot.slane %v2352_v22, 4 }
 0x1d6   : > { %v2822_v31 = vsel %vm2785_vm15, %v2765_v18, %v2821_v23  ;;  %2904 = vst [vmem:[#allocation2 + $0x3c] sm:$0x1] %v2903_v25  ;;  %v2340_v37 = vmax.f32 %v2338_v13, %v2339_v39  ;;  %v2359_v40 = vsel %vm1945_vm9, %v1863_v17, -inf  ;;  %v1590_v35 = vsel %vm1544_vm8, %v1541_v12, -inf  ;;  %v7880_v18 = vld [vmem:[%s10280_s6 + $0xd8] sm:$0xff]  }
 0x1d7   : > { %v2841_v48 = vpack.c.b16 %v2822_v31, %v2822_v31  ;;  %v2347_v41 = vmax.f32 %v2345_v19, %v2346_v54  ;;  %v2354_v20 = vmax.f32 %v2352_v22, %v2353_v26  ;;  %v2360_v43 = vrot.slane %v2359_v40, 4  ;;  %v7881_v39 = vld [vmem:[%s10280_s6 + $0x98] sm:$0xff]   ;;  %v9117_v31 = vld [vmem:[#allocation2 + $0x10] sm:$0xf]  ;;  %7546 = vmatprep.subr.bf16.mxu1 %v7880_v18 }
 0x1d8   : > { %v2341_v58 = vrot.slane %v2340_v37, 2  ;;  %v1592_v45 = vmax.f32 %v1590_v35, %v1591_v44  ;;  %v2427_v46 = vsel %vm8654_vm7, 0, %v2426_v28  ;;  %v2453_v50 = vsel %vm8646_vm5, 0, %v2452_v29  ;;  %7547 = vmatpush3.bf16.msra.mxu1 %v7881_v39 }
 0x1d9   : > { %v2900_v55 = vsel %vm8748_vm1, %v2841_v48, %v2899_v34  ;;  %v2348_v56 = vrot.slane %v2347_v41, 2  ;;  %v2355_v32 = vrot.slane %v2354_v20, 2  ;;  %v2361_v57 = vmax.f32 %v2359_v40, %v2360_v43  ;;  %2428 = vst [vmem:[#allocation2 + $0x40] sm:$0x1] %v2427_v46  ;;  %2454 = vst [vmem:[#allocation2 + $0x44] sm:$0x1] %v2453_v50 }
 0x1da   : > { %2901 = vst [vmem:[#allocation2 + $0x38] sm:$0xf] %v2900_v55  ;;  %v2342_v63 = vmax.f32 %v2340_v37, %v2341_v58  ;;  %v1864_v30 = vcombine.high %v1592_v45, %v1592_v45  ;;  %v1871_v44 = vrot.slane %v1592_v45, %v8688_v6  ;;  %v9104_v2 = vcombine.low %v9095_v53, %v9100_v0  ;;  %v7882_v48 = vld [vmem:[%s10280_s6 + $0xd0] sm:$0xff]  }
 0x1db   : > { %v2349_v60 = vmax.f32 %v2347_v41, %v2348_v56  ;;  %v2356_v24 = vmax.f32 %v2354_v20, %v2355_v32  ;;  %v2362_v1 = vrot.slane %v2361_v57, 2  ;;  %v9122_v45 = vld [vmem:[#allocation2 + $0x14] sm:$0x1]  ;;  %7548 = vmatprep.subr.bf16.mxu1 %v7882_v48  ;;  %vm4378_vm3 = vsmask.f32 7946 }
 0x1dc   : > { %v2343_v47 = vrot.slane %v2342_v63, 1  ;;  %v1878_v4 = vrot.slane %v1864_v30, %v8688_v6  ;;  %v1879_v8 = vcombine.high %v1871_v44, %v1871_v44  ;;  %v2366_v5 = vsel %vm1945_vm9, %v1871_v44, -inf  ;;  %v7883_v46 = vld [vmem:[%s10280_s6 + $0x90] sm:$0xff]   ;;  %vm9411_vm5 = vmand %vm2775_vm10, %vm4378_vm3 }
 0x1dd   : > { %v2350_v9 = vrot.slane %v2349_v60, 1  ;;  %v2357_v52 = vrot.slane %v2356_v24, 1  ;;  %v2363_v49 = vmax.f32 %v2361_v57, %v2362_v1  ;;  %v2367_v61 = vrot.slane %v2366_v5, 4  ;;  %7549 = vmatpush3.bf16.msra.mxu1 %v7883_v46  ;;  %v2973_v14 = vld [vmem:[#allocation2 + $0x3c] sm:$0x1] }
 0x1de   : > { %v2344_v11 = vmax.f32 %v2342_v63, %v2343_v47  ;;  %v1880_v33 = vcombine.high %v1878_v4, %v1878_v4  ;;  %v2373_v13 = vsel %vm1945_vm9, %v1879_v8, -inf  ;;  %v2380_v12 = vsel %vm1945_vm9, %v1878_v4, -inf  ;;  %v9132_v4 = vld [vmem:[#allocation2 + $0x18] sm:$0xf]  ;;  %v7885_v8 = vld [vmem:[%s10280_s6 + $0xc8] sm:$0xff]  }
 0x1df   : > { %v2351_v21 = vmax.f32 %v2349_v60, %v2350_v9  ;;  %v2358_v15 = vmax.f32 %v2356_v24, %v2357_v52  ;;  %v2364_v16 = vrot.slane %v2363_v49, 1  ;;  %v2368_v17 = vmax.f32 %v2366_v5, %v2367_v61  ;;  %v7886_v5 = vld [vmem:[%s10280_s6 + $0x88] sm:$0xff]   ;;  %v9141_v61 = vld [vmem:[#allocation2 + $0x1c] sm:$0x1]  ;;  %7550 = vmatprep.subr.bf16.mxu1 %v7885_v8 }
 0x1e0   : > { %v7382_v19 = vpack.c.bf16 %v2344_v11, %v2344_v11  ;;  %v2374_v22 = vrot.slane %v2373_v13, 4  ;;  %v2381_v23 = vrot.slane %v2380_v12, 4  ;;  %v2387_v25 = vsel %vm1945_vm9, %v1880_v33, -inf }
 0x1e1   : > { %v2365_v54 = vmax.f32 %v2363_v49, %v2364_v16  ;;  %v7383_v26 = vpack.c.bf16 %v2351_v21, %v2351_v21  ;;  %v7384_v28 = vpack.c.bf16 %v2358_v15, %v2358_v15  ;;  %v2369_v29 = vrot.slane %v2368_v17, 2  ;;  %v9143_v21 = vld [vmem:[#allocation2 + $0x18] sm:$0xf]  ;;  %7551 = vmatpush3.bf16.msra.mxu1 %v7886_v5 }
 0x1e2   : > { %v2767_v34 = vunpack.c.l.b16 %v7382_v19  ;;  %v2375_v37 = vmax.f32 %v2373_v13, %v2374_v22  ;;  %v2382_v40 = vmax.f32 %v2380_v12, %v2381_v23  ;;  %v2388_v35 = vrot.slane %v2387_v25, 4 }
 0x1e3   : > { %v7385_v41 = vpack.c.bf16 %v2365_v54, %v2365_v54  ;;  %v2768_v20 = vunpack.c.l.b16 %v7383_v26  ;;  %v2769_v43 = vunpack.c.l.b16 %v7384_v28  ;;  %v2370_v58 = vmax.f32 %v2368_v17, %v2369_v29  ;;  %v7888_v54 = vld [vmem:[%s10280_s6 + $0x80] sm:$0xff]  }
 0x1e4   : > { %v2376_v50 = vrot.slane %v2375_v37, 2  ;;  %v2383_v55 = vrot.slane %v2382_v40, 2  ;;  %v2389_v56 = vmax.f32 %v2387_v25, %v2388_v35  ;;  %v6994_v32 = vcombine.low %v9117_v31, %v9122_v45  ;;  %v9151_v25 = vld [vmem:[#allocation2 + $0x1c] sm:$0x1] }
 0x1e5   : > { %v2770_v57 = vunpack.c.l.b16 %v7385_v41  ;;  %v2823_v63 = vsel %vm2775_vm10, %v2768_v20, %v2767_v34  ;;  %v2371_v30 = vrot.slane %v2370_v58, 1  ;;  %v3041_v44 = vshll.u32 %v9104_v2, 16 }
 0x1e6   : > { %v2824_v60 = vsel %vm2777_vm11, %v2769_v43, %v2823_v63  ;;  %v2377_v24 = vmax.f32 %v2375_v37, %v2376_v50  ;;  %v2384_v1 = vmax.f32 %v2382_v40, %v2383_v55  ;;  %v2390_v47 = vrot.slane %v2389_v56, 2  ;;  %v9159_v37 = vld [vmem:[#allocation2 + $0x20] sm:$0xf]  ;;  %v2908_v43 = vld [vmem:[#allocation2 + $0x44] sm:$0x1] }
 0x1e7   : > { %v2372_v9 = vmax.f32 %v2370_v58, %v2371_v30  ;;  %v3039_v52 = vshrl.u32 %v9104_v2, 16  ;;  %v3043_v49 = vrot.slane %v3041_v44, 1  ;;  %v3339_v12 = vshll.u32 %v6994_v32, 16  ;;  %v7887_v2 = vld [vmem:[%s10280_s6 + $0xc0] sm:$0xff]   ;;  %v2937_v63 = vld [vmem:[#allocation2 + $0x18] sm:$0xf] }
 0x1e8   : > { %v2378_v11 = vrot.slane %v2377_v24, 1  ;;  %v2385_v33 = vrot.slane %v2384_v1, 1  ;;  %v2391_v13 = vmax.f32 %v2389_v56, %v2390_v47  ;;  %v2825_v16 = vsel %vm2779_vm12, %v2770_v57, %v2824_v60  ;;  %7552 = vmatprep.subr.bf16.mxu1 %v7887_v2  ;;  %v9162_v55 = vld [vmem:[#allocation2 + $0x24] sm:$0x1]  ;;  %v9166_v44 = vld [vmem:[#allocation2 + $0x28] sm:$0xf] }
 0x1e9   : > { %v7386_v15 = vpack.c.bf16 %v2372_v9, %v2372_v9  ;;  %v3044_v17 = vor.u32 %v3043_v49, %v3039_v52  ;;  %v6957_v18 = vcombine.low %v9132_v4, %v9141_v61  ;;  %v3341_v23 = vrot.slane %v3339_v12, 1  ;;  %7553 = vmatpush3.bf16.msra.mxu1 %v7888_v54  ;;  %v9174_v9 = vld [vmem:[#allocation2 + $0x2c] sm:$0x1]  ;;  %v2905_v49 = vld [vmem:[#allocation2 + $0x40] sm:$0xf] }
 0x1ea   : > { %v2379_v39 = vmax.f32 %v2377_v24, %v2378_v11  ;;  %v2386_v19 = vmax.f32 %v2384_v1, %v2385_v33  ;;  %v2392_v22 = vrot.slane %v2391_v13, 1  ;;  %v3337_v28 = vshrl.u32 %v6994_v32, 16  ;;  %v9169_v1 = vld [vmem:[#allocation2 + $0x30] sm:$0xf]  ;;  %v9180_v12 = vld [vmem:[#allocation2 + $0x34] sm:$0x1] }
 0x1eb   : > { %v2771_v26 = vunpack.c.l.b16 %v7386_v15  ;;  %3084 = vrot.lane.b32.xlu0 %v3044_v17, %s8284_s22  ;;  %v3048_v29 = vshll.u32 %v6957_v18, 16  ;;  %v6995_v34 = vcombine.low %v9143_v21, %v9151_v25  ;;  %v3046_v41 = vshrl.u32 %v6957_v18, 16 }
 0x1ec   : > { %v2393_v40 = vmax.f32 %v2391_v13, %v2392_v22  ;;  %v7387_v35 = vpack.c.bf16 %v2379_v39, %v2379_v39  ;;  %v7388_v48 = vpack.c.bf16 %v2386_v19, %v2386_v19  ;;  %v3342_v58 = vor.u32 %v3341_v23, %v3337_v28  ;;  %v9190_v19 = vld [vmem:[#allocation2 + $0x38] sm:$0xf]  ;;  %v9192_v22 = vld [vmem:[#allocation2 + $0x1c] sm:$0x1] }
 0x1ed   : > { %v2826_v20 = vsel %vm2781_vm13, %v2771_v26, %v2825_v16  ;;  %v3050_v46 = vrot.slane %v3048_v29, 1  ;;  %v3346_v50 = vshll.u32 %v6995_v34, 16  ;;  %v6958_v30 = vcombine.low %v9159_v37, %v9162_v55  ;;  %v2938_v26 = vld [vmem:[#allocation2 + $0x20] sm:$0xf] }
 0x1ee   : > { %v2772_v56 = vunpack.c.l.b16 %v7387_v35  ;;  %v2773_v32 = vunpack.c.l.b16 %v7388_v48  ;;  %v7397_v57 = vpack.c.bf16 %v2393_v40, %v2393_v40  ;;  %v6972_v11 = vcombine.low %v2937_v63, %v2937_v63  ;;  %v2978_v29 = vld [vmem:[#allocation2 + $0x20] sm:$0xe]  ;;  %v9198_v35 = vld [vmem:[#allocation2 + $0x3c] sm:$0x1] }
 0x1ef   : > { %3392 = vrot.lane.b32.xlu0 %v3342_v58, %s8284_s22  ;;  %v3051_v60 = vor.u32 %v3050_v46, %v3046_v41  ;;  %v3348_v24 = vrot.slane %v3346_v50, 1  ;;  %v3055_v5 = vshll.u32 %v6958_v30, 16  ;;  %v3344_v33 = vshrl.u32 %v6995_v34, 16  ;;  %v2939_v34 = vld [vmem:[#allocation2 + $0x28] sm:$0xf] }
 0x1f0   : > { %v2827_v47 = vsel %vm2783_vm14, %v2772_v56, %v2826_v20  ;;  %v2909_v8 = vsel %vm8654_vm7, %v7397_v57, %v2908_v43  ;;  %v6959_v13 = vcombine.low %v9166_v44, %v9174_v9  ;;  %v3053_v16 = vshrl.u32 %v6958_v30, 16  ;;  %v9200_v48 = vld [vmem:[#allocation2 + $0x20] sm:$0xf]  ;;  %v2970_v46 = vld [vmem:[#allocation2 + $0x24] sm:$0x1] }
 0x1f1   : > { %v2828_v52 = vsel %vm2785_vm15, %v2773_v32, %v2827_v47  ;;  %2910 = vst [vmem:[#allocation2 + $0x44] sm:$0x1] %v2909_v8  ;;  %3086 = vrot.lane.b32.xlu1 %v3051_v60, %s8284_s22  ;;  %v3057_v17 = vrot.slane %v3055_v5, 1  ;;  %v6960_v18 = vcombine.low %v9169_v1, %v9180_v12  ;;  %v3349_v2 = vor.u32 %v3348_v24, %v3344_v33  ;;  %v2979_v50 = vld [vmem:[#allocation2 + $0x28] sm:$0xe] }
 0x1f2   : > { %v2843_v15 = vpack.c.b16 %v2828_v52, %v2828_v52  ;;  %v3062_v39 = vshll.u32 %v6959_v13, 16  ;;  %v6961_v41 = vcombine.low %v9190_v19, %v9198_v35  ;;  %v9205_v20 = vcombine.low %v2937_v63, %v9192_v22  ;;  %v2971_v47 = vld [vmem:[#allocation2 + $0x2c] sm:$0x1]  ;;  %v9212_v5 = vld [vmem:[#allocation2 + $0x24] sm:$0x1] }
 0x1f3   : > { %3156 = vrot.lane.b32.xlu0 %v6972_v11, %s8284_s22  ;;  %v3058_v54 = vor.u32 %v3057_v17, %v3053_v16  ;;  %v3069_v28 = vshll.u32 %v6960_v18, 16  ;;  %v6973_v38 = vcombine.low %v2938_v26, %v2938_v26  ;;  %v3060_v43 = vshrl.u32 %v6959_v13, 16  ;;  %v9210_v63 = vld [vmem:[#allocation2 + $0x2c] sm:$0x1]  ;;  %v2940_v13 = vld [vmem:[#allocation2 + $0x30] sm:$0xf] }
 0x1f4   : > { %v2906_v23 = vsel %vm8748_vm1, %v2843_v15, %v2905_v49  ;;  %v3064_v40 = vrot.slane %v3062_v39, 1  ;;  %v6974_v56 = vcombine.low %v2939_v34, %v2939_v34  ;;  %v7004_v32 = vcombine.low %v2978_v29, %v2970_v46  ;;  %v9215_v49 = vld [vmem:[#allocation2 + $0x28] sm:$0xf]  ;;  %v2941_v15 = vld [vmem:[#allocation2 + $0x38] sm:$0xf] }
 0x1f5   : > { %2907 = vst [vmem:[#allocation2 + $0x40] sm:$0xf] %v2906_v23  ;;  %3394 = vrot.lane.b32.xlu1 %v3349_v2, %s8284_s22  ;;  %v3071_v58 = vrot.slane %v3069_v28, 1  ;;  %v3067_v30 = vshrl.u32 %v6960_v18, 16  ;;  %v6996_v60 = vcombine.low %v9200_v48, %v2970_v46  ;;  %v3076_v24 = vshll.u32 %v6961_v41, 16 }
 0x1f6   : > { %v3065_v57 = vor.u32 %v3064_v40, %v3060_v43  ;;  %v7005_v8 = vcombine.low %v2979_v50, %v2971_v47  ;;  %v9218_v11 = vcombine.low %v2939_v34, %v9210_v63  ;;  %v9221_v33 = vcombine.low %v2938_v26, %v9212_v5  ;;  %v9228_v23 = vld [vmem:[#allocation2 + $0x30] sm:$0xf]  ;;  %v9234_v26 = vld [vmem:[#allocation2 + $0x3c] sm:$0x1]  ;;  %v9241_v43 = vld [vmem:[#allocation2 + $0x34] sm:$0x1] }
 0x1f7   : > { %3088 = vrot.lane.b32.xlu0 %v3058_v54, %s8284_s22  ;;  %v3072_v52 = vor.u32 %v3071_v58, %v3067_v30  ;;  %v9223_v16 = vrot.slane %v7004_v32, 1  ;;  %v3353_v18 = vshll.u32 %v6996_v60, 16  ;;  %v3078_v2 = vrot.slane %v3076_v24, 1  ;;  %v9230_v54 = vld [vmem:[#allocation2 + $0x34] sm:$0x1] }
 0x1f8   : > { %v9225_v17 = vrot.slane %v7005_v8, 1  ;;  %v6975_v29 = vcombine.low %v2940_v13, %v2940_v13  ;;  %v3074_v34 = vshrl.u32 %v6961_v41, 16  ;;  %v6997_v40 = vcombine.low %v9215_v49, %v2971_v47  ;;  %v9243_v58 = vld [vmem:[#allocation2 + $0x44] sm:$0x1]  ;;  %v2953_v30 = vld [vmem:[#allocation2 + $0x18] sm:$0xe] }
 0x1f9   : > { %3158 = vrot.lane.b32.xlu1 %v6973_v38, %s8284_s22  ;;  %10336 = vst [vmem:[#allocation16_spill] sm:$0xff] %v9223_v16  ;;  %v9239_v38 = vcombine.low %v2941_v15, %v9234_v26  ;;  %v6998_v46 = vcombine.low %v9228_v23, %v9230_v54  ;;  %v9248_v50 = vcombine.low %v2940_v13, %v9241_v43  ;;  %v3355_v32 = vrot.slane %v3353_v18, 1 }
 0x1fa   : > { %10337 = vst [vmem:[#allocation17_spill] sm:$0xff] %v9225_v17  ;;  %v6976_v41 = vcombine.low %v2941_v15, %v2941_v15  ;;  %v3351_v24 = vshrl.u32 %v6996_v60, 16  ;;  %v3360_v47 = vshll.u32 %v6997_v40, 16  ;;  %v6988_v13 = vcombine.low %v2953_v30, %v9192_v22  ;;  %v9265_v30 = vld [vmem:[#allocation2 + $0x48] sm:$0xf] }
 0x1fb   : > { %3160 = vrot.lane.b32.xlu0 %v6974_v56, %s8284_s22  ;;  %10338 = vst [vmem:[#allocation18_spill] sm:$0xff] %v9239_v38  ;;  %v3367_v8 = vshll.u32 %v6998_v46, 16  ;;  %v3358_v22 = vshrl.u32 %v6997_v40, 16  ;;  %v3365_v6 = vshrl.u32 %v6998_v46, 16  ;;  %v2975_v38 = vld [vmem:[#allocation2 + $0x4c] sm:$0x1] }
 0x1fc   : > { %v2942_v39 = vld [vmem:[#allocation2 + $0x40] sm:$0xf]  ;;  %v3356_v10 = vor.u32 %v3355_v32, %v3351_v24  ;;  %v3362_v18 = vrot.slane %v3360_v47, 1  ;;  %v2977_v32 = vld [vmem:[#allocation2 + $0x18] sm:$0xe]  ;;  %v3274_v24 = vrot.slane %v6988_v13, 1  ;;  %v7001_v16 = vcombine.low %v9265_v30, %v2975_v38 }
 0x1fd   : > { %3090 = vrot.lane.b32.xlu1 %v3065_v57, %s8284_s22  ;;  %v9251_v56 = vcombine.low %v2942_v39, %v9243_v58  ;;  %v3079_v57 = vor.u32 %v3078_v2, %v3074_v34  ;;  %v9259_v28 = vld [vmem:[#allocation2 + $0x40] sm:$0xf]  ;;  %v6977_v15 = vcombine.low %v2942_v39, %v2942_v39  ;;  %v3369_v34 = vrot.slane %v3367_v8, 1  ;;  %v2980_v39 = vld [vmem:[#allocation2 + $0x30] sm:$0xe] }
 0x1fe   : > { %10340 = vst [vmem:[#allocation20_spill] sm:$0xff] %v9259_v28  ;;  %v2954_v2 = vld [vmem:[#allocation2 + $0x20] sm:$0xe]  ;;  %v2981_v47 = vld [vmem:[#allocation2 + $0x38] sm:$0xe]  ;;  %v7003_v13 = vcombine.low %v2977_v32, %v9151_v25  ;;  %vm4492_vm7 = vcmask 1042432  }
 0x1ff   : > { %3092 = vrot.lane.b32.xlu0 %v3072_v52, %s8284_s22  ;;  %10339 = vst [vmem:[#allocation19_spill] sm:$0xff] %v9251_v56  ;;  %v9255_v52 = vld [vmem:[#allocation2 + $0x38] sm:$0xf]  ;;  %v3363_v56 = vor.u32 %v3362_v18, %v3358_v22  ;;  %v3370_v17 = vor.u32 %v3369_v34, %v3365_v6  ;;  %v7006_v18 = vcombine.low %v2980_v39, %v9230_v54  ;;  %v2983_v22 = vld [vmem:[#allocation2 + $0x48] sm:$0xe] }
 0x200   : > { %v6999_v60 = vcombine.low %v9255_v52, %v2973_v14  ;;  %v9276_v46 = vrot.slane %v7003_v13, 1  ;;  %v7009_v32 = vcombine.low %v2983_v22, %v2975_v38 }
 0x201   : > { %3162 = vrot.lane.b32.xlu1 %v6975_v29, %s8284_s22  ;;  %v2974_v29 = vld [vmem:[#allocation2 + $0x44] sm:$0x1]  ;;  %v9282_v25 = vrot.slane %v7006_v18, 1 }
 0x202   : > { %v3374_v8 = vshll.u32 %v6999_v60, 16  ;;  %v3372_v54 = vshrl.u32 %v6999_v60, 16 }
 0x203   : > { %3164 = vrot.lane.b32.xlu0 %v6976_v41, %s8284_s22  ;;  %v7000_v41 = vcombine.low %v9259_v28, %v2974_v29  ;;  %v7002_v28 = vcombine.low %v2976_v36, %v9122_v45 }
 0x204   : > { %v3376_v6 = vrot.slane %v3374_v8, 1 }
 0x205   : > { %3094 = vrot.lane.b32.xlu1 %v3079_v57, %s8284_s22  ;;  %v2955_v57 = vld [vmem:[#allocation2 + $0x28] sm:$0xe]  ;;  %v3379_v8 = vshrl.u32 %v7000_v41, 16 }
 0x206   : > { %v6990_v40 = vcombine.low %v2955_v57, %v9210_v63  ;;  %v3388_v57 = vshll.u32 %v7001_v16, 16  ;;  %v3377_v13 = vor.u32 %v3376_v6, %v3372_v54  ;;  %v2928_v6 = vld [vmem:[#allocation2 + $0x8] sm:$0xe]  ;;  %v3195_v54 = vshll.u32 %v8971_v3, 16 }
 0x207   : > { %3396 = vrot.lane.b32.xlu0 %v3356_v10, %s8284_s22  ;;  %v6989_v10 = vcombine.low %v2954_v2, %v9212_v5  ;;  %v9274_v5 = vrot.slane %v7002_v28, 1  ;;  %v7007_v2 = vcombine.low %v2981_v47, %v2973_v14  ;;  %v9291_v47 = vrot.slane %v7009_v32, 1 }
 0x208   : > { %v3276_v28 = vrot.slane %v6990_v40, 1  ;;  %v3390_v18 = vrot.slane %v3388_v57, 1  ;;  %v3202_v57 = vshll.u32 %v9071_v42, 16 }
 0x209   : > { %3166 = vrot.lane.b32.xlu1 %v6977_v15, %s8284_s22  ;;  %v3381_v15 = vshll.u32 %v7000_v41, 16  ;;  %v3275_v36 = vrot.slane %v6989_v10, 1  ;;  %v7015_v45 = vcombine.low %v9274_v5, %v9276_v46  ;;  %v9284_v63 = vrot.slane %v7007_v2, 1  ;;  %v2957_v10 = vld [vmem:[#allocation2 + $0x38] sm:$0xe] }
 0x20a   : > { %v6992_v60 = vcombine.low %v2957_v10, %v9234_v26 }
 0x20b   : > { %3284 = vrot.lane.b32.xlu0 %v3274_v24, %s8284_s22  ;;  %v2982_v24 = vld [vmem:[#allocation2 + $0x40] sm:$0xe]  ;;  %v3383_v14 = vrot.slane %v3381_v15, 1  ;;  %v3386_v15 = vshrl.u32 %v7001_v16, 16 }
 0x20c   : > { %v7008_v34 = vcombine.low %v2982_v24, %v2974_v29  ;;  %v2958_v24 = vld [vmem:[#allocation2 + $0x40] sm:$0xe]  ;;  %v3278_v22 = vrot.slane %v6992_v60, 1  ;;  %v3204_v60 = vrot.slane %v3202_v57, 1 }
 0x20d   : > { %3398 = vrot.lane.b32.xlu1 %v3363_v56, %s8284_s22  ;;  %v2956_v56 = vld [vmem:[#allocation2 + $0x30] sm:$0xe]  ;;  %v3384_v40 = vor.u32 %v3383_v14, %v3379_v8  ;;  %v3391_v41 = vor.u32 %v3390_v18, %v3386_v15  ;;  %v2927_v16 = vld [vmem:[#allocation2] sm:$0xe] }
 0x20e   : > { %v9289_v39 = vrot.slane %v7008_v34, 1  ;;  %v6991_v29 = vcombine.low %v2956_v56, %v9241_v43  ;;  %v6993_v43 = vcombine.low %v2958_v24, %v9243_v58  ;;  %v6963_v34 = vcombine.low %v2928_v6, %v9056_v7 }
 0x20f   : > { %3400 = vrot.lane.b32.xlu0 %v3370_v17, %s8284_s22  ;;  %v7025_v17 = vcombine.low %v9282_v25, %v9284_v63  ;;  %v3193_v7 = vshrl.u32 %v8971_v3, 16  ;;  %v10346_v63 = vld [vmem:[#allocation20_spill] sm:$0xff] }
 0x210   : > { %v7030_v38 = vcombine.low %v9289_v39, %v9291_v47  ;;  %v3277_v2 = vrot.slane %v6991_v29, 1  ;;  %v3121_v58 = vrot.slane %v6963_v34, 1  ;;  %v3197_v29 = vrot.slane %v3195_v54, 1  ;;  %v4383_v47 = vld [vmem:[#allocation3 + $0x8] sm:$0x4] }
 0x211   : > { %3286 = vrot.lane.b32.xlu1 %v3275_v36, %s8284_s22  ;;  %v3279_v36 = vrot.slane %v6993_v43, 1  ;;  %v7964_v39 = vld [vmem:[%s10282_s8 + $0xd0] ss:$8 sps:$4 sm:$0xff]  }
 0x213   : > { %3288 = vrot.lane.b32.xlu0 %v3276_v28, %s8284_s22  ;;  %v6962_v28 = vcombine.low %v2927_v16, %v9017_v62 }
 0x215   : > { %3402 = vrot.lane.b32.xlu1 %v3377_v13, %s8284_s22  ;;  %v3120_v32 = vrot.slane %v6962_v28, 1  ;;  %v2929_v28 = vld [vmem:[#allocation2 + $0x10] sm:$0xe] }
 0x217   : > { %3404 = vrot.lane.b32.xlu0 %v3384_v40, %s8284_s22 }
 0x219   : > { %3290 = vrot.lane.b32.xlu1 %v3277_v2, %s8284_s22  ;;  %v3200_v2 = vshrl.u32 %v9071_v42, 16  ;;  %v7899_v42 = vld [vmem:[%s10280_s6 + $0x100] sm:$0xff]  }
 0x21b   : > { %3292 = vrot.lane.b32.xlu0 %v3278_v22, %s8284_s22  ;;  %v7894_v22 = vld [vmem:[%s10280_s6 + $0x110] sm:$0xff]   ;;  %v3205_v43 = vor.u32 %v3204_v60, %v3200_v2  ;;  %v2931_v60 = vld [vmem:[#allocation2 + $0x20] sm:$0xe] }
 0x21c   : > { %v6966_v2 = vcombine.low %v2931_v60, %v9162_v55 }
 0x21d   : > { %3406 = vrot.lane.b32.xlu1 %v3391_v41, %s8284_s22  ;;  %v3198_v41 = vor.u32 %v3197_v29, %v3193_v7 }
 0x221   : > { %3294 = vrot.lane.b32.xlu1 %v3279_v36, %s8284_s22  ;;  %s8225_s22 = scalar_lea.vmem %s8224_s18, 32 }
 0x222   : > { %p8227_p1 = scmp.lt.s32.totalorder %s8225_s22, %s8219_s21 }
 0x223   : > { %v3153_v26 = vpop.permute.xlu0 %3152 }
 0x224   : > { %v3466_v8 = vsel %vm1544_vm8, %v3120_v32, %v3153_v26  ;;  %v6964_v32 = vcombine.low %v2929_v28, %v9100_v0  ;;  %v2932_v0 = vld [vmem:[#allocation2 + $0x28] sm:$0xe]  ;;  %p8228_p2 = por %p8227_p1, %p8226_p0 }
 0x226   : > { %p8229_p3 = pnand %p8228_p2, %p8222_p13 }
 0x233   : > { %v3281_v56 = vpop.permute.xlu0 %3280 }
 0x235   : > { %v3081_v14 = vpop.permute.xlu1 %3080 }
 0x236   : > { %v3442_v40 = vsel %vm1544_vm8, %v9015_v51, %v3081_v14  ;;  %v3490_v51 = vsel %vm1544_vm8, %v3198_v41, %v3281_v56  ;;  %v3124_v41 = vrot.slane %v6966_v2, 1 }
 0x23d   : > { %v3155_v10 = vpop.permute.xlu0 %3154 }
 0x23e   : > { %v3469_v13 = vsel %vm1544_vm8, %v3121_v58, %v3155_v10 }
 0x23f   : > { %v7012_v62 = vcombine.low %v3466_v8, %v3469_v13  ;;  %v3122_v13 = vrot.slane %v6964_v32, 1 }
 0x240   : > { %v3083_v15 = vpop.permute.xlu1 %3082 }
 0x241   : > { %v3445_v18 = vsel %vm1544_vm8, %v9044_v59, %v3083_v15  ;;  %3983 = vmatprep.mubr.bf16.mxu0 %v7012_v62  ;;  %v7895_v59 = vld [vmem:[%s10280_s6 + $0x108] sm:$0xff]  }
 0x242   : > { %v7011_v24 = vcombine.low %v3442_v40, %v3445_v18 }
 0x244   : > { %v3283_v36 = vpop.permute.xlu1 %3282  ;;  %3984 = vmatmul.mubr.bf16.vlgmr.msra.gmra.mxu0 %v7011_v24  ;;  %v6967_v24 = vcombine.low %v2932_v0, %v9174_v9  ;;  %v3214_v0 = vshrl.u32 %v9221_v33, 16 }
 0x245   : > { %v3493_v26 = vsel %vm1544_vm8, %v3205_v43, %v3283_v36  ;;  %7657 = vmatpush3.bf16.msra.mxu0 %v9185_v27  ;;  %v2930_v27 = vld [vmem:[#allocation2 + $0x18] sm:$0xe] }
 0x246   : > { %v7013_v3 = vcombine.low %v3490_v51, %v3493_v26  ;;  %7658 = vmatprep.subr.bf16.mxu0 %v7894_v22  ;;  %v6965_v14 = vcombine.low %v2930_v27, %v9141_v61  ;;  %v3125_v43 = vrot.slane %v6967_v24, 1  ;;  %v2933_v26 = vld [vmem:[#allocation2 + $0x30] sm:$0xe]  ;;  %v3209_v27 = vshll.u32 %v9205_v20, 16 }
 0x248   : > { %v3123_v29 = vrot.slane %v6965_v14, 1 }
 0x249   : > { %7659 = vmatpush3.bf16.msra.mxu0 %v7894_v22 }
 0x24a   : > { %7660 = vmatprep.subr.bf16.mxu0 %v7895_v59 }
 0x24d   : > { %7661 = vmatpush3.bf16.msra.mxu0 %v7895_v59 }
 0x24e   : > { %7662 = vmatprep.subr.bf16.mxu0 %v7899_v42 }
 0x251   : > { %7663 = vmatpush3.bf16.msra.mxu0 %v7899_v42 }
 0x25d   : > { %v3085_v16 = vpop.permute.xlu0 %3084 }
 0x261   : > { %v3393_v6 = vpop.permute.xlu0 %3392 }
 0x262   : > { %v3514_v57 = vsel %vm1544_vm8, %v9117_v31, %v3393_v6  ;;  %v3448_v31 = vsel %vm1544_vm8, %v9095_v53, %v3085_v16  ;;  %v6968_v6 = vcombine.low %v2933_v26, %v9180_v12  ;;  %v10344_v26 = vld [vmem:[#allocation18_spill] sm:$0xff] }
 0x263   : > { %v3087_v56 = vpop.permute.xlu1 %3086 }
 0x264   : > { %v3451_v40 = vsel %vm1544_vm8, %v9132_v4, %v3087_v56  ;;  %v3126_v32 = vrot.slane %v6968_v6, 1 }
 0x265   : > { %v3157_v34 = vpop.permute.xlu0 %3156  ;;  %v7016_v18 = vcombine.low %v3448_v31, %v3451_v40  ;;  %v3230_v31 = vshll.u32 %v9248_v50, 16 }
 0x266   : > { %v3472_v61 = vsel %vm1544_vm8, %v3122_v13, %v3157_v34  ;;  %v3216_v34 = vshll.u32 %v9221_v33, 16  ;;  %v3211_v13 = vrot.slane %v3209_v27, 1 }
 0x267   : > { %v3395_v54 = vpop.permute.xlu1 %3394  ;;  %v3232_v24 = vrot.slane %v3230_v31, 1  ;;  %v7910_v31 = vld [vmem:[%s10282_s8 + $0x60] ss:$8 sps:$4 sm:$0xff]  }
 0x268   : > { %v3517_v58 = vsel %vm1544_vm8, %v9143_v21, %v3395_v54 }
 0x269   : > { %v7014_v10 = vcombine.low %v3514_v57, %v3517_v58  ;;  %v3089_v8 = vpop.permute.xlu0 %3088 }
 0x26a   : > { %v3454_v55 = vsel %vm1544_vm8, %v9159_v37, %v3089_v8 }
 0x26b   : > { %4048 = vmatprep.mubr.bf16.mxu1 %v7014_v10  ;;  %v3159_v62 = vpop.permute.xlu1 %3158 }
 0x26c   : > { %v3475_v15 = vsel %vm1544_vm8, %v3123_v29, %v3159_v62  ;;  %4049 = vmatmul.mubr.bf16.vlgmr.msra.gmra.mxu1 %v7013_v3  ;;  %v2934_v3 = vld [vmem:[#allocation2 + $0x38] sm:$0xe]  ;;  %v3218_v29 = vrot.slane %v3216_v34, 1 }
 0x26d   : > { %v7017_v21 = vcombine.low %v3472_v61, %v3475_v15  ;;  %v3161_v7 = vpop.permute.xlu0 %3160  ;;  %v6969_v28 = vcombine.low %v2934_v3, %v9198_v35  ;;  %v3223_v15 = vshll.u32 %v9218_v11, 16  ;;  %v10345_v3 = vld [vmem:[#allocation19_spill] sm:$0xff] }
 0x26e   : > { %v3478_v53 = vsel %vm1544_vm8, %v3124_v41, %v3161_v7  ;;  %v10342_v41 = vld [vmem:[#allocation17_spill] sm:$0xff] }
 0x26f   : > { %3991 = vmatprep.mubr.bf16.mxu0 %v7017_v21  ;;  %v3091_v4 = vpop.permute.xlu1 %3090  ;;  %v3127_v14 = vrot.slane %v6969_v28, 1  ;;  %v3219_v21 = vor.u32 %v3218_v29, %v3214_v0  ;;  %v3225_v2 = vrot.slane %v3223_v15, 1  ;;  %v3235_v28 = vshrl.u32 %v10344_v26, 16  ;;  %v4371_v0 = vld [vmem:[#allocation3 + $0xc] sm:$0x1] }
 0x270   : > { %3992 = vmatmul.mubr.bf16.gmra.mxu0 %v7016_v18  ;;  %v3457_v36 = vsel %vm1544_vm8, %v9166_v44, %v3091_v4 }
 0x271   : > { %v3093_v22 = vpop.permute.xlu0 %3092  ;;  %v7021_v16 = vcombine.low %v3454_v55, %v3457_v36  ;;  %v3228_v36 = vshrl.u32 %v9248_v50, 16 }
 0x272   : > { %v3460_v35 = vsel %vm1544_vm8, %v9169_v1, %v3093_v22  ;;  %v10341_v22 = vld [vmem:[#allocation16_spill] sm:$0xff] }
 0x273   : > { %v3163_v51 = vpop.permute.xlu1 %3162 }
 0x274   : > { %v3481_v59 = vsel %vm1544_vm8, %v3125_v43, %v3163_v51  ;;  %v10343_v43 = vcombine.low %v10341_v22, %v10342_v41  ;;  %v7925_v22 = vld [vmem:[%s10282_s8 + $0x140] ss:$8 sps:$4 sm:$0xff]   ;;  %v7927_v41 = vld [vmem:[%s10282_s8 + $0x144] ss:$8 sps:$4 sm:$0xff]  }
 0x275   : > { %v7022_v9 = vcombine.low %v3478_v53, %v3481_v59  ;;  %v3165_v42 = vpop.permute.xlu0 %3164  ;;  %v3233_v59 = vor.u32 %v3232_v24, %v3228_v36  ;;  %v7916_v24 = vld [vmem:[%s10282_s8 + $0x50] ss:$8 sps:$4 sm:$0xff]   ;;  %v7933_v36 = vld [vmem:[%s10282_s8 + $0x134] ss:$8 sps:$4 sm:$0xff]  }
 0x276   : > { %v3484_v57 = vsel %vm1544_vm8, %v3126_v32, %v3165_v42 }
 0x277   : > { %3999 = vmatprep.mubr.bf16.mxu0 %v7022_v9  ;;  %v3095_v56 = vpop.permute.xlu1 %3094 }
 0x278   : > { %4000 = vmatmul.mubr.bf16.gmra.mxu0 %v7021_v16  ;;  %v3463_v37 = vsel %vm1544_vm8, %v9190_v19, %v3095_v56  ;;  %v3207_v19 = vshrl.u32 %v9205_v20, 16 }
 0x279   : > { %v3397_v44 = vpop.permute.xlu0 %3396  ;;  %v7026_v8 = vcombine.low %v3460_v35, %v3463_v37  ;;  %v7972_v35 = vld [vmem:[%s10282_s8 + $0xc4] ss:$8 sps:$4 sm:$0xff]  }
 0x27a   : > { %v3520_v62 = vsel %vm1544_vm8, %v9200_v48, %v3397_v44  ;;  %v3212_v48 = vor.u32 %v3211_v13, %v3207_v19  ;;  %v3242_v44 = vshrl.u32 %v10345_v3, 16  ;;  %v7904_v13 = vld [vmem:[%s10282_s8 + $0x70] ss:$8 sps:$4 sm:$0xff]  }
 0x27b   : > { %v3167_v54 = vpop.permute.xlu1 %3166  ;;  %v7907_v19 = vld [vmem:[%s10282_s8 + $0x170] ss:$8 sps:$4 sm:$0xff]  }
 0x27c   : > { %v3487_v12 = vsel %vm1544_vm8, %v3127_v14, %v3167_v54 }
 0x27d   : > { %v3285_v58 = vpop.permute.xlu0 %3284  ;;  %v7027_v10 = vcombine.low %v3484_v57, %v3487_v12 }
 0x27f   : > { %4007 = vmatprep.mubr.bf16.mxu0 %v7027_v10  ;;  %v3399_v40 = vpop.permute.xlu1 %3398  ;;  %v4365_v10 = vld [vmem:[#allocation3 + $0x4] sm:$0x1] }
 0x280   : > { %v3523_v60 = vsel %vm1544_vm8, %v9215_v49, %v3399_v40  ;;  %4008 = vmatmul.mubr.bf16.gmra.mxu0 %v7026_v8  ;;  %v3496_v49 = vsel %vm1544_vm8, %v3212_v48, %v3285_v58  ;;  %v4384_v58 = vsel %vm9411_vm5, 0, %v4383_v47  ;;  %v4380_v8 = vld [vmem:[#allocation3 + $0x4] sm:$0x4]  ;;  %v4366_v29 = vsel %vm9404_vm4, 0, %v4365_v10  ;;  %v7912_v48 = vld [vmem:[%s10282_s8 + $0x64] ss:$8 sps:$4 sm:$0xff]  }
 0x281   : > { %v3401_v61 = vpop.permute.xlu0 %3400  ;;  %v7019_v1 = vcombine.low %v3520_v62, %v3523_v60  ;;  %7664 = vmatprep.mubr.msk.bf16.mxu0 %vm1544_vm8, %v7015_v45  ;;  %v3221_v45 = vshrl.u32 %v9218_v11, 16  ;;  %v3244_v11 = vshll.u32 %v10345_v3, 16  ;;  %4385 = vst [vmem:[#allocation3 + $0x8] sm:$0x4] %v4384_v58  ;;  %v4381_v40 = vsel %vm9411_vm5, 0, %v4380_v8 }
 0x282   : > { %v3526_v46 = vsel %vm1544_vm8, %v9228_v23, %v3401_v61  ;;  %v3237_v23 = vshll.u32 %v10344_v26, 16  ;;  %v7906_v62 = vld [vmem:[%s10282_s8 + $0x74] ss:$8 sps:$4 sm:$0xff]   ;;  %4367 = vst [vmem:[#allocation3 + $0x4] sm:$0x1] %v4366_v29 }
 0x283   : > { %4056 = vmatprep.mubr.bf16.mxu1 %v7019_v1  ;;  %v3287_v20 = vpop.permute.xlu1 %3286  ;;  %v3226_v53 = vor.u32 %v3225_v2, %v3221_v45  ;;  %v3246_v6 = vrot.slane %v3244_v11, 1  ;;  %4382 = vst [vmem:[#allocation3 + $0x4] sm:$0x4] %v4381_v40  ;;  %v7909_v60 = vld [vmem:[%s10282_s8 + $0x174] ss:$8 sps:$4 sm:$0xff]   ;;  %5862 = vmatprep.subr.bf16.mxu1 %v7906_v62  ;;  %v4372_v1 = vsel %vm9404_vm4, 0, %v4371_v0 }
 0x284   : > { %v3499_v7 = vsel %vm1544_vm8, %v3219_v21, %v3287_v20  ;;  %v3239_v16 = vrot.slane %v3237_v23, 1  ;;  %5905 = vmatprep.subr.bf16.mxu0 %v7909_v60  ;;  %5863 = vmatpush1.bf16.msra.mxu1 %v7904_v13  ;;  %v4386_v61 = vld [vmem:[#allocation3 + $0xc] sm:$0x4]  ;;  %4373 = vst [vmem:[#allocation3 + $0xc] sm:$0x1] %v4372_v1 }
 0x285   : > { %v3289_v33 = vpop.permute.xlu0 %3288  ;;  %v7018_v18 = vcombine.low %v3496_v49, %v3499_v7  ;;  %v3247_v14 = vor.u32 %v3246_v6, %v3242_v44  ;;  %v4387_v15 = vsel %vm9411_vm5, 0, %v4386_v61  ;;  %v7913_v21 = vld [vmem:[%s10282_s8 + $0x160] ss:$8 sps:$4 sm:$0xff]   ;;  %v7915_v20 = vld [vmem:[%s10282_s8 + $0x164] ss:$8 sps:$4 sm:$0xff]   ;;  %5864 = vmatprep.subr.bf16.mxu1 %v7912_v48 }
 0x286   : > { %v3502_v9 = vsel %vm1544_vm8, %v3226_v53, %v3289_v33  ;;  %v3240_v32 = vor.u32 %v3239_v16, %v3235_v28  ;;  %4388 = vst [vmem:[#allocation3 + $0xc] sm:$0x4] %v4387_v15  ;;  %v4374_v49 = vld [vmem:[#allocation3 + $0x10] sm:$0x1]  ;;  %v4389_v7 = vld [vmem:[#allocation3 + $0x10] sm:$0x4] }
 0x287   : > { %4057 = vmatmul.mubr.bf16.gmra.mxu1 %v7018_v18  ;;  %v3403_v5 = vpop.permute.xlu1 %3402  ;;  %v4375_v33 = vsel %vm9404_vm4, 0, %v4374_v49  ;;  %v4390_v18 = vsel %vm9411_vm5, 0, %v4389_v7  ;;  %v7918_v2 = vld [vmem:[%s10282_s8 + $0x54] ss:$8 sps:$4 sm:$0xff]   ;;  %v7922_v45 = vld [vmem:[%s10282_s8 + $0x40] ss:$8 sps:$4 sm:$0xff]  }
 0x288   : > { %v3529_v4 = vsel %vm1544_vm8, %v9255_v52, %v3403_v5  ;;  %7665 = vmatmul.mubr.msk.bf16.vlgmr.msra.gmra.mxu0 %vm1544_vm8, %v10343_v43  ;;  %5865 = vmatpush1.bf16.msra.mxu1 %v7910_v31  ;;  %4376 = vst [vmem:[#allocation3 + $0x10] sm:$0x1] %v4375_v33  ;;  %4391 = vst [vmem:[#allocation3 + $0x10] sm:$0x4] %v4390_v18  ;;  %v7921_v5 = vld [vmem:[%s10282_s8 + $0x154] ss:$8 sps:$4 sm:$0xff]  }
 0x289   : > { %v7024_v51 = vcombine.low %v3526_v46, %v3529_v4  ;;  %7668 = vmatprep.mubr.msk.bf16.mxu0 %vm1544_vm8, %v7025_v17  ;;  %v3405_v52 = vpop.permute.xlu0 %3404  ;;  %5906 = vmatpush1.bf16.msra.mxu0 %v7907_v19  ;;  %v7919_v46 = vld [vmem:[%s10282_s8 + $0x150] ss:$8 sps:$4 sm:$0xff]   ;;  %v7924_v4 = vld [vmem:[%s10282_s8 + $0x44] ss:$8 sps:$4 sm:$0xff]   ;;  %v7930_v43 = vld [vmem:[%s10282_s8 + $0x34] ss:$8 sps:$4 sm:$0xff]  }
 0x28a   : > { %v3532_v17 = vsel %vm1544_vm8, %v10346_v63, %v3405_v52  ;;  %5907 = vmatprep.subr.bf16.mxu0 %v7915_v20  ;;  %5866 = vmatprep.subr.bf16.mxu1 %v7918_v2  ;;  %v7931_v26 = vld [vmem:[%s10282_s8 + $0x130] ss:$8 sps:$4 sm:$0xff]   ;;  %v7936_v23 = vld [vmem:[%s10282_s8 + $0x24] ss:$8 sps:$4 sm:$0xff]   ;;  %v7934_v11 = vld [vmem:[%s10282_s8 + $0x20] ss:$8 sps:$4 sm:$0xff]  }
 0x28b   : > { %4064 = vmatprep.mubr.bf16.mxu1 %v7024_v51  ;;  %v3291_v55 = vpop.permute.xlu1 %3290  ;;  %v7928_v51 = vld [vmem:[%s10282_s8 + $0x30] ss:$8 sps:$4 sm:$0xff]   ;;  %v7939_v3 = vld [vmem:[%s10282_s8 + $0x124] ss:$8 sps:$4 sm:$0xff]   ;;  %v7937_v53 = vld [vmem:[%s10282_s8 + $0x120] ss:$8 sps:$4 sm:$0xff]  }
 0x28c   : > { %v3505_v42 = vsel %vm1544_vm8, %v3233_v59, %v3291_v55  ;;  %5867 = vmatpush1.bf16.msra.mxu1 %v7916_v24  ;;  %v7942_v59 = vld [vmem:[%s10282_s8 + $0x14] ss:$8 sps:$4 sm:$0xff]   ;;  %v7940_v55 = vld [vmem:[%s10282_s8 + $0x10] ss:$8 sps:$4 sm:$0xff]   ;;  %v7951_v16 = vld [vmem:[%s10282_s8 + $0x104] ss:$8 sps:$4 sm:$0xff]  }
 0x28d   : > { %v7023_v50 = vcombine.low %v3502_v9, %v3505_v42  ;;  %v3293_v27 = vpop.permute.xlu0 %3292  ;;  %5908 = vmatpush1.bf16.msra.mxu0 %v7913_v21  ;;  %5868 = vmatprep.subr.bf16.mxu1 %v7924_v4  ;;  %v7945_v52 = vld [vmem:[%s10282_s8 + $0x114] ss:$8 sps:$4 sm:$0xff]   ;;  %v7943_v42 = vld [vmem:[%s10282_s8 + $0x110] ss:$8 sps:$4 sm:$0xff]   ;;  %v7946_v6 = vld [vmem:[%s10282_s8] ss:$8 sps:$4 sm:$0xff]  }
 0x28e   : > { %v3508_v54 = vsel %vm1544_vm8, %v3240_v32, %v3293_v27  ;;  %5909 = vmatprep.subr.bf16.mxu0 %v7921_v5  ;;  %v7949_v63 = vld [vmem:[%s10282_s8 + $0x100] ss:$8 sps:$4 sm:$0xff]   ;;  %v7957_v28 = vld [vmem:[%s10282_s8 + $0x1f4] ss:$8 sps:$4 sm:$0xff]   ;;  %v7955_v27 = vld [vmem:[%s10282_s8 + $0x1f0] ss:$8 sps:$4 sm:$0xff]  }
 0x28f   : > { %4065 = vmatmul.mubr.bf16.gmra.mxu1 %v7023_v50  ;;  %v3407_v25 = vpop.permute.xlu1 %3406  ;;  %v7948_v50 = vld [vmem:[%s10282_s8 + $0x4] ss:$8 sps:$4 sm:$0xff]   ;;  %v7970_v8 = vld [vmem:[%s10282_s8 + $0xc0] ss:$8 sps:$4 sm:$0xff]   ;;  %v7978_v40 = vld [vmem:[%s10282_s8 + $0xb4] ss:$8 sps:$4 sm:$0xff]  }
 0x290   : > { %v3535_v56 = vsel %vm1544_vm8, %v9265_v30, %v3407_v25  ;;  %7669 = vmatmul.mubr.msk.bf16.gmra.mxu0 %vm1544_vm8, %v7030_v38  ;;  %v4368_v30 = vld [vmem:[#allocation3 + $0x8] sm:$0x1]  ;;  %5869 = vmatpush1.bf16.msra.mxu1 %v7922_v45  ;;  %v7963_v32 = vld [vmem:[%s10282_s8 + $0x1e4] ss:$8 sps:$4 sm:$0xff]   ;;  %v7973_v29 = vld [vmem:[%s10282_s8 + $0x1c0] ss:$8 sps:$4 sm:$0xff]  }
 0x291   : > { %v7029_v34 = vcombine.low %v3532_v17, %v3535_v56  ;;  %v4369_v38 = vsel %vm9404_vm4, 0, %v4368_v30  ;;  %5910 = vmatpush1.bf16.msra.mxu0 %v7919_v46  ;;  %5870 = vmatprep.subr.bf16.mxu1 %v7930_v43  ;;  %v7954_v17 = vld [vmem:[%s10282_s8 + $0xf4] ss:$8 sps:$4 sm:$0xff]   ;;  %v7952_v56 = vld [vmem:[%s10282_s8 + $0xf0] ss:$8 sps:$4 sm:$0xff]  }
 0x292   : > { %4370 = vst [vmem:[#allocation3 + $0x8] sm:$0x1] %v4369_v38  ;;  %5911 = vmatprep.subr.bf16.mxu0 %v7927_v41  ;;  %v7967_v38 = vld [vmem:[%s10282_s8 + $0x1d0] ss:$8 sps:$4 sm:$0xff]   ;;  %v7975_v58 = vld [vmem:[%s10282_s8 + $0x1c4] ss:$8 sps:$4 sm:$0xff]  }
 0x293   : > { %4072 = vmatprep.mubr.bf16.mxu1 %v7029_v34  ;;  %v3295_v37 = vpop.permute.xlu1 %3294  ;;  %v7960_v34 = vld [vmem:[%s10282_s8 + $0xe4] ss:$8 sps:$4 sm:$0xff]   ;;  %v7981_v62 = vld [vmem:[%s10282_s8 + $0x1b4] ss:$8 sps:$4 sm:$0xff]   ;;  %v7976_v0 = vld [vmem:[%s10282_s8 + $0xb0] ss:$8 sps:$4 sm:$0xff]  }
 0x294   : > { %v3511_v57 = vsel %vm1544_vm8, %v3247_v14, %v3295_v37  ;;  %5871 = vmatpush1.bf16.msra.mxu1 %v7928_v51  ;;  %v7958_v14 = vld [vmem:[%s10282_s8 + $0xe0] ss:$8 sps:$4 sm:$0xff]   ;;  %v7979_v1 = vld [vmem:[%s10282_s8 + $0x1b0] ss:$8 sps:$4 sm:$0xff]   ;;  %v7984_v15 = vld [vmem:[%s10282_s8 + $0xa4] ss:$8 sps:$4 sm:$0xff]  }
 0x295   : > { %v7028_v12 = vcombine.low %v3508_v54, %v3511_v57  ;;  %5912 = vmatpush1.bf16.msra.mxu0 %v7925_v22  ;;  %5872 = vmatprep.subr.bf16.mxu1 %v7936_v23  ;;  %v7961_v54 = vld [vmem:[%s10282_s8 + $0x1e0] ss:$8 sps:$4 sm:$0xff]   ;;  %v7966_v57 = vld [vmem:[%s10282_s8 + $0xd4] ss:$8 sps:$4 sm:$0xff]   ;;  %v7987_v31 = vld [vmem:[%s10282_s8 + $0x1a4] ss:$8 sps:$4 sm:$0xff]  }
 0x296   : > { %5913 = vmatprep.subr.bf16.mxu0 %v7933_v36  ;;  %v7982_v20 = vld [vmem:[%s10282_s8 + $0xa0] ss:$8 sps:$4 sm:$0xff]   ;;  %v7990_v33 = vld [vmem:[%s10282_s8 + $0x94] ss:$8 sps:$4 sm:$0xff]   ;;  %v7988_v5 = vld [vmem:[%s10282_s8 + $0x90] ss:$8 sps:$4 sm:$0xff]  }
 0x297   : > { %4073 = vmatmul.mubr.bf16.gmra.mxu1 %v7028_v12  ;;  %v7969_v12 = vld [vmem:[%s10282_s8 + $0x1d4] ss:$8 sps:$4 sm:$0xff]   ;;  %v7985_v7 = vld [vmem:[%s10282_s8 + $0x1a0] ss:$8 sps:$4 sm:$0xff]   ;;  %v7991_v45 = vld [vmem:[%s10282_s8 + $0x190] ss:$8 sps:$4 sm:$0xff]  }
 0x298   : > { %5873 = vmatpush1.bf16.msra.mxu1 %v7934_v11  ;;  %v7993_v18 = vld [vmem:[%s10282_s8 + $0x194] ss:$8 sps:$4 sm:$0xff]   ;;  %v7996_v4 = vld [vmem:[%s10282_s8 + $0x84] ss:$8 sps:$4 sm:$0xff]   ;;  %v7994_v51 = vld [vmem:[%s10282_s8 + $0x80] ss:$8 sps:$4 sm:$0xff]  }
 0x299   : > { %5914 = vmatpush1.bf16.msra.mxu0 %v7931_v26  ;;  %5874 = vmatprep.subr.bf16.mxu1 %v7942_v59  ;;  %v7999_v22 = vld [vmem:[%s10282_s8 + $0x184] ss:$8 sps:$4 sm:$0xff]   ;;  %v9643_v26 = vld [vmem:[%s10281_s7] ss:$0 sm:$0xff]  ;;  %vm4493_vm8 = vsmask.f32 2306 }
 0x29a   : > { %5915 = vmatprep.subr.bf16.mxu0 %v7939_v3  ;;  %v7997_v11 = vld [vmem:[%s10282_s8 + $0x180] ss:$8 sps:$4 sm:$0xff]   ;;  %vm9706_vm9 = vmand %vm4492_vm7, %vm4493_vm8 }
 0x29c   : > { %5875 = vmatpush1.bf16.msra.mxu1 %v7940_v55 }
 0x29d   : > { %5916 = vmatpush1.bf16.msra.mxu0 %v7937_v53  ;;  %5876 = vmatprep.subr.bf16.mxu1 %v7948_v50  ;;  %v8010_v53 = vld [vmem:[%s10282_s8 + $0x274] ss:$8 sps:$4 sm:$0xff]  }
 0x29e   : > { %5917 = vmatprep.subr.bf16.mxu0 %v7945_v52 }
 0x2a0   : > { %5877 = vmatpush1.bf16.msra.mxu1 %v7946_v6 }
 0x2a1   : > { %5918 = vmatpush1.bf16.msra.mxu0 %v7943_v42  ;;  %5878 = vmatprep.subr.bf16.mxu1 %v7954_v17 }
 0x2a2   : > { %5919 = vmatprep.subr.bf16.mxu0 %v7951_v16 }
 0x2a4   : > { %5879 = vmatpush2.bf16.msra.mxu1 %v7952_v56 }
 0x2a5   : > { %5920 = vmatpush1.bf16.msra.mxu0 %v7949_v63  ;;  %5880 = vmatprep.subr.bf16.mxu1 %v7960_v34 }
 0x2a6   : > { %5921 = vmatprep.subr.bf16.mxu0 %v7957_v28 }
 0x2a8   : > { %5881 = vmatpush2.bf16.msra.mxu1 %v7958_v14 }
 0x2a9   : > { %5922 = vmatpush2.bf16.msra.mxu0 %v7955_v27  ;;  %5882 = vmatprep.subr.bf16.mxu1 %v7966_v57 }
 0x2aa   : > { %5923 = vmatprep.subr.bf16.mxu0 %v7963_v32 }
 0x2ac   : > { %5883 = vmatpush2.bf16.msra.mxu1 %v7964_v39 }
 0x2ad   : > { %5924 = vmatpush2.bf16.msra.mxu0 %v7961_v54  ;;  %5884 = vmatprep.subr.bf16.mxu1 %v7972_v35 }
 0x2ae   : > { %5925 = vmatprep.subr.bf16.mxu0 %v7969_v12 }
 0x2b0   : > { %5885 = vmatpush2.bf16.msra.mxu1 %v7970_v8 }
 0x2b1   : > { %5926 = vmatpush2.bf16.msra.mxu0 %v7967_v38  ;;  %5886 = vmatprep.subr.bf16.mxu1 %v7978_v40 }
 0x2b2   : > { %5927 = vmatprep.subr.bf16.mxu0 %v7975_v58 }
 0x2b4   : > { %5887 = vmatpush2.bf16.msra.mxu1 %v7976_v0 }
 0x2b5   : > { %5928 = vmatpush2.bf16.msra.mxu0 %v7973_v29  ;;  %5888 = vmatprep.subr.bf16.mxu1 %v7984_v15 }
 0x2b6   : > { %5929 = vmatprep.subr.bf16.mxu0 %v7981_v62 }
 0x2b8   : > { %5889 = vmatpush2.bf16.msra.mxu1 %v7982_v20 }
 0x2b9   : > { %5930 = vmatpush2.bf16.msra.mxu0 %v7979_v1  ;;  %5890 = vmatprep.subr.bf16.mxu1 %v7990_v33 }
 0x2ba   : > { %5931 = vmatprep.subr.bf16.mxu0 %v7987_v31 }
 0x2bc   : > { %5891 = vmatpush2.bf16.msra.mxu1 %v7988_v5 }
 0x2bd   : > { %5932 = vmatpush2.bf16.msra.mxu0 %v7985_v7  ;;  %5892 = vmatprep.subr.bf16.mxu1 %v7996_v4 }
 0x2be   : > { %5933 = vmatprep.subr.bf16.mxu0 %v7993_v18 }
 0x2c0   : > { %5893 = vmatpush2.bf16.msra.mxu1 %v7994_v51 }
 0x2c1   : > { %5934 = vmatpush2.bf16.msra.mxu0 %v7991_v45  ;;  %5948 = vmatprep.subr.bf16.mxu1 %v8010_v53 }
 0x2c2   : > { %5935 = vmatprep.subr.bf16.mxu0 %v7999_v22 }
 0x2c5   : > { %5936 = vmatpush2.bf16.msra.mxu0 %v7997_v11 }
 0x304   : > { %v9510_v9 = vpop.f32.mrf.mxu0 }
 0x306   : > { %v9524_v25 = vpop.f32.mrf.mxu0 }
 0x307   : > { %v7516_v43 = vadd.f32 %v9524_v25, %v9510_v9  ;;  %v8013_v9 = vld [vmem:[%s10282_s8 + $0x374] ss:$8 sps:$4 sm:$0xff]  }
 0x308   : > { %v9538_v44 = vpop.f32.mrf.mxu0  ;;  %5991 = vmatprep.subr.bf16.mxu0 %v8013_v9 }
 0x309   : > { %v3986_v50 = vadd.f32 %v7516_v43, %v9643_v26 }
 0x30a   : > { %v9552_v37 = vpop.f32.mrf.mxu0 }
 0x30b   : > { %v7519_v59 = vadd.f32 %v9552_v37, %v9538_v44 }
 0x30d   : > { %v3989_v56 = vadd.f32 %v7519_v59, %v9643_v26 }
 0x32c   : > { %v7554_v60 = vpop.f32.mrf.mxu1 }
 0x32e   : > { %v7555_v21 = vpop.f32.mrf.mxu1 }
 0x32f   : > { %v7556_v52 = vadd.f32 %v7555_v21, %v7554_v60 }
 0x330   : > { %v7520_v30 = vpop.f32.mrf.mxu0  ;;  %v7557_v24 = vpop.f32.mrf.mxu1 }
 0x331   : > { %v4051_v44 = vadd.f32 %v7556_v52, %v3986_v50 }
 0x332   : > { %v7521_v47 = vpop.f32.mrf.mxu0  ;;  %v7558_v36 = vpop.f32.mrf.mxu1 }
 0x333   : > { %v7522_v23 = vadd.f32 %v7521_v47, %v7520_v30  ;;  %v7559_v16 = vadd.f32 %v7558_v36, %v7557_v24 }
 0x334   : > { %v9575_v10 = vpop.f32.mrf.mxu0 }
 0x335   : > { %v3994_v25 = vadd.f32 %v7522_v23, %v9643_v26  ;;  %v4054_v54 = vadd.f32 %v7559_v16, %v3989_v56 }
 0x336   : > { %v9580_v13 = vpop.f32.mrf.mxu0 }
 0x337   : > { %v7525_v63 = vadd.f32 %v9580_v13, %v9575_v10 }
 0x338   : > { %v9591_v19 = vpop.f32.mrf.mxu0 }
 0x339   : > { %v3997_v57 = vadd.f32 %v7525_v63, %v9643_v26 }
 0x33a   : > { %v9596_v61 = vpop.f32.mrf.mxu0 }
 0x33b   : > { %v7528_v12 = vadd.f32 %v9596_v61, %v9591_v19 }
 0x33c   : > { %v9607_v48 = vpop.f32.mrf.mxu0 }
 0x33d   : > { %v4002_v62 = vadd.f32 %v7528_v12, %v9643_v26 }
 0x33e   : > { %v9612_v49 = vpop.f32.mrf.mxu0 }
 0x33f   : > { %v7531_v10 = vadd.f32 %v9612_v49, %v9607_v48  ;;  %v10351_v49 = vld [vmem:[#allocation14_spill] sm:$0xff] }
 0x340   : > { %v7532_v2 = vpop.f32.mrf.mxu0 }
 0x341   : > { %v4005_v7 = vadd.f32 %v7531_v10, %v9643_v26 }
 0x342   : > { %v7533_v46 = vpop.f32.mrf.mxu0 }
 0x343   : > { %v7534_v60 = vadd.f32 %v7533_v46, %v7532_v2 }
 0x344   : > { %v7535_v41 = vpop.f32.mrf.mxu0 }
 0x345   : > { %v9672_v5 = vadd.f32 %v7534_v60, %v9643_v26 }
 0x346   : > { %v7536_v3 = vpop.f32.mrf.mxu0 }
 0x347   : > { %v7560_v55 = vpop.f32.mrf.mxu1  ;;  %v7537_v19 = vadd.f32 %v7536_v3, %v7535_v41 }
 0x348   : > { %v7666_v42 = vpop.f32.mrf.mxu0 }
 0x349   : > { %v7561_v6 = vpop.f32.mrf.mxu1  ;;  %v9677_v4 = vadd.f32 %v7537_v19, %v9643_v26 }
 0x34a   : > { %v7562_v17 = vadd.f32 %v7561_v6, %v7560_v55  ;;  %v4115_v28 = vpop.f32.mrf.mxu0 }
 0x34b   : > { %v7563_v27 = vpop.f32.mrf.mxu1  ;;  %v4116_v14 = vadd.f32 %v4115_v28, %v4051_v44 }
 0x34c   : > { %v4059_v34 = vadd.f32 %v7562_v17, %v3994_v25  ;;  %v7667_v32 = vpop.f32.mrf.mxu0 }
 0x34d   : > { %v7564_v37 = vpop.f32.mrf.mxu1  ;;  %v4146_v8 = vmax.f32 %v4116_v14, 0.0 }
 0x34e   : > { %v7565_v30 = vadd.f32 %v7564_v37, %v7563_v27  ;;  %v4118_v39 = vpop.f32.mrf.mxu0  ;;  %v4124_v35 = vadd.f32 %v7666_v42, %v4059_v34 }
 0x34f   : > { %v4119_v47 = vadd.f32 %v4118_v39, %v4054_v54  ;;  %v7566_v38 = vpop.f32.mrf.mxu1 }
 0x350   : > { %v4062_v58 = vadd.f32 %v7565_v30, %v3997_v57  ;;  %v9666_v29 = vpop.f32.mrf.mxu0  ;;  %v4148_v31 = vmax.f32 %v4124_v35, 0.0 }
 0x351   : > { %v4147_v13 = vmax.f32 %v4119_v47, 0.0  ;;  %v7567_v40 = vpop.f32.mrf.mxu1 }
 0x352   : > { %v4127_v0 = vadd.f32 %v7667_v32, %v4062_v58  ;;  %v7568_v1 = vadd.f32 %v7567_v40, %v7566_v38  ;;  %v4131_v18 = vpop.f32.mrf.mxu0 }
 0x353   : > { %v4154_v61 = vmax.f32 %v4146_v8, %v4147_v13  ;;  %v7569_v15 = vpop.f32.mrf.mxu1 }
 0x354   : > { %v4149_v21 = vmax.f32 %v4127_v0, 0.0  ;;  %v4067_v20 = vadd.f32 %v7568_v1, %v4002_v62 }
 0x355   : > { %v4162_v48 = vcombine.high %v4154_v61, %v4154_v61  ;;  %v4169_v33 = vrot.slane %v4154_v61, %v10351_v49  ;;  %v7570_v24 = vpop.f32.mrf.mxu1 }
 0x356   : > { %v4155_v2 = vmax.f32 %v4148_v31, %v4149_v21  ;;  %v9674_v46 = vadd.f32 %v4131_v18, %v4067_v20  ;;  %v7571_v45 = vadd.f32 %v7570_v24, %v7569_v15 }
 0x357   : > { %v4176_v22 = vrot.slane %v4162_v48, %v10351_v49  ;;  %v4177_v41 = vcombine.high %v4169_v33, %v4169_v33  ;;  %v4247_v43 = vsel %vm4246_vm6, %v4169_v33, -inf  ;;  %v9692_v14 = vpop.f32.mrf.mxu1  ;;  %v7671_v48 = vpop.f32.mrf.mxu0 }
 0x358   : > { %v4179_v36 = vcombine.high %v4155_v2, %v4155_v2  ;;  %v4186_v51 = vrot.slane %v4155_v2, %v10351_v49  ;;  %v4248_v23 = vrot.slane %v4247_v43, 4  ;;  %v4150_v3 = vmax.f32 %v9674_v46, 0.0  ;;  %v4495_v46 = vld [vmem:[#allocation3 + $0x4] sm:$0x7] }
 0x359   : > { %v4178_v11 = vcombine.high %v4176_v22, %v4176_v22  ;;  %v4254_v53 = vsel %vm4246_vm6, %v4177_v41, -inf  ;;  %v4261_v59 = vsel %vm4246_vm6, %v4176_v22, -inf  ;;  %v9685_v52 = vadd.f32 %v7571_v45, %v4005_v7  ;;  %v7573_v0 = vpop.f32.mrf.mxu1 }
 0x35a   : > { %v4193_v26 = vrot.slane %v4179_v36, %v10351_v49  ;;  %v4194_v55 = vcombine.high %v4186_v51, %v4186_v51  ;;  %v4275_v9 = vsel %vm4246_vm6, %v4186_v51, -inf  ;;  %v4249_v42 = vmax.f32 %v4247_v43, %v4248_v23 }
 0x35b   : > { %v4276_v50 = vrot.slane %v4275_v9, 4  ;;  %v4255_v16 = vrot.slane %v4254_v53, 4  ;;  %v4262_v6 = vrot.slane %v4261_v59, 4  ;;  %v4268_v25 = vsel %vm4246_vm6, %v4178_v11, -inf  ;;  %v7575_v36 = vpop.f32.mrf.mxu1 }
 0x35c   : > { %v4195_v63 = vcombine.high %v4193_v26, %v4193_v26  ;;  %v4282_v17 = vsel %vm4246_vm6, %v4194_v55, -inf  ;;  %v4289_v28 = vsel %vm4246_vm6, %v4193_v26, -inf  ;;  %v4250_v56 = vrot.slane %v4249_v42, 2 }
 0x35d   : > { %v4277_v44 = vmax.f32 %v4275_v9, %v4276_v50  ;;  %v4283_v27 = vrot.slane %v4282_v17, 4  ;;  %v4290_v34 = vrot.slane %v4289_v28, 4  ;;  %v4256_v32 = vmax.f32 %v4254_v53, %v4255_v16 }
 0x35e   : > { %v4296_v37 = vsel %vm4246_vm6, %v4195_v63, -inf  ;;  %v4251_v54 = vmax.f32 %v4249_v42, %v4250_v56  ;;  %v4263_v57 = vmax.f32 %v4261_v59, %v4262_v6  ;;  %v4269_v12 = vrot.slane %v4268_v25, 4  ;;  %v4134_v42 = vpop.f32.mrf.mxu0 }
 0x35f   : > { %v4278_v30 = vrot.slane %v4277_v44, 2  ;;  %v4284_v39 = vmax.f32 %v4282_v17, %v4283_v27  ;;  %v4291_v47 = vmax.f32 %v4289_v28, %v4290_v34  ;;  %v4297_v38 = vrot.slane %v4296_v37, 4 }
 0x360   : > { %v4252_v35 = vrot.slane %v4251_v54, 1  ;;  %v4257_v58 = vrot.slane %v4256_v32, 2  ;;  %v4264_v10 = vrot.slane %v4263_v57, 2  ;;  %v4270_v8 = vmax.f32 %v4268_v25, %v4269_v12 }
 0x361   : > { %v4279_v13 = vmax.f32 %v4277_v44, %v4278_v30  ;;  %v4285_v40 = vrot.slane %v4284_v39, 2  ;;  %v4292_v62 = vrot.slane %v4291_v47, 2  ;;  %v4298_v60 = vmax.f32 %v4296_v37, %v4297_v38  ;;  %v7576_v44 = vpop.f32.mrf.mxu1 }
 0x362   : > { %v4253_v1 = vmax.f32 %v4251_v54, %v4252_v35  ;;  %v4258_v19 = vmax.f32 %v4256_v32, %v4257_v58  ;;  %v4265_v61 = vmax.f32 %v4263_v57, %v4264_v10  ;;  %v4271_v15 = vrot.slane %v4270_v8, 2 }
 0x363   : > { %v4280_v31 = vrot.slane %v4279_v13, 1  ;;  %v4286_v21 = vmax.f32 %v4284_v39, %v4285_v40  ;;  %v4293_v20 = vmax.f32 %v4291_v47, %v4292_v62  ;;  %v4299_v7 = vrot.slane %v4298_v60, 2 }
 0x364   : > { %v4259_v33 = vrot.slane %v4258_v19, 1  ;;  %v4266_v18 = vrot.slane %v4265_v61, 1  ;;  %v4272_v24 = vmax.f32 %v4270_v8, %v4271_v15  ;;  %v7398_v2 = vpack.c.bf16 %v4253_v1, %v4253_v1 }
 0x365   : > { %v4281_v45 = vmax.f32 %v4279_v13, %v4280_v31  ;;  %v4287_v22 = vrot.slane %v4286_v21, 1  ;;  %v4294_v41 = vrot.slane %v4293_v20, 1  ;;  %v4300_v43 = vmax.f32 %v4298_v60, %v4299_v7 }
 0x366   : > { %v4260_v51 = vmax.f32 %v4258_v19, %v4259_v33  ;;  %v4267_v23 = vmax.f32 %v4265_v61, %v4266_v18  ;;  %v4273_v11 = vrot.slane %v4272_v24, 1  ;;  %v4456_v53 = vunpack.c.l.b16 %v7398_v2 }
 0x367   : > { %v4288_v59 = vmax.f32 %v4286_v21, %v4287_v22  ;;  %v4295_v26 = vmax.f32 %v4293_v20, %v4294_v41  ;;  %v4301_v55 = vrot.slane %v4300_v43, 1  ;;  %v7402_v9 = vpack.c.bf16 %v4281_v45, %v4281_v45 }
 0x368   : > { %v4274_v50 = vmax.f32 %v4272_v24, %v4273_v11  ;;  %v7399_v16 = vpack.c.bf16 %v4260_v51, %v4260_v51  ;;  %v7400_v6 = vpack.c.bf16 %v4267_v23, %v4267_v23  ;;  %v4135_v25 = vadd.f32 %v4134_v42, %v9685_v52 }
 0x369   : > { %v4302_v63 = vmax.f32 %v4300_v43, %v4301_v55  ;;  %v7403_v17 = vpack.c.bf16 %v4288_v59, %v4288_v59  ;;  %v7404_v28 = vpack.c.bf16 %v4295_v26, %v4295_v26  ;;  %v4460_v56 = vunpack.c.l.b16 %v7402_v9 }
 0x36a   : > { %v7401_v27 = vpack.c.bf16 %v4274_v50, %v4274_v50  ;;  %v4457_v34 = vunpack.c.l.b16 %v7399_v16  ;;  %v4458_v32 = vunpack.c.l.b16 %v7400_v6  ;;  %v4151_v37 = vmax.f32 %v4135_v25, 0.0 }
 0x36b   : > { %v7405_v54 = vpack.c.bf16 %v4302_v63, %v4302_v63  ;;  %v4461_v57 = vunpack.c.l.b16 %v7403_v17  ;;  %v4462_v12 = vunpack.c.l.b16 %v7404_v28  ;;  %v7574_v30 = vadd.f32 %v7573_v0, %v9692_v14  ;;  %v4498_v0 = vld [vmem:[#allocation3 + $0x8] sm:$0x7] }
 0x36c   : > { %v4459_v39 = vunpack.c.l.b16 %v7401_v27  ;;  %v4472_v47 = vsel %vm2775_vm10, %v4457_v34, %v4456_v53  ;;  %v4156_v52 = vmax.f32 %v4150_v3, %v4151_v37  ;;  %v7577_v38 = vadd.f32 %v7576_v44, %v7575_v36  ;;  %v8000_v37 = vld [vmem:[#allocation3] ss:$0 sps:$4 sm:$0x77]  }
 0x36d   : > { %v4463_v35 = vunpack.c.l.b16 %v7405_v54  ;;  %v4475_v58 = vsel %vm2775_vm10, %v4461_v57, %v4460_v56  ;;  %v4473_v10 = vsel %vm2777_vm11, %v4458_v32, %v4472_v47  ;;  %v4075_v8 = vadd.f32 %v7574_v30, %v9672_v5 }
 0x36e   : > { %v4476_v13 = vsel %vm2777_vm11, %v4462_v12, %v4475_v58  ;;  %v4474_v40 = vsel %vm2779_vm12, %v4459_v39, %v4473_v10  ;;  %v4196_v3 = vcombine.high %v4156_v52, %v4156_v52  ;;  %v4203_v62 = vrot.slane %v4156_v52, %v10351_v49 }
 0x36f   : > { %v4477_v60 = vsel %vm2779_vm12, %v4463_v35, %v4476_v13  ;;  %v4484_v1 = vpack.c.b16 %v4474_v40, %v4474_v40  ;;  %v4140_v5 = vadd.f32 %v9666_v29, %v4075_v8  ;;  %v4078_v19 = vadd.f32 %v7577_v38, %v9677_v4 }
 0x370   : > { %v4485_v61 = vpack.c.b16 %v4477_v60, %v4477_v60  ;;  %v4210_v15 = vrot.slane %v4196_v3, %v10351_v49  ;;  %v4211_v31 = vcombine.high %v4203_v62, %v4203_v62  ;;  %v4303_v21 = vsel %vm4246_vm6, %v4203_v62, -inf }
 0x371   : > { %v4496_v20 = vsel %vm9706_vm9, %v4484_v1, %v4495_v46  ;;  %v4304_v7 = vrot.slane %v4303_v21, 4  ;;  %v4143_v33 = vadd.f32 %v7671_v48, %v4078_v19  ;;  %v4152_v36 = vmax.f32 %v4140_v5, 0.0 }
 0x372   : > { %v4499_v18 = vsel %vm9706_vm9, %v4485_v61, %v4498_v0  ;;  %4497 = vst [vmem:[#allocation3 + $0x4] sm:$0x7] %v4496_v20  ;;  %v4212_v24 = vcombine.high %v4210_v15, %v4210_v15  ;;  %v4310_v29 = vsel %vm4246_vm6, %v4211_v31, -inf  ;;  %v4317_v4 = vsel %vm4246_vm6, %v4210_v15, -inf }
 0x373   : > { %4500 = vst [vmem:[#allocation3 + $0x8] sm:$0x7] %v4499_v18  ;;  %v4305_v2 = vmax.f32 %v4303_v21, %v4304_v7  ;;  %v4311_v45 = vrot.slane %v4310_v29, 4  ;;  %v4318_v22 = vrot.slane %v4317_v4, 4  ;;  %v4153_v41 = vmax.f32 %v4143_v33, 0.0 }
 0x374   : > { %v4324_v43 = vsel %vm4246_vm6, %v4212_v24, -inf  ;;  %v4559_v62 = vshll.u32 %v8000_v37, 16 }
 0x375   : > { %v4306_v51 = vrot.slane %v4305_v2, 2  ;;  %v4312_v23 = vmax.f32 %v4310_v29, %v4311_v45  ;;  %v4319_v48 = vmax.f32 %v4317_v4, %v4318_v22  ;;  %v4325_v11 = vrot.slane %v4324_v43, 4 }
 0x376   : > { %v4157_v53 = vmax.f32 %v4152_v36, %v4153_v41  ;;  %v4501_v36 = vld [vmem:[#allocation3 + $0xc] sm:$0x7] }
 0x377   : > { %v4307_v59 = vmax.f32 %v4305_v2, %v4306_v51  ;;  %v4313_v26 = vrot.slane %v4312_v23, 2  ;;  %v4320_v55 = vrot.slane %v4319_v48, 2  ;;  %v4326_v9 = vmax.f32 %v4324_v43, %v4325_v11 }
 0x378   : > { %v4213_v42 = vcombine.high %v4157_v53, %v4157_v53  ;;  %v4220_v50 = vrot.slane %v4157_v53, %v10351_v49 }
 0x379   : > { %v4308_v16 = vrot.slane %v4307_v59, 1  ;;  %v4314_v6 = vmax.f32 %v4312_v23, %v4313_v26  ;;  %v4321_v25 = vmax.f32 %v4319_v48, %v4320_v55  ;;  %v4327_v63 = vrot.slane %v4326_v9, 2  ;;  %v8001_v3 = vld [vmem:[#allocation3 + $0x4] ss:$0 sps:$4 sm:$0x77]  }
 0x37a   : > { %v4227_v17 = vrot.slane %v4213_v42, %v10351_v49  ;;  %v4228_v28 = vcombine.high %v4220_v50, %v4220_v50  ;;  %v4331_v56 = vsel %vm4246_vm6, %v4220_v50, -inf  ;;  %v8002_v29 = vld [vmem:[#allocation3 + $0x8] ss:$0 sps:$4 sm:$0x77]   ;;  %v4566_v4 = vshll.u32 %v8001_v3, 16 }
 0x37b   : > { %v4309_v44 = vmax.f32 %v4307_v59, %v4308_v16  ;;  %v4315_v27 = vrot.slane %v4314_v6, 1  ;;  %v4322_v34 = vrot.slane %v4321_v25, 1  ;;  %v4328_v32 = vmax.f32 %v4326_v9, %v4327_v63 }
 0x37c   : > { %v4229_v54 = vcombine.high %v4227_v17, %v4227_v17  ;;  %v4332_v57 = vrot.slane %v4331_v56, 4  ;;  %v4338_v12 = vsel %vm4246_vm6, %v4228_v28, -inf  ;;  %v4345_v30 = vsel %vm4246_vm6, %v4227_v17, -inf  ;;  %v8004_v28 = vld [vmem:[#allocation3] ss:$0 sps:$4 sm:$0x66]  }
 0x37d   : > { %v4316_v39 = vmax.f32 %v4314_v6, %v4315_v27  ;;  %v4323_v47 = vmax.f32 %v4321_v25, %v4322_v34  ;;  %v4329_v52 = vrot.slane %v4328_v32, 1  ;;  %v7406_v38 = vpack.c.bf16 %v4309_v44, %v4309_v44  ;;  %v9735_v34 = vld [vmem:[#allocation3 + $0x14] ss:$0 sps:$4 sm:$0x77]  }
 0x37e   : > { %v4333_v35 = vmax.f32 %v4331_v56, %v4332_v57  ;;  %v4339_v58 = vrot.slane %v4338_v12, 4  ;;  %v4346_v10 = vrot.slane %v4345_v30, 4  ;;  %v4352_v8 = vsel %vm4246_vm6, %v4229_v54, -inf }
 0x37f   : > { %v4330_v13 = vmax.f32 %v4328_v32, %v4329_v52  ;;  %v7407_v40 = vpack.c.bf16 %v4316_v39, %v4316_v39  ;;  %v7408_v46 = vpack.c.bf16 %v4323_v47, %v4323_v47  ;;  %v4353_v5 = vrot.slane %v4352_v8, 4  ;;  %v8005_v47 = vld [vmem:[#allocation3 + $0x4] ss:$0 sps:$4 sm:$0x66]  }
 0x380   : > { %v4334_v60 = vrot.slane %v4333_v35, 2  ;;  %v4340_v0 = vmax.f32 %v4338_v12, %v4339_v58  ;;  %v4347_v1 = vmax.f32 %v4345_v30, %v4346_v10  ;;  %v4464_v61 = vunpack.c.l.b16 %v7406_v38  ;;  %v4508_v38 = vld [vmem:[#allocation3 + $0x4] sm:$0x3] }
 0x381   : > { %v7409_v19 = vpack.c.bf16 %v4330_v13, %v4330_v13  ;;  %v4465_v15 = vunpack.c.l.b16 %v7407_v40  ;;  %v4466_v31 = vunpack.c.l.b16 %v7408_v46  ;;  %v4354_v33 = vmax.f32 %v4352_v8, %v4353_v5  ;;  %v4519_v13 = vld [vmem:[#allocation3 + $0x4] sm:$0x3]  ;;  %v8024_v40 = vld [vmem:[#allocation3 + $0x8] ss:$0 sps:$4 sm:$0x77]  }
 0x382   : > { %v4335_v21 = vmax.f32 %v4333_v35, %v4334_v60  ;;  %v4341_v20 = vrot.slane %v4340_v0, 2  ;;  %v4348_v7 = vrot.slane %v4347_v1, 2  ;;  %v4557_v23 = vshrl.u32 %v8000_v37, 16  ;;  %v4507_v37 = vld [vmem:[#allocation3] sm:$0x3] }
 0x383   : > { %v4467_v18 = vunpack.c.l.b16 %v7409_v19  ;;  %v4478_v24 = vsel %vm2775_vm10, %v4465_v15, %v4464_v61  ;;  %v4355_v51 = vrot.slane %v4354_v33, 2  ;;  %v4561_v48 = vrot.slane %v4559_v62, 1  ;;  %v4504_v60 = vld [vmem:[#allocation3 + $0x10] sm:$0x7]  ;;  %v4520_v5 = vld [vmem:[#allocation3 + $0x8] sm:$0x3] }
 0x384   : > { %v4479_v2 = vsel %vm2777_vm11, %v4466_v31, %v4478_v24  ;;  %v4336_v45 = vrot.slane %v4335_v21, 1  ;;  %v4342_v22 = vmax.f32 %v4340_v0, %v4341_v20  ;;  %v4349_v41 = vmax.f32 %v4347_v1, %v4348_v7  ;;  %v8023_v19 = vld [vmem:[#allocation3 + $0x4] ss:$0 sps:$4 sm:$0x77]  }
 0x385   : > { %v4480_v43 = vsel %vm2779_vm12, %v4467_v18, %v4479_v2  ;;  %v4356_v55 = vmax.f32 %v4354_v33, %v4355_v51  ;;  %v4568_v9 = vrot.slane %v4566_v4, 1  ;;  %v4573_v42 = vshll.u32 %v8002_v29, 16  ;;  %v8006_v20 = vld [vmem:[#allocation3 + $0x8] ss:$0 sps:$4 sm:$0x66]  }
 0x386   : > { %v4486_v11 = vpack.c.b16 %v4480_v43, %v4480_v43  ;;  %v4337_v53 = vmax.f32 %v4335_v21, %v4336_v45  ;;  %v4343_v59 = vrot.slane %v4342_v22, 1  ;;  %v4350_v26 = vrot.slane %v4349_v41, 1  ;;  %v4509_v33 = vld [vmem:[#allocation3 + $0x8] sm:$0x3] }
 0x387   : > { %v4357_v63 = vrot.slane %v4356_v55, 1  ;;  %v4564_v17 = vshrl.u32 %v8001_v3, 16  ;;  %v4562_v27 = vor.u32 %v4561_v48, %v4557_v23  ;;  %v4575_v57 = vrot.slane %v4573_v42, 1  ;;  %v8034_v43 = vld [vmem:[#allocation3 + $0x8] ss:$0 sps:$4 sm:$0x77]  }
 0x388   : > { %v4502_v50 = vsel %vm9706_vm9, %v4486_v11, %v4501_v36  ;;  %v4344_v16 = vmax.f32 %v4342_v22, %v4343_v59  ;;  %v4351_v6 = vmax.f32 %v4349_v41, %v4350_v26  ;;  %v7410_v25 = vpack.c.bf16 %v4337_v53, %v4337_v53  ;;  %v8027_v41 = vld [vmem:[#allocation3 + $0x4] ss:$0 sps:$4 sm:$0x66]   ;;  %v8028_v53 = vld [vmem:[#allocation3 + $0x8] ss:$0 sps:$4 sm:$0x66]  }
 0x389   : > { %4503 = vst [vmem:[#allocation3 + $0xc] sm:$0x7] %v4502_v50  ;;  %v4358_v32 = vmax.f32 %v4356_v55, %v4357_v63  ;;  %v4569_v54 = vor.u32 %v4568_v9, %v4564_v17  ;;  %v4571_v35 = vshrl.u32 %v8002_v29, 16  ;;  %v4596_v58 = vrot.slane %v8004_v28, 1 }
 0x38a   : > { %v7411_v56 = vpack.c.bf16 %v4344_v16, %v4344_v16  ;;  %v7412_v44 = vpack.c.bf16 %v4351_v6, %v4351_v6  ;;  %v4468_v12 = vunpack.c.l.b16 %v7410_v25  ;;  %v4724_v8 = vcombine.low %v4507_v37, %v4562_v27 }
 0x38b   : > { %v7413_v52 = vpack.c.bf16 %v4358_v32, %v4358_v32  ;;  %v4692_v46 = vshll.u32 %v9735_v34, 16  ;;  %v4576_v0 = vor.u32 %v4575_v57, %v4571_v35  ;;  %v4765_v1 = vcombine.low %v4508_v38, %v4569_v54 }
 0x38c   : > { %v4469_v30 = vunpack.c.l.b16 %v7411_v56  ;;  %v4470_v39 = vunpack.c.l.b16 %v7412_v44  ;;  %v4597_v61 = vrot.slane %v8005_v47, 1  ;;  %v4690_v15 = vshrl.u32 %v9735_v34, 16 }
 0x38d   : > { %v4471_v3 = vunpack.c.l.b16 %v7413_v52  ;;  %v4725_v18 = vcombine.low %v4596_v58, %v4519_v13  ;;  %v4622_v24 = vshll.u32 %v8024_v40, 16  ;;  %v4694_v29 = vrot.slane %v4692_v46, 1 }
 0x38e   : > { %v4481_v10 = vsel %vm2775_vm10, %v4469_v30, %v4468_v12  ;;  %v4732_v2 = vrot.slane %v4724_v8, %v10351_v49  ;;  %v4773_v45 = vrot.slane %v4765_v1, %v10351_v49  ;;  %v4806_v22 = vcombine.low %v4509_v33, %v4576_v0 }
 0x38f   : > { %v4482_v62 = vsel %vm2777_vm11, %v4470_v39, %v4481_v10  ;;  %v4766_v23 = vcombine.low %v4597_v61, %v4520_v5  ;;  %v4615_v11 = vshll.u32 %v8023_v19, 16  ;;  %v4598_v9 = vrot.slane %v8006_v20, 1 }
 0x390   : > { %v4483_v31 = vsel %vm2779_vm12, %v4471_v3, %v4482_v62  ;;  %v8003_v21 = vld [vmem:[#allocation3 + $0xc] ss:$0 sps:$4 sm:$0x77]   ;;  %v4739_v42 = vrot.slane %v4725_v18, %v10351_v49  ;;  %v4613_v50 = vshrl.u32 %v8023_v19, 16  ;;  %v4624_v16 = vrot.slane %v4622_v24, 1 }
 0x391   : > { %v4487_v7 = vpack.c.b16 %v4483_v31, %v4483_v31  ;;  %v4580_v4 = vshll.u32 %v8003_v21, 16  ;;  %v4521_v51 = vld [vmem:[#allocation3 + $0xc] sm:$0x3]  ;;  %v4578_v59 = vshrl.u32 %v8003_v21, 16  ;;  %v4814_v63 = vrot.slane %v4806_v22, %v10351_v49  ;;  %v8008_v24 = vld [vmem:[%s10282_s8 + $0x270] ss:$8 sps:$4 sm:$0xff]  }
 0x392   : > { %v8025_v48 = vld [vmem:[#allocation3 + $0xc] ss:$0 sps:$4 sm:$0x77]   ;;  %v7111_v14 = vcombine.low %v4732_v2, %v4773_v45  ;;  %v4671_v28 = vshll.u32 %v8034_v43, 16  ;;  %v4780_v44 = vrot.slane %v4766_v23, %v10351_v49  ;;  %v4807_v27 = vcombine.low %v4598_v9, %v4521_v51  ;;  %v4535_v23 = vld [vmem:[#allocation3 + $0x14] sm:$0x3] }
 0x393   : > { %v4505_v36 = vsel %vm9706_vm9, %v4487_v7, %v4504_v60  ;;  %v4582_v26 = vrot.slane %v4580_v4, 1  ;;  %v8007_v55 = vld [vmem:[#allocation3 + $0xc] ss:$0 sps:$4 sm:$0x66]   ;;  %v4629_v6 = vshll.u32 %v8025_v48, 16  ;;  %v4617_v34 = vrot.slane %v4615_v11, 1 }
 0x394   : > { %4506 = vst [vmem:[#allocation3 + $0x10] sm:$0x7] %v4505_v36  ;;  %v8035_v17 = vld [vmem:[#allocation3 + $0xc] ss:$0 sps:$4 sm:$0x77]   ;;  %v4620_v32 = vshrl.u32 %v8024_v40, 16  ;;  %v9750_v3 = vor.u32 %v4694_v29, %v4690_v15  ;;  %v5054_v40 = vrot.slane %v7111_v14, %v10351_v49  ;;  %v7112_v0 = vcombine.low %v4739_v42, %v4780_v44 }
 0x395   : > { %v4583_v25 = vor.u32 %v4582_v26, %v4578_v59  ;;  %v4510_v56 = vld [vmem:[#allocation3 + $0xc] sm:$0x3]  ;;  %v4599_v54 = vrot.slane %v8007_v55, 1  ;;  %v4652_v57 = vrot.slane %v8027_v41, 1  ;;  %v4678_v12 = vshll.u32 %v8035_v17, 16 }
 0x396   : > { %v4625_v30 = vor.u32 %v4624_v16, %v4620_v32  ;;  %v4627_v39 = vshrl.u32 %v8025_v48, 16  ;;  %v4631_v47 = vrot.slane %v4629_v6, 1  ;;  %v4653_v52 = vrot.slane %v8028_v53, 1  ;;  %v8029_v35 = vld [vmem:[#allocation3 + $0xc] ss:$0 sps:$4 sm:$0x66]  }
 0x397   : > { %v4847_v37 = vcombine.low %v4510_v56, %v4583_v25  ;;  %v4673_v58 = vrot.slane %v4671_v28, 1  ;;  %v4676_v10 = vshrl.u32 %v8035_v17, 16  ;;  %v4680_v8 = vrot.slane %v4678_v12, 1  ;;  %v4533_v51 = vld [vmem:[#allocation3 + $0xc] sm:$0x3] }
 0x398   : > { %v4618_v46 = vor.u32 %v4617_v34, %v4613_v50  ;;  %v4821_v19 = vrot.slane %v4807_v27, %v10351_v49  ;;  %v4782_v61 = vcombine.low %v4625_v30, %v4653_v52  ;;  %v4669_v31 = vshrl.u32 %v8034_v43, 16  ;;  %v8016_v11 = vld [vmem:[%s10282_s8 + $0x264] ss:$8 sps:$4 sm:$0xff]   ;;  %v4532_v16 = vld [vmem:[#allocation3 + $0x8] sm:$0x3] }
 0x399   : > { %v4855_v38 = vrot.slane %v4847_v37, %v10351_v49  ;;  %v4681_v21 = vor.u32 %v4680_v8, %v4676_v10  ;;  %v4632_v33 = vor.u32 %v4631_v47, %v4627_v39  ;;  %v4654_v4 = vrot.slane %v8029_v35, 1  ;;  %v8011_v56 = vld [vmem:[%s10282_s8 + $0x370] ss:$8 sps:$4 sm:$0xff]   ;;  %v8014_v44 = vld [vmem:[%s10282_s8 + $0x260] ss:$8 sps:$4 sm:$0xff]  }
 0x39a   : > { %v4741_v2 = vcombine.low %v4618_v46, %v4652_v57  ;;  %v4674_v45 = vor.u32 %v4673_v58, %v4669_v31  ;;  %v5061_v48 = vrot.slane %v7112_v0, %v10351_v49  ;;  %v4790_v53 = vrot.slane %v4782_v61, %v10351_v49  ;;  %v8019_v32 = vld [vmem:[%s10282_s8 + $0x364] ss:$8 sps:$4 sm:$0xff]   ;;  %v8022_v37 = vld [vmem:[%s10282_s8 + $0x254] ss:$8 sps:$4 sm:$0xff]   ;;  %v8017_v58 = vld [vmem:[%s10282_s8 + $0x360] ss:$8 sps:$4 sm:$0xff]  }
 0x39b   : > { %v4522_v13 = vld [vmem:[#allocation3 + $0x10] sm:$0x3]  ;;  %v7113_v62 = vcombine.low %v4814_v63, %v4855_v38  ;;  %v4783_v26 = vcombine.low %v4533_v51, %v4681_v21  ;;  %v4823_v50 = vcombine.low %v4632_v33, %v4654_v4  ;;  %v4865_v14 = vcombine.low %v4535_v23, %v9750_v3  ;;  %v8020_v10 = vld [vmem:[%s10282_s8 + $0x250] ss:$8 sps:$4 sm:$0xff]   ;;  %v8043_v21 = vld [vmem:[%s10282_s8 + $0x344] ss:$8 sps:$4 sm:$0xff]  }
 0x39c   : > { %v4848_v60 = vcombine.low %v4599_v54, %v4522_v13  ;;  %v8026_v1 = vld [vmem:[#allocation3 + $0x10] ss:$0 sps:$4 sm:$0x77]   ;;  %v4742_v63 = vcombine.low %v4532_v16, %v4674_v45  ;;  %v4749_v27 = vrot.slane %v4741_v2, %v10351_v49  ;;  %v8033_v13 = vld [vmem:[%s10282_s8 + $0x354] ss:$8 sps:$4 sm:$0xff]   ;;  %vm8287_vm10 = vmmov 0  }
 0x39d   : > { %v8030_v5 = vld [vmem:[#allocation3 + $0x10] ss:$0 sps:$4 sm:$0x66]   ;;  %v5068_v20 = vrot.slane %v7113_v62, %v10351_v49  ;;  %v4636_v18 = vshll.u32 %v8026_v1, 16  ;;  %v4634_v29 = vshrl.u32 %v8026_v1, 16  ;;  %v4797_v57 = vrot.slane %v4783_v26, %v10351_v49 }
 0x39e   : > { %v4862_v7 = vrot.slane %v4848_v60, %v10351_v49  ;;  %v8036_v15 = vld [vmem:[#allocation3 + $0x10] ss:$0 sps:$4 sm:$0x77]   ;;  %v4655_v42 = vrot.slane %v8030_v5, 1  ;;  %v4831_v12 = vrot.slane %v4823_v50, %v10351_v49  ;;  %v7115_v39 = vcombine.low %v4749_v27, %v4790_v53  ;;  %v8040_v62 = vld [vmem:[%s10282_s8 + $0x244] ss:$8 sps:$4 sm:$0xff]  }
 0x39f   : > { %v5076_v22 = vcombine.low %v5054_v40, %v5068_v20  ;;  %v5077_v41 = vcombine.high %v5054_v40, %v5068_v20  ;;  %v4638_v43 = vrot.slane %v4636_v18, 1  ;;  %v4685_v59 = vshll.u32 %v8036_v15, 16  ;;  %v4534_v47 = vld [vmem:[#allocation3 + $0x10] sm:$0x3]  ;;  %v8031_v5 = vld [vmem:[%s10282_s8 + $0x350] ss:$8 sps:$4 sm:$0xff]  }
 0x3a0   : > { %v7114_v36 = vcombine.low %v4821_v19, %v4862_v7  ;;  %v4683_v6 = vshrl.u32 %v8036_v15, 16  ;;  %v4756_v52 = vrot.slane %v4742_v63, %v10351_v49  ;;  %v4879_v35 = vrot.slane %v4865_v14, %v10351_v49  ;;  %v8038_v19 = vld [vmem:[%s10282_s8 + $0x240] ss:$8 sps:$4 sm:$0xff]   ;;  %v8046_v20 = vld [vmem:[%s10282_s8 + $0x234] ss:$8 sps:$4 sm:$0xff]  }
 0x3a1   : > { %5894 = vmatprep.mubr.bf16.mxu1 %v5077_v41  ;;  %v4639_v9 = vor.u32 %v4638_v43, %v4634_v29  ;;  %v4687_v25 = vrot.slane %v4685_v59, 1  ;;  %v9798_v40 = vrot.slane %v7115_v39, %v10351_v49  ;;  %v8041_v33 = vld [vmem:[%s10282_s8 + $0x340] ss:$8 sps:$4 sm:$0xff]   ;;  %v8044_v18 = vld [vmem:[%s10282_s8 + $0x230] ss:$8 sps:$4 sm:$0xff]   ;;  %vm6643_vm11 = vcmask 261120  }
 0x3a2   : > { %v5075_v55 = vrot.slane %v7114_v36, %v10351_v49  ;;  %5895 = vmatmul.mubr.bf16.vlgmr.msra.gmra.mxu1 %v5076_v22  ;;  %v7116_v3 = vcombine.low %v4756_v52, %v4797_v57  ;;  %v8049_v15 = vld [vmem:[%s10282_s8 + $0x334] ss:$8 sps:$4 sm:$0xff]   ;;  %v8047_v29 = vld [vmem:[%s10282_s8 + $0x330] ss:$8 sps:$4 sm:$0xff]   ;;  %v8050_v4 = vld [vmem:[%s10282_s8 + $0x220] ss:$8 sps:$4 sm:$0xff]  }
 0x3a3   : > { %5949 = vmatpush1.bf16.msra.mxu1 %v8008_v24  ;;  %v4864_v34 = vcombine.low %v4639_v9, %v4655_v42  ;;  %v4688_v54 = vor.u32 %v4687_v25, %v4683_v6  ;;  %v8052_v24 = vld [vmem:[%s10282_s8 + $0x224] ss:$8 sps:$4 sm:$0xff]   ;;  %v8058_v45 = vld [vmem:[%s10282_s8 + $0x214] ss:$8 sps:$4 sm:$0xff]   ;;  %v8053_v22 = vld [vmem:[%s10282_s8 + $0x320] ss:$8 sps:$4 sm:$0xff]  }
 0x3a4   : > { %v5078_v17 = vcombine.low %v5061_v48, %v5075_v55  ;;  %v5079_v28 = vcombine.high %v5061_v48, %v5075_v55  ;;  %5950 = vmatprep.subr.bf16.mxu1 %v8016_v11  ;;  %v9812_v61 = vrot.slane %v7116_v3, %v10351_v49  ;;  %v8055_v2 = vld [vmem:[%s10282_s8 + $0x324] ss:$8 sps:$4 sm:$0xff]   ;;  %v8056_v41 = vld [vmem:[%s10282_s8 + $0x210] ss:$8 sps:$4 sm:$0xff]   ;;  %v8061_v36 = vld [vmem:[%s10282_s8 + $0x314] ss:$8 sps:$4 sm:$0xff]  }
 0x3a5   : > { %v4872_v30 = vrot.slane %v4864_v34, %v10351_v49  ;;  %v4824_v38 = vcombine.low %v4534_v47, %v4688_v54  ;;  %v8064_v43 = vld [vmem:[%s10282_s8 + $0x204] ss:$8 sps:$4 sm:$0xff]   ;;  %v8059_v51 = vld [vmem:[%s10282_s8 + $0x310] ss:$8 sps:$4 sm:$0xff]   ;;  %v8062_v23 = vld [vmem:[%s10282_s8 + $0x200] ss:$8 sps:$4 sm:$0xff]  }
 0x3a6   : > { %5937 = vmatprep.mubr.bf16.mxu0 %v5079_v28  ;;  %v8067_v48 = vld [vmem:[%s10282_s8 + $0x304] ss:$8 sps:$4 sm:$0xff]   ;;  %v8070_v11 = vld [vmem:[%s10282_s8 + $0x2f4] ss:$8 sps:$4 sm:$0xff]   ;;  %v8065_v53 = vld [vmem:[%s10282_s8 + $0x300] ss:$8 sps:$4 sm:$0xff]  }
 0x3a7   : > { %5938 = vmatmul.mubr.bf16.vlgmr.msra.gmra.mxu0 %v5078_v17  ;;  %5951 = vmatpush1.bf16.msra.mxu1 %v8014_v44  ;;  %v7117_v8 = vcombine.low %v4831_v12, %v4872_v30  ;;  %v4838_v46 = vrot.slane %v4824_v38, %v10351_v49  ;;  %v8068_v59 = vld [vmem:[%s10282_s8 + $0x2f0] ss:$8 sps:$4 sm:$0xff]   ;;  %v8073_v26 = vld [vmem:[%s10282_s8 + $0x3f4] ss:$8 sps:$4 sm:$0xff]   ;;  %v8076_v55 = vld [vmem:[%s10282_s8 + $0x2e4] ss:$8 sps:$4 sm:$0xff]  }
 0x3a8   : > { %5992 = vmatpush1.bf16.msra.mxu0 %v8011_v56  ;;  %5952 = vmatprep.subr.bf16.mxu1 %v8022_v37  ;;  %v8071_v9 = vld [vmem:[%s10282_s8 + $0x3f0] ss:$8 sps:$4 sm:$0xff]   ;;  %v8074_v42 = vld [vmem:[%s10282_s8 + $0x2e0] ss:$8 sps:$4 sm:$0xff]   ;;  %v8079_v50 = vld [vmem:[%s10282_s8 + $0x3e4] ss:$8 sps:$4 sm:$0xff]  }
 0x3a9   : > { %5993 = vmatprep.subr.bf16.mxu0 %v8019_v32  ;;  %v9801_v60 = vrot.slane %v7117_v8, %v10351_v49  ;;  %v7118_v0 = vcombine.low %v4838_v46, %v4879_v35  ;;  %v8082_v16 = vld [vmem:[%s10282_s8 + $0x2d4] ss:$8 sps:$4 sm:$0xff]   ;;  %v8077_v6 = vld [vmem:[%s10282_s8 + $0x3e0] ss:$8 sps:$4 sm:$0xff]   ;;  %v8080_v25 = vld [vmem:[%s10282_s8 + $0x2d0] ss:$8 sps:$4 sm:$0xff]  }
 0x3aa   : > { %v8085_v63 = vld [vmem:[%s10282_s8 + $0x3d4] ss:$8 sps:$4 sm:$0xff]   ;;  %v8088_v14 = vld [vmem:[%s10282_s8 + $0x2c4] ss:$8 sps:$4 sm:$0xff]   ;;  %v8083_v17 = vld [vmem:[%s10282_s8 + $0x3d0] ss:$8 sps:$4 sm:$0xff]  }
 0x3ab   : > { %v5113_v1 = vcombine.high %v9798_v40, %v9801_v60  ;;  %5953 = vmatpush1.bf16.msra.mxu1 %v8020_v10  ;;  %v9815_v31 = vrot.slane %v7118_v0, %v10351_v49  ;;  %v8086_v28 = vld [vmem:[%s10282_s8 + $0x2c0] ss:$8 sps:$4 sm:$0xff]   ;;  %v8091_v56 = vld [vmem:[%s10282_s8 + $0x3c4] ss:$8 sps:$4 sm:$0xff]   ;;  %v8094_v44 = vld [vmem:[%s10282_s8 + $0x2b4] ss:$8 sps:$4 sm:$0xff]   ;;  %v5112_v3 = vcombine.low %v9798_v40, %v9801_v60 }
 0x3ac   : > { %5994 = vmatpush1.bf16.msra.mxu0 %v8017_v58  ;;  %5954 = vmatprep.subr.bf16.mxu1 %v8040_v62  ;;  %v8089_v27 = vld [vmem:[%s10282_s8 + $0x3c0] ss:$8 sps:$4 sm:$0xff]   ;;  %v8092_v34 = vld [vmem:[%s10282_s8 + $0x2b0] ss:$8 sps:$4 sm:$0xff]   ;;  %v8097_v32 = vld [vmem:[%s10282_s8 + $0x3b4] ss:$8 sps:$4 sm:$0xff]  }
 0x3ad   : > { %5995 = vmatprep.subr.bf16.mxu0 %v8033_v13  ;;  %5980 = vmatprep.mubr.bf16.mxu1 %v5113_v1  ;;  %v5115_v7 = vcombine.high %v9812_v61, %v9815_v31  ;;  %v8100_v37 = vld [vmem:[%s10282_s8 + $0x2a4] ss:$8 sps:$4 sm:$0xff]   ;;  %v8095_v54 = vld [vmem:[%s10282_s8 + $0x3b0] ss:$8 sps:$4 sm:$0xff]   ;;  %v8098_v57 = vld [vmem:[%s10282_s8 + $0x2a0] ss:$8 sps:$4 sm:$0xff]   ;;  %v5114_v1 = vcombine.low %v9812_v61, %v9815_v31 }
 0x3ae   : > { %v8103_v12 = vld [vmem:[%s10282_s8 + $0x3a4] ss:$8 sps:$4 sm:$0xff]   ;;  %v8106_v30 = vld [vmem:[%s10282_s8 + $0x294] ss:$8 sps:$4 sm:$0xff]   ;;  %v8101_v39 = vld [vmem:[%s10282_s8 + $0x3a0] ss:$8 sps:$4 sm:$0xff]  }
 0x3af   : > { %5955 = vmatpush1.bf16.msra.mxu1 %v8038_v19  ;;  %6023 = vmatprep.mubr.bf16.mxu0 %v5115_v7  ;;  %v8104_v47 = vld [vmem:[%s10282_s8 + $0x290] ss:$8 sps:$4 sm:$0xff]   ;;  %v8109_v52 = vld [vmem:[%s10282_s8 + $0x394] ss:$8 sps:$4 sm:$0xff]   ;;  %v8112_v38 = vld [vmem:[%s10282_s8 + $0x284] ss:$8 sps:$4 sm:$0xff]  }
 0x3b0   : > { %5996 = vmatpush1.bf16.msra.mxu0 %v8031_v5  ;;  %5956 = vmatprep.subr.bf16.mxu1 %v8046_v20  ;;  %v8107_v35 = vld [vmem:[%s10282_s8 + $0x390] ss:$8 sps:$4 sm:$0xff]   ;;  %v8110_v58 = vld [vmem:[%s10282_s8 + $0x280] ss:$8 sps:$4 sm:$0xff]   ;;  %v8115_v10 = vld [vmem:[%s10282_s8 + $0x384] ss:$8 sps:$4 sm:$0xff]  }
 0x3b1   : > { %5997 = vmatprep.subr.bf16.mxu0 %v8043_v21  ;;  %v8118_v8 = vld [vmem:[%s10282_s8 + $0x474] ss:$8 sps:$4 sm:$0xff]   ;;  %v8113_v13 = vld [vmem:[%s10282_s8 + $0x380] ss:$8 sps:$4 sm:$0xff]   ;;  %v8116_v46 = vld [vmem:[%s10282_s8 + $0x470] ss:$8 sps:$4 sm:$0xff]  }
 0x3b2   : > { %v8121_v62 = vld [vmem:[%s10282_s8 + $0x464] ss:$8 sps:$4 sm:$0xff]   ;;  %v8119_v0 = vld [vmem:[%s10282_s8 + $0x460] ss:$8 sps:$4 sm:$0xff]   ;;  %v8124_v40 = vld [vmem:[%s10282_s8 + $0x454] ss:$8 sps:$4 sm:$0xff]  }
 0x3b3   : > { %5957 = vmatpush1.bf16.msra.mxu1 %v8044_v18  ;;  %v10354_v60 = vmov 0   ;;  %v8122_v5 = vld [vmem:[%s10282_s8 + $0x450] ss:$8 sps:$4 sm:$0xff]   ;;  %v8127_v19 = vld [vmem:[%s10282_s8 + $0x444] ss:$8 sps:$4 sm:$0xff]  }
 0x3b4   : > { %5998 = vmatpush1.bf16.msra.mxu0 %v8041_v33  ;;  %5958 = vmatprep.subr.bf16.mxu1 %v8052_v24  ;;  %v8125_v61 = vld [vmem:[%s10282_s8 + $0x440] ss:$8 sps:$4 sm:$0xff]   ;;  %v8143_v31 = vld [vmem:[#allocation3 + $0x14] ss:$0 sps:$4 sm:$0x66]  }
 0x3b5   : > { %5999 = vmatprep.subr.bf16.mxu0 %v8049_v15  ;;  %v8130_v21 = vld [vmem:[%s10282_s8 + $0x434] ss:$8 sps:$4 sm:$0xff]   ;;  %v8142_v20 = vld [vmem:[#allocation3 + $0x10] ss:$0 sps:$4 sm:$0x66]   ;;  %v4711_v24 = vrot.slane %v8143_v31, 1 }
 0x3b6   : > { %v8144_v7 = vld [vmem:[%s10284_s10 + $0x70] ss:$8 sps:$4 sm:$0xff]   ;;  %v8146_v33 = vld [vmem:[%s10284_s10 + $0x74] ss:$8 sps:$4 sm:$0xff]   ;;  %v8199_v31 = vld [vmem:[%s10287_s13 + $0x20] sm:$0xff]  }
 0x3b7   : > { %5959 = vmatpush1.bf16.msra.mxu1 %v8050_v4  ;;  %v8141_v18 = vld [vmem:[#allocation3 + $0xc] ss:$0 sps:$4 sm:$0x66]   ;;  %v8128_v15 = vld [vmem:[%s10282_s8 + $0x430] ss:$8 sps:$4 sm:$0xff]  }
 0x3b8   : > { %6000 = vmatpush1.bf16.msra.mxu0 %v8047_v29  ;;  %5960 = vmatprep.subr.bf16.mxu1 %v8058_v45  ;;  %v8133_v29 = vld [vmem:[%s10282_s8 + $0x424] ss:$8 sps:$4 sm:$0xff]   ;;  %v8140_v4 = vld [vmem:[#allocation3 + $0x8] ss:$0 sps:$4 sm:$0x66]   ;;  %v4709_v45 = vrot.slane %v8141_v18, 1 }
 0x3b9   : > { %6001 = vmatprep.subr.bf16.mxu0 %v8055_v2  ;;  %v4710_v2 = vrot.slane %v8142_v20, 1  ;;  %v8201_v20 = vld [vmem:[%s10287_s13 + $0x18] sm:$0xff]  }
 0x3bb   : > { %5961 = vmatpush1.bf16.msra.mxu1 %v8056_v41  ;;  %v8136_v41 = vld [vmem:[%s10282_s8 + $0x414] ss:$8 sps:$4 sm:$0xff]  }
 0x3bc   : > { %6002 = vmatpush1.bf16.msra.mxu0 %v8053_v22  ;;  %5962 = vmatprep.subr.bf16.mxu1 %v8064_v43  ;;  %v8131_v22 = vld [vmem:[%s10282_s8 + $0x420] ss:$8 sps:$4 sm:$0xff]   ;;  %v4846_v43 = vrot.slane %v4710_v2, %v10351_v49 }
 0x3bd   : > { %6003 = vmatprep.subr.bf16.mxu0 %v8061_v36  ;;  %v4708_v36 = vrot.slane %v8140_v4, 1  ;;  %v10355_v2 = vld [vmem:[#allocation13_spill] sm:$0xff] }
 0x3bf   : > { %5963 = vmatpush1.bf16.msra.mxu1 %v8062_v23  ;;  %v4805_v23 = vrot.slane %v4709_v45, %v10351_v49  ;;  %v5036_v45 = vsub.s32 0, %v10355_v2 }
 0x3c0   : > { %6004 = vmatpush1.bf16.msra.mxu0 %v8059_v51  ;;  %5964 = vmatprep.subr.bf16.mxu1 %v8070_v11  ;;  %v4887_v51 = vrot.slane %v4711_v24, %v10351_v49  ;;  %v8139_v11 = vld [vmem:[%s10282_s8 + $0x404] ss:$8 sps:$4 sm:$0xff]  }
 0x3c1   : > { %6005 = vmatprep.subr.bf16.mxu0 %v8067_v48  ;;  %v8134_v48 = vld [vmem:[%s10282_s8 + $0x410] ss:$8 sps:$4 sm:$0xff]  }
 0x3c3   : > { %5965 = vmatpush2.bf16.msra.mxu1 %v8068_v59  ;;  %v5117_v59 = vcombine.low %v4846_v43, %v4887_v51  ;;  %v5040_v43 = vsub.s32 1, %v10355_v2  ;;  %v8209_v2 = vld [vmem:[%s10286_s12 + $0x30] sm:$0xff]  }
 0x3c4   : > { %6006 = vmatpush1.bf16.msra.mxu0 %v8065_v53  ;;  %5966 = vmatprep.subr.bf16.mxu1 %v8076_v55  ;;  %v4764_v53 = vrot.slane %v4708_v36, %v10351_v49  ;;  %v8137_v55 = vld [vmem:[%s10282_s8 + $0x400] ss:$8 sps:$4 sm:$0xff]  }
 0x3c5   : > { %6007 = vmatprep.subr.bf16.mxu0 %v8073_v26 }
 0x3c6   : > { %v5116_v26 = vcombine.low %v4764_v53, %v4805_v23 }
 0x3c7   : > { %5967 = vmatpush2.bf16.msra.mxu1 %v8074_v42 }
 0x3c8   : > { %6008 = vmatpush2.bf16.msra.mxu0 %v8071_v9  ;;  %5968 = vmatprep.subr.bf16.mxu1 %v8082_v16  ;;  %v5131_v9 = vrot.slane %v5117_v59, %v10351_v49  ;;  %v5124_v42 = vrot.slane %v5116_v26, %v10351_v49  ;;  %v8147_v16 = vld [vmem:[%s10284_s10 + $0x60] ss:$8 sps:$4 sm:$0xff]   ;;  %v8152_v49 = vld [vmem:[%s10284_s10 + $0x54] ss:$8 sps:$4 sm:$0xff]  }
 0x3c9   : > { %6009 = vmatprep.subr.bf16.mxu0 %v8079_v50 }
 0x3ca   : > { %v5132_v50 = vcombine.low %v5124_v42, %v5131_v9 }
 0x3cb   : > { %5969 = vmatpush2.bf16.msra.mxu1 %v8080_v25  ;;  %v8150_v25 = vld [vmem:[%s10284_s10 + $0x50] ss:$8 sps:$4 sm:$0xff]  }
 0x3cc   : > { %6010 = vmatpush2.bf16.msra.mxu0 %v8077_v6  ;;  %5970 = vmatprep.subr.bf16.mxu1 %v8088_v14  ;;  %v8149_v6 = vld [vmem:[%s10284_s10 + $0x64] ss:$8 sps:$4 sm:$0xff]   ;;  %v8153_v14 = vld [vmem:[%s10284_s10 + $0x40] ss:$8 sps:$4 sm:$0xff]  }
 0x3cd   : > { %6011 = vmatprep.subr.bf16.mxu0 %v8085_v63  ;;  %v8155_v63 = vld [vmem:[%s10284_s10 + $0x44] ss:$8 sps:$4 sm:$0xff]  }
 0x3cf   : > { %5971 = vmatpush2.bf16.msra.mxu1 %v8086_v28  ;;  %v8156_v28 = vld [vmem:[%s10284_s10 + $0x30] ss:$8 sps:$4 sm:$0xff]  }
 0x3d0   : > { %6012 = vmatpush2.bf16.msra.mxu0 %v8083_v17  ;;  %5972 = vmatprep.subr.bf16.mxu1 %v8094_v44  ;;  %v8158_v17 = vld [vmem:[%s10284_s10 + $0x34] ss:$8 sps:$4 sm:$0xff]   ;;  %v8159_v44 = vld [vmem:[%s10284_s10 + $0x20] ss:$8 sps:$4 sm:$0xff]  }
 0x3d1   : > { %6013 = vmatprep.subr.bf16.mxu0 %v8091_v56  ;;  %v8161_v56 = vld [vmem:[%s10284_s10 + $0x24] ss:$8 sps:$4 sm:$0xff]  }
 0x3d3   : > { %5973 = vmatpush2.bf16.msra.mxu1 %v8092_v34  ;;  %v8162_v34 = vld [vmem:[%s10284_s10 + $0x10] ss:$8 sps:$4 sm:$0xff]  }
 0x3d4   : > { %6014 = vmatpush2.bf16.msra.mxu0 %v8089_v27  ;;  %5974 = vmatprep.subr.bf16.mxu1 %v8100_v37  ;;  %v8164_v27 = vld [vmem:[%s10284_s10 + $0x14] ss:$8 sps:$4 sm:$0xff]   ;;  %v8165_v37 = vld [vmem:[%s10284_s10] ss:$8 sps:$4 sm:$0xff]  }
 0x3d5   : > { %6015 = vmatprep.subr.bf16.mxu0 %v8097_v32  ;;  %v8167_v32 = vld [vmem:[%s10284_s10 + $0x4] ss:$8 sps:$4 sm:$0xff]  }
 0x3d7   : > { %5975 = vmatpush2.bf16.msra.mxu1 %v8098_v57  ;;  %v8168_v57 = vld [vmem:[%s10284_s10 + $0xf0] ss:$8 sps:$4 sm:$0xff]  }
 0x3d8   : > { %6016 = vmatpush2.bf16.msra.mxu0 %v8095_v54  ;;  %5976 = vmatprep.subr.bf16.mxu1 %v8106_v30  ;;  %v8170_v54 = vld [vmem:[%s10284_s10 + $0xf4] ss:$8 sps:$4 sm:$0xff]   ;;  %v8171_v30 = vld [vmem:[%s10284_s10 + $0xe0] ss:$8 sps:$4 sm:$0xff]  }
 0x3d9   : > { %6017 = vmatprep.subr.bf16.mxu0 %v8103_v12  ;;  %v8173_v12 = vld [vmem:[%s10284_s10 + $0xe4] ss:$8 sps:$4 sm:$0xff]  }
 0x3db   : > { %5977 = vmatpush2.bf16.msra.mxu1 %v8104_v47  ;;  %v8176_v47 = vld [vmem:[%s10284_s10 + $0xd4] ss:$8 sps:$4 sm:$0xff]  }
 0x3dc   : > { %6018 = vmatpush2.bf16.msra.mxu0 %v8101_v39  ;;  %5978 = vmatprep.subr.bf16.mxu1 %v8112_v38  ;;  %v8174_v39 = vld [vmem:[%s10284_s10 + $0xd0] ss:$8 sps:$4 sm:$0xff]   ;;  %v8177_v38 = vld [vmem:[%s10284_s10 + $0xc0] ss:$8 sps:$4 sm:$0xff]  }
 0x3dd   : > { %6019 = vmatprep.subr.bf16.mxu0 %v8109_v52  ;;  %v8179_v52 = vld [vmem:[%s10284_s10 + $0xc4] ss:$8 sps:$4 sm:$0xff]  }
 0x3df   : > { %5979 = vmatpush2.bf16.msra.mxu1 %v8110_v58  ;;  %v8180_v58 = vld [vmem:[%s10284_s10 + $0xb0] ss:$8 sps:$4 sm:$0xff]  }
 0x3e0   : > { %6020 = vmatpush2.bf16.msra.mxu0 %v8107_v35  ;;  %6034 = vmatprep.subr.bf16.mxu1 %v8118_v8  ;;  %v8182_v35 = vld [vmem:[%s10284_s10 + $0xb4] ss:$8 sps:$4 sm:$0xff]   ;;  %v8183_v8 = vld [vmem:[%s10284_s10 + $0xa0] ss:$8 sps:$4 sm:$0xff]  }
 0x3e1   : > { %6021 = vmatprep.subr.bf16.mxu0 %v8115_v10  ;;  %v8185_v10 = vld [vmem:[%s10284_s10 + $0xa4] ss:$8 sps:$4 sm:$0xff]  }
 0x3e2   : > { %5981 = vmatmul.mubr.bf16.vlgmr.msra.gmra.mxu1 %v5112_v3  ;;  %v8194_v3 = vld [vmem:[%s10287_s13 + $0x70] sm:$0xff]  }
 0x3e3   : > { %6035 = vmatpush1.bf16.msra.mxu1 %v8116_v46  ;;  %6066 = vmatprep.mubr.bf16.mxu1 %v10354_v60  ;;  %v8193_v46 = vld [vmem:[%s10287_s13 + $0x38] sm:$0xff]   ;;  %v8191_v60 = vld [vmem:[%s10284_s10 + $0x84] ss:$8 sps:$4 sm:$0xff]  }
 0x3e4   : > { %6022 = vmatpush2.bf16.msra.mxu0 %v8113_v13  ;;  %6036 = vmatprep.subr.bf16.mxu1 %v8121_v62  ;;  %v8192_v13 = vld [vmem:[%s10287_s13 + $0x78] sm:$0xff]  }
 0x3e5   : > { %6304 = vmatprep.subr.bf16.mxu0 %v8146_v33  ;;  %v8188_v62 = vld [vmem:[%s10284_s10 + $0x94] ss:$8 sps:$4 sm:$0xff]  }
 0x3e6   : > { %v8203_v33 = vld [vmem:[%s10287_s13 + $0x10] sm:$0xff]  }
 0x3e7   : > { %6024 = vmatmul.mubr.bf16.vlgmr.msra.gmra.mxu0 %v5114_v1  ;;  %6037 = vmatpush1.bf16.msra.mxu1 %v8119_v0  ;;  %v8195_v0 = vld [vmem:[%s10287_s13 + $0x30] sm:$0xff]  }
 0x3e8   : > { %6038 = vmatprep.subr.bf16.mxu1 %v8124_v40  ;;  %6305 = vmatpush1.bf16.msra.mxu0 %v8144_v7  ;;  %v8186_v1 = vld [vmem:[%s10284_s10 + $0x90] ss:$8 sps:$4 sm:$0xff]   ;;  %v8196_v40 = vld [vmem:[%s10287_s13 + $0x68] sm:$0xff]  }
 0x3e9   : > { %6306 = vmatprep.subr.bf16.mxu0 %v8149_v6  ;;  %v8202_v7 = vld [vmem:[%s10287_s13 + $0x50] sm:$0xff]  }
 0x3eb   : > { %6039 = vmatpush1.bf16.msra.mxu1 %v8122_v5  ;;  %v8197_v5 = vld [vmem:[%s10287_s13 + $0x28] sm:$0xff]  }
 0x3ec   : > { %6040 = vmatprep.subr.bf16.mxu1 %v8127_v19  ;;  %6307 = vmatpush1.bf16.msra.mxu0 %v8147_v16  ;;  %v8189_v19 = vld [vmem:[%s10284_s10 + $0x80] ss:$8 sps:$4 sm:$0xff]  }
 0x3ed   : > { %6308 = vmatprep.subr.bf16.mxu0 %v8152_v49 }
 0x3ef   : > { %6041 = vmatpush1.bf16.msra.mxu1 %v8125_v61  ;;  %v8198_v61 = vld [vmem:[%s10287_s13 + $0x60] sm:$0xff]  }
 0x3f0   : > { %6042 = vmatprep.subr.bf16.mxu1 %v8130_v21  ;;  %6309 = vmatpush1.bf16.msra.mxu0 %v8150_v25  ;;  %v8200_v21 = vld [vmem:[%s10287_s13 + $0x58] sm:$0xff]  }
 0x3f1   : > { %6310 = vmatprep.subr.bf16.mxu0 %v8155_v63 }
 0x3f3   : > { %6043 = vmatpush1.bf16.msra.mxu1 %v8128_v15 }
 0x3f4   : > { %6044 = vmatprep.subr.bf16.mxu1 %v8133_v29  ;;  %6311 = vmatpush1.bf16.msra.mxu0 %v8153_v14 }
 0x3f5   : > { %6312 = vmatprep.subr.bf16.mxu0 %v8158_v17 }
 0x3f7   : > { %6045 = vmatpush1.bf16.msra.mxu1 %v8131_v22  ;;  %v5032_v22 = vld [vmem:[%s10283_s9] sm:$0x3] }
 0x3f8   : > { %6046 = vmatprep.subr.bf16.mxu1 %v8136_v41  ;;  %6313 = vmatpush1.bf16.msra.mxu0 %v8156_v28  ;;  %v5037_v23 = vrot.slane %v5032_v22, %v5036_v45 }
 0x3f9   : > { %6314 = vmatprep.subr.bf16.mxu0 %v8161_v56 }
 0x3fb   : > { %6047 = vmatpush1.bf16.msra.mxu1 %v8134_v48 }
 0x3fc   : > { %6048 = vmatprep.subr.bf16.mxu1 %v8139_v11  ;;  %6315 = vmatpush1.bf16.msra.mxu0 %v8159_v44  ;;  %v5041_v11 = vrot.slane %v5032_v22, %v5040_v43  ;;  %v8205_v22 = vld [vmem:[%s10287_s13 + $0x8] sm:$0xff]  }
 0x3fd   : > { %6316 = vmatprep.subr.bf16.mxu0 %v8164_v27 }
 0x3ff   : > { %6049 = vmatpush1.bf16.msra.mxu1 %v8137_v55 }
 0x400   : > { %6317 = vmatpush1.bf16.msra.mxu0 %v8162_v34  ;;  %7586 = vmatprep.subr.bf16.mxu1 %v8192_v13 }
 0x401   : > { %6318 = vmatprep.subr.bf16.mxu0 %v8167_v32 }
 0x402   : > { %6067 = vmatmul.mubr.bf16.vlgmr.msra.gmra.mxu1 %v5132_v50 }
 0x403   : > { %7587 = vmatpush3.bf16.msra.mxu1 %v8193_v46 }
 0x404   : > { %6319 = vmatpush1.bf16.msra.mxu0 %v8165_v37  ;;  %7588 = vmatprep.subr.bf16.mxu1 %v8194_v3 }
 0x405   : > { %6320 = vmatprep.subr.bf16.mxu0 %v8170_v54 }
 0x407   : > { %7589 = vmatpush3.bf16.msra.mxu1 %v8195_v0 }
 0x408   : > { %6321 = vmatpush2.bf16.msra.mxu0 %v8168_v57  ;;  %7590 = vmatprep.subr.bf16.mxu1 %v8196_v40 }
 0x409   : > { %6322 = vmatprep.subr.bf16.mxu0 %v8173_v12 }
 0x40b   : > { %7591 = vmatpush3.bf16.msra.mxu1 %v8197_v5 }
 0x40c   : > { %6323 = vmatpush2.bf16.msra.mxu0 %v8171_v30  ;;  %7592 = vmatprep.subr.bf16.mxu1 %v8198_v61 }
 0x40d   : > { %6324 = vmatprep.subr.bf16.mxu0 %v8176_v47 }
 0x40f   : > { %7593 = vmatpush3.bf16.msra.mxu1 %v8199_v31 }
 0x410   : > { %6325 = vmatpush2.bf16.msra.mxu0 %v8174_v39  ;;  %7594 = vmatprep.subr.bf16.mxu1 %v8200_v21 }
 0x411   : > { %6326 = vmatprep.subr.bf16.mxu0 %v8179_v52 }
 0x413   : > { %7595 = vmatpush3.bf16.msra.mxu1 %v8201_v20 }
 0x414   : > { %6327 = vmatpush2.bf16.msra.mxu0 %v8177_v38  ;;  %7596 = vmatprep.subr.bf16.mxu1 %v8202_v7 }
 0x415   : > { %6328 = vmatprep.subr.bf16.mxu0 %v8182_v35 }
 0x417   : > { %7597 = vmatpush3.bf16.msra.mxu1 %v8203_v33 }
 0x418   : > { %6329 = vmatpush2.bf16.msra.mxu0 %v8180_v58 }
 0x419   : > { %6330 = vmatprep.subr.bf16.mxu0 %v8185_v10 }
 0x41c   : > { %6331 = vmatpush2.bf16.msra.mxu0 %v8183_v8 }
 0x41d   : > { %6332 = vmatprep.subr.bf16.mxu0 %v8188_v62 }
 0x420   : > { %6333 = vmatpush2.bf16.msra.mxu0 %v8186_v1 }
 0x421   : > { %6334 = vmatprep.subr.bf16.mxu0 %v8191_v60 }
 0x424   : > { %6335 = vmatpush2.bf16.msra.mxu0 %v8189_v19 }
 0x462   : > { %v5896_v18 = vpop.f32.mrf.mxu1 }
 0x463   : > { %v5897_v26 = vadd.f32 %v5896_v18, %v5037_v23 }
 0x464   : > { %v5898_v24 = vpop.f32.mrf.mxu1 }
 0x465   : > { %v5899_v55 = vadd.f32 %v5898_v24, %v5041_v11 }
 0x466   : > { %v5900_v4 = vpop.f32.mrf.mxu1 }
 0x467   : > { %v5939_v15 = vpop.f32.mrf.mxu0  ;;  %v5901_v9 = vadd.f32 %v5900_v4, %v5037_v23  ;;  %v8204_v4 = vld [vmem:[%s10287_s13 + $0x48] sm:$0xff]   ;;  %v6132_v23 = vld [vmem:[%s10285_s11] sm:$0x3] }
 0x468   : > { %v5902_v36 = vpop.f32.mrf.mxu1  ;;  %v5940_v16 = vadd.f32 %v5939_v15, %v5897_v26  ;;  %7598 = vmatprep.subr.bf16.mxu1 %v8204_v4 }
 0x469   : > { %v5941_v29 = vpop.f32.mrf.mxu0  ;;  %v5903_v6 = vadd.f32 %v5902_v36, %v5041_v11  ;;  %7599 = vmatpush3.bf16.msra.mxu1 %v8205_v22  ;;  %v8207_v36 = vld [vmem:[%s10287_s13] sm:$0xff]   ;;  %v6301_v11 = vrot.slane %v6132_v23, %v5040_v43 }
 0x46a   : > { %v5942_v25 = vadd.f32 %v5941_v29, %v5899_v55  ;;  %v8211_v43 = vld [vmem:[%s10286_s12 + $0x20] sm:$0xff]  }
 0x46b   : > { %v5943_v41 = vpop.f32.mrf.mxu0 }
 0x46c   : > { %v5944_v49 = vadd.f32 %v5943_v41, %v5901_v9  ;;  %v8206_v41 = vld [vmem:[%s10287_s13 + $0x40] sm:$0xff]  }
 0x46d   : > { %v5945_v48 = vpop.f32.mrf.mxu0  ;;  %7600 = vmatprep.subr.bf16.mxu1 %v8206_v41 }
 0x46e   : > { %v5946_v28 = vadd.f32 %v5945_v48, %v5903_v6  ;;  %7601 = vmatpush3.bf16.msra.mxu1 %v8207_v36  ;;  %v6297_v48 = vrot.slane %v6132_v23, %v5036_v45  ;;  %v8210_v45 = vld [vmem:[%s10286_s12 + $0x28] sm:$0xff]  }
 0x4a2   : > { %v5982_v51 = vpop.f32.mrf.mxu1 }
 0x4a3   : > { %v5983_v63 = vadd.f32 %v5982_v51, %v5940_v16  ;;  %v8286_v51 = vmov 0.0  }
 0x4a4   : > { %v5984_v59 = vpop.f32.mrf.mxu1  ;;  %7692 = vmatprep.subr.bf16.mxu0 %v8286_v51  ;;  %7672 = vmatprep.subr.bf16.mxu1 %v8286_v51 }
 0x4a5   : > { %v5985_v56 = vadd.f32 %v5984_v59, %v5942_v25  ;;  %v8208_v25 = vld [vmem:[%s10286_s12 + $0x38] sm:$0xff]  }
 0x4a6   : > { %v5986_v50 = vpop.f32.mrf.mxu1 }
 0x4a7   : > { %v6025_v53 = vpop.f32.mrf.mxu0  ;;  %v5987_v44 = vadd.f32 %v5986_v50, %v5944_v49 }
 0x4a8   : > { %v5988_v17 = vpop.f32.mrf.mxu1  ;;  %v6026_v34 = vadd.f32 %v6025_v53, %v5983_v63  ;;  %v8212_v63 = vld [vmem:[%s10286_s12 + $0x18] sm:$0xff]  }
 0x4a9   : > { %v6027_v42 = vpop.f32.mrf.mxu0  ;;  %v5989_v32 = vadd.f32 %v5988_v17, %v5946_v28  ;;  %v8214_v17 = vld [vmem:[%s10286_s12 + $0x8] sm:$0xff]   ;;  %v8215_v28 = vld [vmem:[%s10286_s12] sm:$0xff]  }
 0x4aa   : > { %v6028_v57 = vadd.f32 %v6027_v42, %v5985_v56  ;;  %v10356_v56 = vld [vmem:[#allocation15_spill] sm:$0xff] }
 0x4ab   : > { %v6029_v14 = vpop.f32.mrf.mxu0 }
 0x4ac   : > { %v6030_v12 = vadd.f32 %v6029_v14, %v5987_v44  ;;  %v8213_v14 = vld [vmem:[%s10286_s12 + $0x10] sm:$0xff]   ;;  %v6347_v44 = vpack.c.bf16 %v10356_v56, %v10356_v56 }
 0x4ad   : > { %v6031_v37 = vpop.f32.mrf.mxu0 }
 0x4ae   : > { %v6032_v47 = vadd.f32 %v6031_v37, %v5989_v32 }
 0x4c2   : > { %v6068_v27 = vpop.f32.mrf.mxu1 }
 0x4c3   : > { %v6069_v30 = vadd.f32 %v6068_v27, %v6026_v34  ;;  %v8216_v27 = vld [vmem:[%s10289_s15 + $0x8] sm:$0xff]   ;;  %v8217_v34 = vld [vmem:[%s10289_s15] sm:$0xff]  }
 0x4c4   : > { %v6070_v54 = vpop.f32.mrf.mxu1 }
 0x4c5   : > { %v6071_v52 = vadd.f32 %v6070_v54, %v6028_v57  ;;  %v6077_v58 = vmax.f32 %v6069_v30, 0.0 }
 0x4c6   : > { %v6072_v39 = vpop.f32.mrf.mxu1 }
 0x4c7   : > { %v6073_v38 = vadd.f32 %v6072_v39, %v6030_v12  ;;  %v6078_v13 = vmax.f32 %v6071_v52, 0.0  ;;  %v6622_v39 = vld [vmem:[%s10288_s14] sm:$0x1] }
 0x4c8   : > { %v6074_v35 = vpop.f32.mrf.mxu1 }
 0x4c9   : > { %v6079_v10 = vmax.f32 %v6073_v38, 0.0  ;;  %v6075_v8 = vadd.f32 %v6074_v35, %v6032_v47 }
 0x4cb   : > { %v6081_v46 = vadd.f32 %v6079_v10, %v6077_v58  ;;  %v6080_v3 = vmax.f32 %v6075_v8, 0.0 }
 0x4cd   : > { %v6082_v62 = vrot.slane %v6081_v46, 4  ;;  %v6088_v0 = vadd.f32 %v6080_v3, %v6078_v13  ;;  %v6630_v13 = vld [vmem:[%s10290_s16] sm:$0x1] }
 0x4cf   : > { %v6083_v1 = vadd.f32 %v6082_v62, %v6081_v46  ;;  %v6089_v40 = vrot.slane %v6088_v0, 4 }
 0x4d1   : > { %v6084_v60 = vrot.slane %v6083_v1, 2  ;;  %v6090_v5 = vadd.f32 %v6089_v40, %v6088_v0 }
 0x4d3   : > { %v6085_v19 = vadd.f32 %v6084_v60, %v6083_v1  ;;  %v6091_v61 = vrot.slane %v6090_v5, 2 }
 0x4d5   : > { %v6086_v31 = vrot.slane %v6085_v19, 1  ;;  %v6092_v21 = vadd.f32 %v6091_v61, %v6090_v5 }
 0x4d7   : > { %v6093_v20 = vrot.slane %v6092_v21, 1  ;;  %v6087_v7 = vadd.f32 %v6086_v31, %v6085_v19 }
 0x4d9   : > { %v6094_v33 = vadd.f32 %v6093_v20, %v6092_v21  ;;  %v6096_v18 = vmul.f32 0.0625, %v6087_v7 }
 0x4db   : > { %v6097_v15 = vmul.f32 0.0625, %v6094_v33  ;;  %v6098_v29 = vpack.c.bf16 %v6096_v18, %v6096_v18 }
 0x4dd   : > { %v6099_v24 = vpack.c.bf16 %v6097_v15, %v6097_v15 }
 0x4df   : > { %6336 = vmatprep.mubr.bf16.mxu0 %v6099_v24 }
 0x4e0   : > { %6337 = vmatmul.mubr.bf16.vlgmr.msra.gmra.mxu0 %v6098_v29 }
 0x4e1   : > { %7696 = vmatprep.mubr.msk.bf16.mxu0 %vm8287_vm10, %v8286_v51  ;;  %7693 = vmatpush3.bf16.msra.mxu0 %v8216_v27 }
 0x4e2   : > { %7694 = vmatprep.subr.bf16.mxu0 %v8286_v51 }
 0x4e5   : > { %7695 = vmatpush3.bf16.msra.mxu0 %v8217_v34 }
 0x5a0   : > { %v6338_v53 = vpop.f32.mrf.mxu0 }
 0x5a1   : > { %v6339_v59 = vadd.f32 %v6338_v53, %v6297_v48 }
 0x5a2   : > { %v6340_v26 = vpop.f32.mrf.mxu0 }
 0x5a3   : > { %v6341_v55 = vadd.f32 %v6340_v26, %v6301_v11  ;;  %v6345_v9 = vmax.f32 %v6339_v59, 0.0 }
 0x5a4   : > { %v6342_v42 = vpop.f32.mrf.mxu0 }
 0x5a5   : > { %v6346_v50 = vmax.f32 %v6341_v55, 0.0  ;;  %v6364_v49 = vpack.c.bf16 %v6345_v9, %v6345_v9 }
 0x5a6   : > { %v6343_v16 = vpop.f32.mrf.mxu0 }
 0x5a7   : > { %v6365_v6 = vpack.c.bf16 %v6346_v50, %v6346_v50 }
 0x5a9   : > { %6526 = vmatprep.mubr.bf16.mxu1 %v6365_v6 }
 0x5aa   : > { %6527 = vmatmul.mubr.bf16.vlgmr.msra.gmra.mxu1 %v6364_v49 }
 0x5ab   : > { %7673 = vmatpush3.bf16.msra.mxu1 %v8208_v25  ;;  %7688 = vmatprep.mubr.msk.bf16.mxu1 %vm8287_vm10, %v8286_v51 }
 0x5ac   : > { %7674 = vmatprep.subr.bf16.mxu1 %v8286_v51 }
 0x5af   : > { %7675 = vmatpush3.bf16.msra.mxu1 %v8209_v2 }
 0x5b0   : > { %7676 = vmatprep.subr.bf16.mxu1 %v8286_v51 }
 0x5b3   : > { %7677 = vmatpush3.bf16.msra.mxu1 %v8210_v45 }
 0x5b4   : > { %7678 = vmatprep.subr.bf16.mxu1 %v8286_v51 }
 0x5b7   : > { %7679 = vmatpush3.bf16.msra.mxu1 %v8211_v43 }
 0x5b8   : > { %7680 = vmatprep.subr.bf16.mxu1 %v8286_v51 }
 0x5bb   : > { %7681 = vmatpush3.bf16.msra.mxu1 %v8212_v63 }
 0x5bc   : > { %7682 = vmatprep.subr.bf16.mxu1 %v8286_v51 }
 0x5bf   : > { %7683 = vmatpush3.bf16.msra.mxu1 %v8213_v14 }
 0x5c0   : > { %7684 = vmatprep.subr.bf16.mxu1 %v8286_v51 }
 0x5c3   : > { %7685 = vmatpush3.bf16.msra.mxu1 %v8214_v17 }
 0x5c4   : > { %7686 = vmatprep.subr.bf16.mxu1 %v8286_v51 }
 0x5c7   : > { %7687 = vmatpush3.bf16.msra.mxu1 %v8215_v28 }
 0x5ca   : > { %7689 = vmatmul.mubr.bf16.vlgmr.msra.gmra.mxu1 %v6347_v44 }
 0x66a   : > { %v7602_v32 = vpop.f32.mrf.mxu1 }
 0x66c   : > { %v7603_v37 = vpop.f32.mrf.mxu1 }
 0x66d   : > { %v7604_v12 = vadd.f32 %v7603_v37, %v7602_v32 }
 0x66e   : > { %v7605_v54 = vpop.f32.mrf.mxu1 }
 0x670   : > { %v7606_v57 = vpop.f32.mrf.mxu1 }
 0x68a   : > { %v6616_v30 = vpop.f32.mrf.mxu1 }
 0x68b   : > { %v6617_v47 = vadd.f32 %v7604_v12, %v6616_v30 }
 0x68c   : > { %v7690_v52 = vpop.f32.mrf.mxu1 }
 0x68d   : > { %v6623_v38 = vadd.f32 %v6622_v39, %v6617_v47 }
 0x68e   : > { %v6619_v35 = vpop.f32.mrf.mxu1 }
 0x68f   : > { %v6624_v58 = vmax.f32 %v6623_v38, 0.0 }
 0x690   : > { %v7691_v10 = vpop.f32.mrf.mxu1 }
 0x691   : > { %v6625_v8 = vpack.c.bf16 %v6624_v58, %v6624_v58 }
 0x693   : > { %7697 = vmatmul.mubr.msk.bf16.vlgmr.msra.gmra.mxu0 %vm6643_vm11, %v6625_v8 }
 0x753   : > { %v6681_v46 = vpop.f32.mrf.mxu0 }
 0x754   : > { %v6682_v3 = vadd.f32 %v6681_v46, %v6630_v13 }
 0x755   : > { %v7698_v62 = vpop.f32.mrf.mxu0 }
 0x756   : > { %6687 = vst [vmem:[%s586_s29] sm:$0x1] %v6682_v3 }
 0x757   : > { %v6684_v0 = vpop.f32.mrf.mxu0 }
 0x758   : > { %8232 = shalt.err (!%p8229_p3)
}
 0x759   : > { %s8233_s20 = scalar_lea.hbm %s10233_s24, 16  ;;  %s8237_s23 = scalar_lea.hbm %s10357_s19, 32 }
 0x75a   : > { %p8234_p4 = scmp.ne.s32.totalorder %s10233_s24, %s8233_s20  ;;  %p8238_p9 = scmp.lt.s32.totalorder %s10233_s24, %s10357_s19 }
 0x75b   : > { %p8239_p10 = scmp.lt.s32.totalorder %s8237_s23, %s8233_s20 }
 0x75c   : > { %p8235_p7 = pnand %p8234_p4, %p8422_p5 }
 0x75d   : > { %p8240_p11 = por %p8239_p10, %p8238_p9 }
 0x75e   : > { %p8236_p8 = pneg %p8235_p7 }
 0x760   : > { %p8241_p12 = pnand %p8240_p11, %p8236_p8 }
 0x762   : > { %8244 = shalt.err (!%p8241_p12)
}
 0x763   : > { %7701 = dma.vmem_to_hbm [thread:$0]  (%p8422_p5), %s10235_s27, 16, %s10233_s24, %s6692_s25   ;;  %v7699_v1 = vpop.f32.mrf.mxu0 }
 0x764 PF: > { %s10358_s21 = sld [smem:[#allocation9_spill]] }
 0x765   : > { %s10359_s18 = sld [smem:[#allocation7_spill]] }
 0x76a   : > { %p7707_p13 = scmp.ge.s32.totalorder %s10358_s21, 2 }
 0x76b   : > { %s6725_s30 = sand.u32 1, %s10359_s18  }
 0x76c   : > { %p7704_p0 = pnand %p7707_p13, %p8426_p6  ;;  %s6726_s29 = scalar_lea.sflag [#allocation5], %s6725_s30 }
 0x76e   : > { %p7705_p1 = pneg %p7704_p0 }
 0x770   : > { %8262 = dma.done.wait (%p7705_p1), %s6726_s29, 16  }
 0x771   : > { %8264 = vsyncadd (%p7705_p1), %s6726_s29, 4294967280  ;;  %s10361_s30 = sld [smem:[#allocation10_spill]]  ;;  %s10364_s27 = smov %s8271_s28 }
 0x772   : > { %s10362_s20 = sld [smem:[#allocation8_spill]] }
 0x773   : > { %s10363_s29 = sld [smem:[#allocation11_spill]] }
 0x777   : > { %p29_p2 = scmp.ge.s32.totalorder %s10361_s30, 4  }
 0x778   : > { %s10365_s28 = smov %s10362_s20 }
 0x779   :  { %31 = sbr.rel (!%p29_p2) target bundleno = 8 (0x8), region = 144 }
 0x77e   :  { %6730 = vsyncpa [#allocation5], 1 }
 0x77f   :  { %6732 = vsyncpa [#allocation5 + $0x1], 1 }

</bundles_post_ra>
